<compile_context>
chip_gen: v7x
topology: tpu7x:2x2x1
jax: 0.10.0
libtpu: 0.0.40
codegen_flags: <defaults>
</compile_context>

<pallas_src>
import functools

import jax
import jax.numpy as jnp
from jax.experimental import pallas as pl
from jax.experimental.pallas import tpu as pltpu


def _round_up(x, m):
    return ((x + m - 1) // m) * m


def _query_vmem_capacity_bytes():
    """Physical VMEM of the local TPU; conservative 64 MiB if unknown."""
    try:
        info = pltpu.get_tpu_info()
        cap = int(info.vmem_capacity_bytes)
        if cap > 0:
            return cap
    except Exception:
        pass
    return 64 << 20  # smallest current generation (v7x per-TensorCore VMEM)


def _metric_squared_kernel(g_ref, o_ref, *, n, outer_product):
    # g_ref / o_ref: (TB, n*n) lane-dense tiles; row b holds R[b] flattened
    # row-major (flat index i*n + j  <->  R[b, i, j]).
    g = g_ref[...].astype(jnp.float32)   # f32 VPU math (v5e VPU has no bf16)
    tb = g.shape[0]

    # One XLU transpose puts the batch on the 128-lane axis; everything after
    # this is lane-parallel VPU work (no per-batch MXU matmuls).
    gt = g.T                              # (n*n, TB)
    r3 = gt.reshape(n, n, tb)             # r3[i, j, b] = R[b, i, j]
    if outer_product:
        # G = R @ R^T : out[b,i,k] = sum_j R[b,i,j] * R[b,k,j]
        # After the swap, slab j gives col[i, b] = R[b, i, j].
        r3 = jnp.swapaxes(r3, 0, 1)
    # else: G = R^T @ R : out[b,i,k] = sum_j R[b,j,i] * R[b,j,k]
    #       slab j of r3 already gives col[i, b] = R[b, j, i].

    def term(j):
        col = r3[j]                                   # (n, TB)
        return col[:, None, :] * col[None, :, :]      # (n, n, TB)

    acc = term(0)
    for j in range(1, n):                 # unrolled: only n (=16) VPU terms
        acc = acc + term(j)

    # acc[i, k, b] = G[b, i, k]; back to the lane-dense (TB, n*n) layout.
    out = acc.reshape(n * n, tb).T
    o_ref[...] = out.astype(o_ref.dtype)


def metric_squared_matmul(g_root, *, outer_product=False):
    """Batched G_root^T @ G_root (or G_root @ G_root^T): (B, N, N) -> (B, N, N)."""
    B, N, N2 = g_root.shape
    assert N == N2, (N, N2)
    NN = N * N

    # ---- generation-aware VMEM budgeting (padded shapes) --------------------
    vmem_cap = _query_vmem_capacity_bytes()
    small_vmem = vmem_cap <= (64 << 20)      # v7x-class: 64 MiB/TC, 2 TensorCores
    tile_budget = (20 << 20) if small_vmem else (48 << 20)
    vmem_limit = (40 << 20) if small_vmem else (96 << 20)

    itemsize = jnp.dtype(g_root.dtype).itemsize
    lane_bytes_io = _round_up(NN, 128) * itemsize   # padded bytes of one I/O batch row
    lane_bytes_f32 = _round_up(NN, 128) * 4         # padded bytes of one f32 working row
    # Per batch row: double-buffered input + output pipeline buffers, plus
    # ~6 f32-sized in-kernel working copies (upcast input, transpose, swapped
    # view, accumulator, per-term product, re-transposed output).
    bytes_per_batch = 4 * lane_bytes_io + 6 * lane_bytes_f32

    tb = int(max(1, min(B, tile_budget // bytes_per_batch)))
    if tb >= 8:
        tb = (tb // 8) * 8                  # sublane-aligned batch tile

    # Only force a >= 2-step (and even-length) grid on two-TensorCore parts;
    # on a single TC the grid is a sequential loop and splitting just adds the
    # ~0.35 us/step pipeline overhead and halves each DMA.
    if small_vmem and B >= 16:
        steps = pl.cdiv(B, tb)
        if steps < 2:
            tb = _round_up(pl.cdiv(B, 2), 8)
        elif steps % 2:
            tb = max(8, _round_up(pl.cdiv(B, steps + 1), 8))
    tb = int(min(tb, B))

    # Lane-dense view: (B, N, N) -> (B, N*N) is a contiguous (free) reshape.
    g_flat = g_root.reshape(B, NN)

    kernel = functools.partial(_metric_squared_kernel, n=N, outer_product=outer_product)
    out_flat = pl.pallas_call(
        kernel,
        out_shape=jax.ShapeDtypeStruct((B, NN), g_root.dtype),
        grid=(pl.cdiv(B, tb),),
        in_specs=[pl.BlockSpec((tb, NN), lambda b: (b, 0))],
        out_specs=pl.BlockSpec((tb, NN), lambda b: (b, 0)),
        compiler_params=pltpu.CompilerParams(
            dimension_semantics=("parallel",),
            vmem_limit_bytes=vmem_limit,
        ),
    )(g_flat)
    return out_flat.reshape(B, N, N)


def make_metric_root_fn(key, n):
    """Synthetic deterministic stand-in for the injected metric_root_fn: q (B,n) -> (B,n,n)."""
    kw, kb = jax.random.split(key)
    W = 0.1 * jax.random.normal(kw, (n, n * n), dtype=jnp.float32)
    b = 0.1 * jax.random.normal(kb, (n * n,), dtype=jnp.float32)

    def metric_root_fn(q):
        return jnp.tanh(q @ W + b).reshape(q.shape[0], n, n)

    return metric_root_fn


class MetricSquared:
    """JAX/Pallas port of the PyTorch MetricSquared module."""

    # TODO(synk): metric_root_fn is an injected, arbitrary submodule in the
    # original PyTorch code, so it cannot be fused into the Pallas kernel in
    # general; when it is the known small linear+tanh net, fusing it in-kernel
    # (q, W, b as inputs) would remove the g_root HBM round trip entirely.

    def __init__(self, metric_root_fn, outer_product=False):
        self.metric_root_fn = metric_root_fn
        self.outer_product = outer_product

    def __call__(self, q):
        g_root = self.metric_root_fn(q)
        return metric_squared_matmul(g_root, outer_product=self.outer_product)


if __name__ == "__main__":
    key = jax.random.PRNGKey(0)
    kq, kr = jax.random.split(key)
    B, N = 4, 16

    q = jax.random.normal(kq, (B, N), dtype=jnp.float32)
    metric_root_fn = make_metric_root_fn(kr, N)

    for outer in (False, True):
        model = MetricSquared(metric_root_fn, outer_product=outer)
        out = jax.block_until_ready(model(q))

        g_root = metric_root_fn(q)
        g_root_t = jnp.transpose(g_root, (0, 2, 1))
        ref = jnp.matmul(g_root, g_root_t) if outer else jnp.matmul(g_root_t, g_root)

        assert out.shape == (B, N, N), out.shape
        err = float(jnp.max(jnp.abs(out - ref)))
        assert jnp.allclose(out, ref, atol=1e-5, rtol=1e-5), err

    print("KERNEL_OK")
</pallas_src>

<mosaic_0001>
module attributes {stable_mosaic.version = 11 : i64} {
  func.func @_metric_squared_kernel(%arg0: i32, %arg1: memref<4x256xf32, #tpu.memory_space<vmem>>, %arg2: memref<4x256xf32, #tpu.memory_space<vmem>>) attributes {dimension_semantics = [#tpu.dimension_semantics<parallel>], iteration_bounds = array<i64: 1>, scalar_prefetch = 0 : i64, scratch_operands = 0 : i64, tpu.core_type = #tpu.core_type<tc>, window_params = [{transform_indices = @transform_0, window_bounds = array<i64: 4, 256>}, {transform_indices = @transform_1, window_bounds = array<i64: 4, 256>}]} {
    %c0 = arith.constant 0 : index
    %c0_0 = arith.constant 0 : index
    %0 = vector.load %arg1[%c0, %c0_0] : memref<4x256xf32, #tpu.memory_space<vmem>>, vector<4x256xf32>
    %1 = tpu.transpose %0, [1, 0] : vector<4x256xf32> -> vector<256x4xf32>
    %2 = vector.shape_cast %1 : vector<256x4xf32> to vector<16x16x4xf32>
    %3 = vector.extract_strided_slice %2 {offsets = [0, 0, 0], sizes = [1, 16, 4], strides = [1, 1, 1]} : vector<16x16x4xf32> to vector<1x16x4xf32>
    %4 = vector.shape_cast %3 : vector<1x16x4xf32> to vector<16x4xf32>
    %5 = vector.shape_cast %4 : vector<16x4xf32> to vector<16x1x4xf32>
    %6 = vector.shape_cast %4 : vector<16x4xf32> to vector<1x16x4xf32>
    %7 = vector.broadcast %5 : vector<16x1x4xf32> to vector<16x16x4xf32>
    %8 = vector.broadcast %6 : vector<1x16x4xf32> to vector<16x16x4xf32>
    %9 = arith.mulf %7, %8 : vector<16x16x4xf32>
    %10 = vector.extract_strided_slice %2 {offsets = [1, 0, 0], sizes = [1, 16, 4], strides = [1, 1, 1]} : vector<16x16x4xf32> to vector<1x16x4xf32>
    %11 = vector.shape_cast %10 : vector<1x16x4xf32> to vector<16x4xf32>
    %12 = vector.shape_cast %11 : vector<16x4xf32> to vector<16x1x4xf32>
    %13 = vector.shape_cast %11 : vector<16x4xf32> to vector<1x16x4xf32>
    %14 = vector.broadcast %12 : vector<16x1x4xf32> to vector<16x16x4xf32>
    %15 = vector.broadcast %13 : vector<1x16x4xf32> to vector<16x16x4xf32>
    %16 = arith.mulf %14, %15 : vector<16x16x4xf32>
    %17 = arith.addf %9, %16 : vector<16x16x4xf32>
    %18 = vector.extract_strided_slice %2 {offsets = [2, 0, 0], sizes = [1, 16, 4], strides = [1, 1, 1]} : vector<16x16x4xf32> to vector<1x16x4xf32>
    %19 = vector.shape_cast %18 : vector<1x16x4xf32> to vector<16x4xf32>
    %20 = vector.shape_cast %19 : vector<16x4xf32> to vector<16x1x4xf32>
    %21 = vector.shape_cast %19 : vector<16x4xf32> to vector<1x16x4xf32>
    %22 = vector.broadcast %20 : vector<16x1x4xf32> to vector<16x16x4xf32>
    %23 = vector.broadcast %21 : vector<1x16x4xf32> to vector<16x16x4xf32>
    %24 = arith.mulf %22, %23 : vector<16x16x4xf32>
    %25 = arith.addf %17, %24 : vector<16x16x4xf32>
    %26 = vector.extract_strided_slice %2 {offsets = [3, 0, 0], sizes = [1, 16, 4], strides = [1, 1, 1]} : vector<16x16x4xf32> to vector<1x16x4xf32>
    %27 = vector.shape_cast %26 : vector<1x16x4xf32> to vector<16x4xf32>
    %28 = vector.shape_cast %27 : vector<16x4xf32> to vector<16x1x4xf32>
    %29 = vector.shape_cast %27 : vector<16x4xf32> to vector<1x16x4xf32>
    %30 = vector.broadcast %28 : vector<16x1x4xf32> to vector<16x16x4xf32>
    %31 = vector.broadcast %29 : vector<1x16x4xf32> to vector<16x16x4xf32>
    %32 = arith.mulf %30, %31 : vector<16x16x4xf32>
    %33 = arith.addf %25, %32 : vector<16x16x4xf32>
    %34 = vector.extract_strided_slice %2 {offsets = [4, 0, 0], sizes = [1, 16, 4], strides = [1, 1, 1]} : vector<16x16x4xf32> to vector<1x16x4xf32>
    %35 = vector.shape_cast %34 : vector<1x16x4xf32> to vector<16x4xf32>
    %36 = vector.shape_cast %35 : vector<16x4xf32> to vector<16x1x4xf32>
    %37 = vector.shape_cast %35 : vector<16x4xf32> to vector<1x16x4xf32>
    %38 = vector.broadcast %36 : vector<16x1x4xf32> to vector<16x16x4xf32>
    %39 = vector.broadcast %37 : vector<1x16x4xf32> to vector<16x16x4xf32>
    %40 = arith.mulf %38, %39 : vector<16x16x4xf32>
    %41 = arith.addf %33, %40 : vector<16x16x4xf32>
    %42 = vector.extract_strided_slice %2 {offsets = [5, 0, 0], sizes = [1, 16, 4], strides = [1, 1, 1]} : vector<16x16x4xf32> to vector<1x16x4xf32>
    %43 = vector.shape_cast %42 : vector<1x16x4xf32> to vector<16x4xf32>
    %44 = vector.shape_cast %43 : vector<16x4xf32> to vector<16x1x4xf32>
    %45 = vector.shape_cast %43 : vector<16x4xf32> to vector<1x16x4xf32>
    %46 = vector.broadcast %44 : vector<16x1x4xf32> to vector<16x16x4xf32>
    %47 = vector.broadcast %45 : vector<1x16x4xf32> to vector<16x16x4xf32>
    %48 = arith.mulf %46, %47 : vector<16x16x4xf32>
    %49 = arith.addf %41, %48 : vector<16x16x4xf32>
    %50 = vector.extract_strided_slice %2 {offsets = [6, 0, 0], sizes = [1, 16, 4], strides = [1, 1, 1]} : vector<16x16x4xf32> to vector<1x16x4xf32>
    %51 = vector.shape_cast %50 : vector<1x16x4xf32> to vector<16x4xf32>
    %52 = vector.shape_cast %51 : vector<16x4xf32> to vector<16x1x4xf32>
    %53 = vector.shape_cast %51 : vector<16x4xf32> to vector<1x16x4xf32>
    %54 = vector.broadcast %52 : vector<16x1x4xf32> to vector<16x16x4xf32>
    %55 = vector.broadcast %53 : vector<1x16x4xf32> to vector<16x16x4xf32>
    %56 = arith.mulf %54, %55 : vector<16x16x4xf32>
    %57 = arith.addf %49, %56 : vector<16x16x4xf32>
    %58 = vector.extract_strided_slice %2 {offsets = [7, 0, 0], sizes = [1, 16, 4], strides = [1, 1, 1]} : vector<16x16x4xf32> to vector<1x16x4xf32>
    %59 = vector.shape_cast %58 : vector<1x16x4xf32> to vector<16x4xf32>
    %60 = vector.shape_cast %59 : vector<16x4xf32> to vector<16x1x4xf32>
    %61 = vector.shape_cast %59 : vector<16x4xf32> to vector<1x16x4xf32>
    %62 = vector.broadcast %60 : vector<16x1x4xf32> to vector<16x16x4xf32>
    %63 = vector.broadcast %61 : vector<1x16x4xf32> to vector<16x16x4xf32>
    %64 = arith.mulf %62, %63 : vector<16x16x4xf32>
    %65 = arith.addf %57, %64 : vector<16x16x4xf32>
    %66 = vector.extract_strided_slice %2 {offsets = [8, 0, 0], sizes = [1, 16, 4], strides = [1, 1, 1]} : vector<16x16x4xf32> to vector<1x16x4xf32>
    %67 = vector.shape_cast %66 : vector<1x16x4xf32> to vector<16x4xf32>
    %68 = vector.shape_cast %67 : vector<16x4xf32> to vector<16x1x4xf32>
    %69 = vector.shape_cast %67 : vector<16x4xf32> to vector<1x16x4xf32>
    %70 = vector.broadcast %68 : vector<16x1x4xf32> to vector<16x16x4xf32>
    %71 = vector.broadcast %69 : vector<1x16x4xf32> to vector<16x16x4xf32>
    %72 = arith.mulf %70, %71 : vector<16x16x4xf32>
    %73 = arith.addf %65, %72 : vector<16x16x4xf32>
    %74 = vector.extract_strided_slice %2 {offsets = [9, 0, 0], sizes = [1, 16, 4], strides = [1, 1, 1]} : vector<16x16x4xf32> to vector<1x16x4xf32>
    %75 = vector.shape_cast %74 : vector<1x16x4xf32> to vector<16x4xf32>
    %76 = vector.shape_cast %75 : vector<16x4xf32> to vector<16x1x4xf32>
    %77 = vector.shape_cast %75 : vector<16x4xf32> to vector<1x16x4xf32>
    %78 = vector.broadcast %76 : vector<16x1x4xf32> to vector<16x16x4xf32>
    %79 = vector.broadcast %77 : vector<1x16x4xf32> to vector<16x16x4xf32>
    %80 = arith.mulf %78, %79 : vector<16x16x4xf32>
    %81 = arith.addf %73, %80 : vector<16x16x4xf32>
    %82 = vector.extract_strided_slice %2 {offsets = [10, 0, 0], sizes = [1, 16, 4], strides = [1, 1, 1]} : vector<16x16x4xf32> to vector<1x16x4xf32>
    %83 = vector.shape_cast %82 : vector<1x16x4xf32> to vector<16x4xf32>
    %84 = vector.shape_cast %83 : vector<16x4xf32> to vector<16x1x4xf32>
    %85 = vector.shape_cast %83 : vector<16x4xf32> to vector<1x16x4xf32>
    %86 = vector.broadcast %84 : vector<16x1x4xf32> to vector<16x16x4xf32>
    %87 = vector.broadcast %85 : vector<1x16x4xf32> to vector<16x16x4xf32>
    %88 = arith.mulf %86, %87 : vector<16x16x4xf32>
    %89 = arith.addf %81, %88 : vector<16x16x4xf32>
    %90 = vector.extract_strided_slice %2 {offsets = [11, 0, 0], sizes = [1, 16, 4], strides = [1, 1, 1]} : vector<16x16x4xf32> to vector<1x16x4xf32>
    %91 = vector.shape_cast %90 : vector<1x16x4xf32> to vector<16x4xf32>
    %92 = vector.shape_cast %91 : vector<16x4xf32> to vector<16x1x4xf32>
    %93 = vector.shape_cast %91 : vector<16x4xf32> to vector<1x16x4xf32>
    %94 = vector.broadcast %92 : vector<16x1x4xf32> to vector<16x16x4xf32>
    %95 = vector.broadcast %93 : vector<1x16x4xf32> to vector<16x16x4xf32>
    %96 = arith.mulf %94, %95 : vector<16x16x4xf32>
    %97 = arith.addf %89, %96 : vector<16x16x4xf32>
    %98 = vector.extract_strided_slice %2 {offsets = [12, 0, 0], sizes = [1, 16, 4], strides = [1, 1, 1]} : vector<16x16x4xf32> to vector<1x16x4xf32>
    %99 = vector.shape_cast %98 : vector<1x16x4xf32> to vector<16x4xf32>
    %100 = vector.shape_cast %99 : vector<16x4xf32> to vector<16x1x4xf32>
    %101 = vector.shape_cast %99 : vector<16x4xf32> to vector<1x16x4xf32>
    %102 = vector.broadcast %100 : vector<16x1x4xf32> to vector<16x16x4xf32>
    %103 = vector.broadcast %101 : vector<1x16x4xf32> to vector<16x16x4xf32>
    %104 = arith.mulf %102, %103 : vector<16x16x4xf32>
    %105 = arith.addf %97, %104 : vector<16x16x4xf32>
    %106 = vector.extract_strided_slice %2 {offsets = [13, 0, 0], sizes = [1, 16, 4], strides = [1, 1, 1]} : vector<16x16x4xf32> to vector<1x16x4xf32>
    %107 = vector.shape_cast %106 : vector<1x16x4xf32> to vector<16x4xf32>
    %108 = vector.shape_cast %107 : vector<16x4xf32> to vector<16x1x4xf32>
    %109 = vector.shape_cast %107 : vector<16x4xf32> to vector<1x16x4xf32>
    %110 = vector.broadcast %108 : vector<16x1x4xf32> to vector<16x16x4xf32>
    %111 = vector.broadcast %109 : vector<1x16x4xf32> to vector<16x16x4xf32>
    %112 = arith.mulf %110, %111 : vector<16x16x4xf32>
    %113 = arith.addf %105, %112 : vector<16x16x4xf32>
    %114 = vector.extract_strided_slice %2 {offsets = [14, 0, 0], sizes = [1, 16, 4], strides = [1, 1, 1]} : vector<16x16x4xf32> to vector<1x16x4xf32>
    %115 = vector.shape_cast %114 : vector<1x16x4xf32> to vector<16x4xf32>
    %116 = vector.shape_cast %115 : vector<16x4xf32> to vector<16x1x4xf32>
    %117 = vector.shape_cast %115 : vector<16x4xf32> to vector<1x16x4xf32>
    %118 = vector.broadcast %116 : vector<16x1x4xf32> to vector<16x16x4xf32>
    %119 = vector.broadcast %117 : vector<1x16x4xf32> to vector<16x16x4xf32>
    %120 = arith.mulf %118, %119 : vector<16x16x4xf32>
    %121 = arith.addf %113, %120 : vector<16x16x4xf32>
    %122 = vector.extract_strided_slice %2 {offsets = [15, 0, 0], sizes = [1, 16, 4], strides = [1, 1, 1]} : vector<16x16x4xf32> to vector<1x16x4xf32>
    %123 = vector.shape_cast %122 : vector<1x16x4xf32> to vector<16x4xf32>
    %124 = vector.shape_cast %123 : vector<16x4xf32> to vector<16x1x4xf32>
    %125 = vector.shape_cast %123 : vector<16x4xf32> to vector<1x16x4xf32>
    %126 = vector.broadcast %124 : vector<16x1x4xf32> to vector<16x16x4xf32>
    %127 = vector.broadcast %125 : vector<1x16x4xf32> to vector<16x16x4xf32>
    %128 = arith.mulf %126, %127 : vector<16x16x4xf32>
    %129 = arith.addf %121, %128 : vector<16x16x4xf32>
    %130 = vector.shape_cast %129 : vector<16x16x4xf32> to vector<256x4xf32>
    %131 = tpu.transpose %130, [1, 0] : vector<256x4xf32> -> vector<4x256xf32>
    %c0_1 = arith.constant 0 : index
    %c0_2 = arith.constant 0 : index
    %132 = vector.load %arg2[%c0_1, %c0_2] : memref<4x256xf32, #tpu.memory_space<vmem>>, vector<4x256xf32>
    tpu.vector_store %arg2[%c0_1, %c0_2], %131 {strides = array<i32>} : memref<4x256xf32, #tpu.memory_space<vmem>>, vector<4x256xf32>,
    return
  }
  func.func @transform_0(%arg0: i32) -> (i32, i32) {
    %c0_i32 = arith.constant 0 : i32
    %c0_i32_0 = arith.constant 0 : i32
    return %arg0, %c0_i32 : i32, i32
  }
  func.func @transform_1(%arg0: i32) -> (i32, i32) {
    %c0_i32 = arith.constant 0 : i32
    %c0_i32_0 = arith.constant 0 : i32
    return %arg0, %c0_i32 : i32, i32
  }
}

</mosaic_0001>

<bundles_post_ra>
// kernel: tpu_custom_call.1
= control target key start
LH: loop header
LB: loop body
LE: loop exit
PB: predicated region body
PF: predicated region fallthrough
CT: control target
= control target key end

     0   :  { %6 = vsyncpa [#allocation3], 0  ;;  %s6466_s0 = inlined_call_operand.hbm [shape: f32[4,256], index: 0, kind: input, shape index: {}]   ;;  %s6467_s1 = inlined_call_operand.hbm [shape: f32[4,256], index: 1, kind: output, shape index: {}]  }
   0x1   :  { %7 = vsyncpa [#allocation4], 0  ;;  %s4098_s6 = smov [#allocation2]   ;;  %s4050_s10 = scalar_lea.hbm %s6466_s0, 128 }
   0x2   :  { %s14_s7 = sshll.u32 %s4098_s6, 4  ;;  %p4051_p0 = scmp.ne.s32.totalorder %s6466_s0, %s4050_s10  ;;  %s15_s7 = int_to_ptr.vmem [resolvable:$true] %s14_s7 }
   0x3   :  { %p4054_p1 = scmp.lt.u32.totalorder %s4050_s10, %s6466_s0 }
   0x5   :  { %p4056_p2 = pnand %p4054_p1, %p4051_p0 }
   0x7   :  { %4059 = shalt.err (!%p4056_p2)
}
   0x8   :  { %s4060_s15 = scalar_lea.vmem %s15_s7, 128  ;;  %p4065_p4 = scmp.lt.s32.totalorder %s15_s7, %s15_s7 }
   0x9   :  { %p4061_p3 = scmp.ne.s32.totalorder %s15_s7, %s4060_s15  ;;  %p4066_p5 = scmp.lt.s32.totalorder %s4060_s15, %s4060_s15 }
   0xb   :  { %p4067_p6 = por %p4066_p5, %p4065_p4 }
   0xd   :  { %p4068_p7 = pnand %p4067_p6, %p4061_p3 }
   0xf   :  { %4071 = shalt.err (!%p4068_p7)
}
  0x10   :  { %17 = dma.hbm_to_vmem [thread:$0]  %s6466_s0, 128, %s15_s7, [#allocation3]  }
  0x11   :  { %4094 = dma.done.wait [#allocation3], 128  }
  0x12   :  { %4095 = vsyncadd [#allocation3], 4294967168  ;;  %v21_v0 = vld [vmem:[#allocation2] sm:$0xff]  ;;  %v4099_v2 = vmov 1966171168   ;;  %v95_v4 = vlaneseq  ;;  %s4100_s0 = smov [#allocation5]  }
  0x13   :  { %25 = vxpose.xlu0.b32.start.end [1/1] (short) %v21_v0, 128  ;;  %v23_v1 = vcombine.high %v21_v0, %v21_v0  ;;  %v93_v3 = vunpack.c.l.s4 %v4099_v2  ;;  %s4036_s18 = sshll.u32 %s4100_s0, 4  ;;  %s4037_s18 = int_to_ptr.vmem [resolvable:$true] %s4036_s18 }
  0x14   :  { %v96_v6 = vshrl.u32 %v95_v4, 7  ;;  %s4072_s19 = scalar_lea.vmem %s4037_s18, 128  ;;  %p4077_p9 = scmp.lt.s32.totalorder %s4037_s18, %s4037_s18 }
  0x15   :  { %v94_v5 = vunpack.c.0.s8 %v93_v3  ;;  %p4073_p8 = scmp.ne.s32.totalorder %s4037_s18, %s4072_s19  ;;  %p4078_p10 = scmp.lt.s32.totalorder %s4072_s19, %s4072_s19 }
  0x16   :  { %v4129_v10 = vsub.s32 0, %v96_v6 }
  0x17   :  { %v4123_v7 = vsub.s32 %v94_v5, %v96_v6  ;;  %p4079_p11 = por %p4078_p10, %p4077_p9 }
  0x19   :  { %6686 = vst [vmem:[#allocation8_spill] sm:$0xff] %v4123_v7  ;;  %p4080_p12 = pnand %p4079_p11, %p4073_p8 }
  0x50   :  { %57 = vxpose.xlu0.b32.start.end [1/1] (short) %v23_v1, 128 }
  0x93   :  { %v4125_v8 = vpop.trf.xlu0 }
  0x94   :  { %6687 = vst [vmem:[#allocation9_spill] sm:$0xff] %v4125_v8  ;;  %v98_v9 = vrot.slane %v4125_v8, %v4123_v7  ;;  %v91_v11 = vcombine.high %v4125_v8, %v4125_v8 }
  0x96   :  { %v114_v12 = vrot.slane %v98_v9, %v4123_v7  ;;  %v106_v13 = vcombine.high %v98_v9, %v98_v9  ;;  %v105_v14 = vrot.slane %v91_v11, %v4123_v7 }
  0x97   :  { %v4135_v15 = vpop.trf.xlu0 }
  0x98   :  { %6688 = vst [vmem:[#allocation10_spill] sm:$0xff] %v4135_v15  ;;  %v192_v16 = vrot.slane %v114_v12, %v4129_v10  ;;  %v128_v17 = vrot.slane %v106_v13, %v4123_v7  ;;  %v136_v18 = vcombine.high %v114_v12, %v114_v12  ;;  %v4140_v19 = vrot.slane %v105_v14, %v4123_v7 }
  0x99   :  { %v107_v20 = vcombine.high %v105_v14, %v105_v14 }
  0x9a   :  { %6689 = vst [vmem:[#allocation11_spill] sm:$0xff] %v4140_v19  ;;  %v196_v21 = vrot.slane %v128_v17, %v4129_v10  ;;  %v200_v22 = vrot.slane %v136_v18, %v4129_v10  ;;  %v138_v24 = vcombine.high %v128_v17, %v128_v17  ;;  %v208_v25 = vrot.slane %v4140_v19, %v4129_v10 }
  0x9b   :  { %v4144_v23 = vpop.trf.xlu0  ;;  %v4149_v26 = vrot.slane %v107_v20, %v4123_v7  ;;  %v269_v27 = vmul.f32 %v192_v16, %v4125_v8  ;;  %v270_v29 = vmul.f32 %v192_v16, %v4135_v15 }
  0x9c   :  { %6690 = vst [vmem:[#allocation12_spill] sm:$0xff] %v4144_v23  ;;  %v310_v28 = vrot.slane %v4144_v23, %v4123_v7  ;;  %v271_v30 = vmul.f32 %v196_v21, %v4125_v8  ;;  %v272_v31 = vmul.f32 %v196_v21, %v4135_v15  ;;  %v273_v32 = vmul.f32 %v200_v22, %v4125_v8 }
  0x9d   :  { %6691 = vst [vmem:[#allocation13_spill] sm:$0xff] %v4149_v26  ;;  %v204_v33 = vrot.slane %v138_v24, %v4129_v10  ;;  %v303_v34 = vcombine.high %v4144_v23, %v4144_v23  ;;  %v274_v37 = vmul.f32 %v200_v22, %v4135_v15  ;;  %v212_v38 = vrot.slane %v4149_v26, %v4129_v10 }
  0x9e   :  { %v326_v35 = vrot.slane %v310_v28, %v4123_v7  ;;  %v318_v36 = vcombine.high %v310_v28, %v310_v28  ;;  %v277_v41 = vmul.f32 %v208_v25, %v4125_v8  ;;  %v278_v43 = vmul.f32 %v208_v25, %v4135_v15 }
  0x9f   :  { %v4165_v39 = vpop.trf.xlu0  ;;  %v275_v40 = vmul.f32 %v204_v33, %v4125_v8  ;;  %v317_v42 = vrot.slane %v303_v34, %v4123_v7  ;;  %v276_v47 = vmul.f32 %v204_v33, %v4135_v15  ;;  %v4178_v49 = vmul.f32 %v212_v38, %v4125_v8 }
  0xa0   :  { %6692 = vst [vmem:[#allocation14_spill] sm:$0xff] %v4165_v39  ;;  %v404_v44 = vrot.slane %v326_v35, %v4129_v10  ;;  %v340_v45 = vrot.slane %v318_v36, %v4123_v7  ;;  %v348_v46 = vcombine.high %v326_v35, %v326_v35  ;;  %v4181_v51 = vmul.f32 %v212_v38, %v4135_v15 }
  0xa1   :  { %v4175_v48 = vrot.slane %v317_v42, %v4123_v7  ;;  %6694 = vst [vmem:[#allocation16_spill] sm:$0xff] %v4178_v49  ;;  %v319_v50 = vcombine.high %v317_v42, %v317_v42 }
  0xa2   :  { %6695 = vst [vmem:[#allocation17_spill] sm:$0xff] %v4181_v51  ;;  %v481_v52 = vmul.f32 %v404_v44, %v4144_v23  ;;  %v482_v53 = vmul.f32 %v404_v44, %v4165_v39  ;;  %v408_v54 = vrot.slane %v340_v45, %v4129_v10  ;;  %v412_v55 = vrot.slane %v348_v46, %v4129_v10 }
  0xa3   :  { %6693 = vst [vmem:[#allocation15_spill] sm:$0xff] %v4175_v48  ;;  %v4187_v56 = vpop.trf.xlu0  ;;  %v350_v57 = vcombine.high %v340_v45, %v340_v45  ;;  %v420_v58 = vrot.slane %v4175_v48, %v4129_v10  ;;  %v4192_v59 = vrot.slane %v319_v50, %v4123_v7 }
  0xa4   :  { %6696 = vst [vmem:[#allocation18_spill] sm:$0xff] %v4187_v56  ;;  %v513_v61 = vadd.f32 %v481_v52, %v269_v27  ;;  %v554_v62 = vrot.slane %v4187_v56, %v4123_v7  ;;  %v514_v63 = vadd.f32 %v482_v53, %v270_v29  ;;  %v483_v0 = vmul.f32 %v408_v54, %v4144_v23 }
  0xa5   :  { %6697 = vst [vmem:[#allocation19_spill] sm:$0xff] %v4192_v59  ;;  %v484_v1 = vmul.f32 %v408_v54, %v4165_v39  ;;  %v485_v2 = vmul.f32 %v412_v55, %v4144_v23  ;;  %v486_v3 = vmul.f32 %v412_v55, %v4165_v39  ;;  %v416_v4 = vrot.slane %v350_v57, %v4129_v10 }
  0xa6   :  { %v570_v5 = vrot.slane %v554_v62, %v4123_v7  ;;  %v515_v6 = vadd.f32 %v483_v0, %v271_v30  ;;  %v562_v9 = vcombine.high %v554_v62, %v554_v62  ;;  %v489_v11 = vmul.f32 %v420_v58, %v4144_v23 }
  0xa7   :  { %v4205_v12 = vpop.trf.xlu0  ;;  %v516_v13 = vadd.f32 %v484_v1, %v272_v31  ;;  %v517_v14 = vadd.f32 %v485_v2, %v273_v32  ;;  %v518_v16 = vadd.f32 %v486_v3, %v274_v37  ;;  %v487_v17 = vmul.f32 %v416_v4, %v4144_v23 }
  0xa8   :  { %6698 = vst [vmem:[#allocation20_spill] sm:$0xff] %v4205_v12  ;;  %v648_v18 = vrot.slane %v570_v5, %v4129_v10  ;;  %v584_v20 = vrot.slane %v562_v9, %v4123_v7  ;;  %v592_v21 = vcombine.high %v570_v5, %v570_v5  ;;  %v488_v22 = vmul.f32 %v416_v4, %v4165_v39 }
  0xa9   :  { %v519_v24 = vadd.f32 %v487_v17, %v275_v40  ;;  %v521_v25 = vadd.f32 %v489_v11, %v277_v41  ;;  %v547_v27 = vcombine.high %v4187_v56, %v4187_v56  ;;  %v490_v28 = vmul.f32 %v420_v58, %v4165_v39 }
  0xaa   :  { %v725_v29 = vmul.f32 %v648_v18, %v4187_v56  ;;  %v726_v30 = vmul.f32 %v648_v18, %v4205_v12  ;;  %v652_v31 = vrot.slane %v584_v20, %v4129_v10  ;;  %v656_v32 = vrot.slane %v592_v21, %v4129_v10 }
  0xab   :  { %v4218_v33 = vpop.trf.xlu0  ;;  %v594_v34 = vcombine.high %v584_v20, %v584_v20  ;;  %v520_v35 = vadd.f32 %v488_v22, %v276_v47  ;;  %v4221_v36 = vrot.slane %v547_v27, %v4123_v7  ;;  %v4223_v37 = vadd.f32 %v490_v28, %v278_v43 }
  0xac   :  { %6699 = vst [vmem:[#allocation21_spill] sm:$0xff] %v4218_v33  ;;  %v757_v38 = vadd.f32 %v725_v29, %v513_v61  ;;  %v798_v40 = vrot.slane %v4218_v33, %v4123_v7  ;;  %v758_v41 = vadd.f32 %v726_v30, %v514_v63  ;;  %v727_v42 = vmul.f32 %v652_v31, %v4187_v56 }
  0xad   :  { %v728_v44 = vmul.f32 %v652_v31, %v4205_v12  ;;  %v729_v45 = vmul.f32 %v656_v32, %v4187_v56  ;;  %v730_v46 = vmul.f32 %v656_v32, %v4205_v12  ;;  %v660_v47 = vrot.slane %v594_v34, %v4129_v10 }
  0xae   :  { %v814_v50 = vrot.slane %v798_v40, %v4123_v7  ;;  %v759_v52 = vadd.f32 %v727_v42, %v515_v6  ;;  %v806_v43 = vcombine.high %v798_v40, %v798_v40  ;;  %v4235_v53 = vrot.slane %v4221_v36, %v4123_v7 }
  0xaf   :  { %v4237_v54 = vpop.trf.xlu0  ;;  %v760_v55 = vadd.f32 %v728_v44, %v516_v13  ;;  %v761_v57 = vadd.f32 %v729_v45, %v517_v14  ;;  %v762_v58 = vadd.f32 %v730_v46, %v518_v16  ;;  %v731_v61 = vmul.f32 %v660_v47, %v4187_v56 }
  0xb0   :  { %6700 = vst [vmem:[#allocation22_spill] sm:$0xff] %v4235_v53  ;;  %6701 = vst [vmem:[#allocation23_spill] sm:$0xff] %v4237_v54  ;;  %v892_v62 = vrot.slane %v814_v50, %v4129_v10  ;;  %v828_v63 = vrot.slane %v806_v43, %v4123_v7  ;;  %v836_v0 = vcombine.high %v814_v50, %v814_v50 }
  0xb1   :  { %v732_v1 = vmul.f32 %v660_v47, %v4205_v12  ;;  %v763_v2 = vadd.f32 %v731_v61, %v519_v24  ;;  %v664_v3 = vrot.slane %v4235_v53, %v4129_v10  ;;  %v791_v4 = vcombine.high %v4218_v33, %v4218_v33 }
  0xb2   :  { %v4249_v5 = vrot.slane %v4192_v59, %v4129_v10  ;;  %v969_v6 = vmul.f32 %v892_v62, %v4218_v33  ;;  %v970_v9 = vmul.f32 %v892_v62, %v4237_v54  ;;  %v896_v11 = vrot.slane %v828_v63, %v4129_v10 }
  0xb3   :  { %v900_v13 = vrot.slane %v836_v0, %v4129_v10  ;;  %v4255_v14 = vpop.trf.xlu0  ;;  %v838_v16 = vcombine.high %v828_v63, %v828_v63  ;;  %v764_v17 = vadd.f32 %v732_v1, %v520_v35  ;;  %v733_v18 = vmul.f32 %v664_v3, %v4187_v56 }
  0xb4   :  { %6702 = vst [vmem:[#allocation24_spill] sm:$0xff] %v4255_v14  ;;  %v4259_v20 = vrot.slane %v791_v4, %v4123_v7  ;;  %v1001_v21 = vadd.f32 %v969_v6, %v757_v38  ;;  %v1042_v22 = vrot.slane %v4255_v14, %v4123_v7  ;;  %v1002_v24 = vadd.f32 %v970_v9, %v758_v41 }
  0xb5   :  { %v971_v27 = vmul.f32 %v896_v11, %v4218_v33  ;;  %v972_v28 = vmul.f32 %v896_v11, %v4237_v54  ;;  %v973_v29 = vmul.f32 %v900_v13, %v4218_v33  ;;  %v974_v30 = vmul.f32 %v900_v13, %v4237_v54 }
  0xb6   :  { %v904_v31 = vrot.slane %v838_v16, %v4129_v10  ;;  %v1058_v32 = vrot.slane %v1042_v22, %v4123_v7  ;;  %v1050_v35 = vcombine.high %v1042_v22, %v1042_v22  ;;  %v765_v40 = vadd.f32 %v733_v18, %v521_v25 }
  0xb7   :  { %v1003_v34 = vadd.f32 %v971_v27, %v759_v52  ;;  %v4269_v38 = vpop.trf.xlu0  ;;  %v1004_v42 = vadd.f32 %v972_v28, %v760_v55  ;;  %v1005_v44 = vadd.f32 %v973_v29, %v761_v57  ;;  %v1006_v41 = vadd.f32 %v974_v30, %v762_v58 }
  0xb8   :  { %6703 = vst [vmem:[#allocation25_spill] sm:$0xff] %v4269_v38  ;;  %v975_v45 = vmul.f32 %v904_v31, %v4218_v33  ;;  %v1136_v46 = vrot.slane %v1058_v32, %v4129_v10  ;;  %v1072_v47 = vrot.slane %v1050_v35, %v4123_v7  ;;  %v1080_v50 = vcombine.high %v1058_v32, %v1058_v32 }
  0xb9   :  { %v976_v43 = vmul.f32 %v904_v31, %v4237_v54  ;;  %v4277_v52 = vrot.slane %v4259_v20, %v4123_v7  ;;  %v1035_v25 = vcombine.high %v4255_v14, %v4255_v14  ;;  %v4282_v55 = vmul.f32 %v664_v3, %v4205_v12 }
  0xba   :  { %v1007_v61 = vadd.f32 %v975_v45, %v763_v2  ;;  %v1213_v57 = vmul.f32 %v1136_v46, %v4255_v14  ;;  %v1214_v58 = vmul.f32 %v1136_v46, %v4269_v38  ;;  %v1140_v62 = vrot.slane %v1072_v47, %v4129_v10 }
  0xbb   :  { %6704 = vst [vmem:[#allocation26_spill] sm:$0xff] %v4277_v52  ;;  %v1144_v63 = vrot.slane %v1080_v50, %v4129_v10  ;;  %v4288_v0 = vpop.trf.xlu0  ;;  %v1082_v1 = vcombine.high %v1072_v47, %v1072_v47  ;;  %v1008_v2 = vadd.f32 %v976_v43, %v764_v17  ;;  %v4292_v4 = vrot.slane %v4277_v52, %v4129_v10 }
  0xbc   :  { %6705 = vst [vmem:[#allocation27_spill] sm:$0xff] %v4288_v0  ;;  %v4295_v6 = vrot.slane %v1035_v25, %v4123_v7  ;;  %v1245_v3 = vadd.f32 %v1213_v57, %v1001_v21  ;;  %v1286_v9 = vrot.slane %v4288_v0, %v4123_v7  ;;  %v1246_v11 = vadd.f32 %v1214_v58, %v1002_v24 }
  0xbd   :  { %v1215_v13 = vmul.f32 %v1140_v62, %v4255_v14  ;;  %v1216_v16 = vmul.f32 %v1140_v62, %v4269_v38  ;;  %v1217_v18 = vmul.f32 %v1144_v63, %v4255_v14  ;;  %v1218_v17 = vmul.f32 %v1144_v63, %v4269_v38 }
  0xbe   :  { %6706 = vst [vmem:[#allocation28_spill] sm:$0xff] %v4295_v6  ;;  %v1148_v22 = vrot.slane %v1082_v1, %v4129_v10  ;;  %v1302_v27 = vrot.slane %v1286_v9, %v4123_v7  ;;  %v1294_v29 = vcombine.high %v1286_v9, %v1286_v9  ;;  %v977_v21 = vmul.f32 %v4292_v4, %v4218_v33 }
  0xbf   :  { %v1247_v28 = vadd.f32 %v1215_v13, %v1003_v34  ;;  %v4307_v30 = vpop.trf.xlu0  ;;  %v1248_v24 = vadd.f32 %v1216_v16, %v1004_v42  ;;  %v1249_v31 = vadd.f32 %v1217_v18, %v1005_v44  ;;  %v1250_v32 = vadd.f32 %v1218_v17, %v1006_v41 }
  0xc0   :  { %6707 = vst [vmem:[#allocation29_spill] sm:$0xff] %v4307_v30  ;;  %v1219_v35 = vmul.f32 %v1148_v22, %v4255_v14  ;;  %v1380_v45 = vrot.slane %v1302_v27, %v4129_v10  ;;  %v1316_v46 = vrot.slane %v1294_v29, %v4123_v7  ;;  %v1324_v47 = vcombine.high %v1302_v27, %v1302_v27 }
  0xc1   :  { %v1220_v50 = vmul.f32 %v1148_v22, %v4269_v38  ;;  %v1009_v34 = vadd.f32 %v977_v21, %v765_v40  ;;  %v4315_v25 = vrot.slane %v4295_v6, %v4123_v7  ;;  %v1279_v42 = vcombine.high %v4288_v0, %v4288_v0 }
  0xc2   :  { %v1251_v43 = vadd.f32 %v1219_v35, %v1007_v61  ;;  %v1457_v44 = vmul.f32 %v1380_v45, %v4288_v0  ;;  %v1458_v41 = vmul.f32 %v1380_v45, %v4307_v30  ;;  %v1384_v57 = vrot.slane %v1316_v46, %v4129_v10 }
  0xc3   :  { %6708 = vst [vmem:[#allocation30_spill] sm:$0xff] %v4315_v25  ;;  %v1388_v58 = vrot.slane %v1324_v47, %v4129_v10  ;;  %v4323_v62 = vpop.trf.xlu0  ;;  %v1326_v63 = vcombine.high %v1316_v46, %v1316_v46  ;;  %v1252_v61 = vadd.f32 %v1220_v50, %v1008_v2  ;;  %v4327_v40 = vrot.slane %v4315_v25, %v4129_v10 }
  0xc4   :  { %6709 = vst [vmem:[#allocation31_spill] sm:$0xff] %v4323_v62  ;;  %v4330_v1 = vrot.slane %v1279_v42, %v4123_v7  ;;  %v1489_v9 = vadd.f32 %v1457_v44, %v1245_v3  ;;  %v1530_v13 = vrot.slane %v4323_v62, %v4123_v7  ;;  %v1490_v16 = vadd.f32 %v1458_v41, %v1246_v11 }
  0xc5   :  { %v1459_v18 = vmul.f32 %v1384_v57, %v4288_v0  ;;  %v1460_v17 = vmul.f32 %v1384_v57, %v4307_v30  ;;  %v1461_v22 = vmul.f32 %v1388_v58, %v4288_v0  ;;  %v1462_v2 = vmul.f32 %v1388_v58, %v4307_v30 }
  0xc6   :  { %6710 = vst [vmem:[#allocation32_spill] sm:$0xff] %v4330_v1  ;;  %v1392_v27 = vrot.slane %v1326_v63, %v4129_v10  ;;  %v1546_v29 = vrot.slane %v1530_v13, %v4123_v7  ;;  %v1538_v35 = vcombine.high %v1530_v13, %v1530_v13  ;;  %v1221_v3 = vmul.f32 %v4327_v40, %v4255_v14 }
  0xc7   :  { %v1491_v21 = vadd.f32 %v1459_v18, %v1247_v28  ;;  %v4342_v45 = vpop.trf.xlu0  ;;  %v1492_v11 = vadd.f32 %v1460_v17, %v1248_v24  ;;  %v1493_v46 = vadd.f32 %v1461_v22, %v1249_v31  ;;  %v1494_v47 = vadd.f32 %v1462_v2, %v1250_v32 }
  0xc8   :  { %6711 = vst [vmem:[#allocation33_spill] sm:$0xff] %v4342_v45  ;;  %v1463_v50 = vmul.f32 %v1392_v27, %v4288_v0  ;;  %v1624_v42 = vrot.slane %v1546_v29, %v4129_v10  ;;  %v1560_v44 = vrot.slane %v1538_v35, %v4123_v7  ;;  %v1568_v41 = vcombine.high %v1546_v29, %v1546_v29 }
  0xc9   :  { %v1464_v57 = vmul.f32 %v1392_v27, %v4307_v30  ;;  %v1253_v28 = vadd.f32 %v1221_v3, %v1009_v34  ;;  %v4350_v63 = vrot.slane %v4330_v1, %v4123_v7  ;;  %v1523_v24 = vcombine.high %v4323_v62, %v4323_v62 }
  0xca   :  { %v1495_v58 = vadd.f32 %v1463_v50, %v1251_v43  ;;  %v1701_v31 = vmul.f32 %v1624_v42, %v4323_v62  ;;  %v1702_v32 = vmul.f32 %v1624_v42, %v4342_v45  ;;  %v1628_v13 = vrot.slane %v1560_v44, %v4129_v10 }
  0xcb   :  { %6712 = vst [vmem:[#allocation34_spill] sm:$0xff] %v4350_v63  ;;  %v1632_v18 = vrot.slane %v1568_v41, %v4129_v10  ;;  %v4358_v17 = vpop.trf.xlu0  ;;  %v1570_v22 = vcombine.high %v1560_v44, %v1560_v44  ;;  %v1496_v43 = vadd.f32 %v1464_v57, %v1252_v61  ;;  %v4362_v34 = vrot.slane %v4350_v63, %v4129_v10 }
  0xcc   :  { %6713 = vst [vmem:[#allocation35_spill] sm:$0xff] %v4358_v17  ;;  %v4365_v2 = vrot.slane %v1523_v24, %v4123_v7  ;;  %v1733_v27 = vadd.f32 %v1701_v31, %v1489_v9  ;;  %v1774_v29 = vrot.slane %v4358_v17, %v4123_v7  ;;  %v1734_v35 = vadd.f32 %v1702_v32, %v1490_v16 }
  0xcd   :  { %v1703_v3 = vmul.f32 %v1628_v13, %v4323_v62  ;;  %v1704_v50 = vmul.f32 %v1628_v13, %v4342_v45  ;;  %v1705_v42 = vmul.f32 %v1632_v18, %v4323_v62  ;;  %v1706_v61 = vmul.f32 %v1632_v18, %v4342_v45 }
  0xce   :  { %6714 = vst [vmem:[#allocation36_spill] sm:$0xff] %v4365_v2  ;;  %v1636_v44 = vrot.slane %v1570_v22, %v4129_v10  ;;  %v1790_v41 = vrot.slane %v1774_v29, %v4123_v7  ;;  %v1782_v24 = vcombine.high %v1774_v29, %v1774_v29  ;;  %v1465_v9 = vmul.f32 %v4362_v34, %v4288_v0 }
  0xcf   :  { %v1735_v57 = vadd.f32 %v1703_v3, %v1491_v21  ;;  %v4377_v31 = vpop.trf.xlu0  ;;  %v1736_v16 = vadd.f32 %v1704_v50, %v1492_v11  ;;  %v1737_v32 = vadd.f32 %v1705_v42, %v1493_v46  ;;  %v1738_v60 = vadd.f32 %v1706_v61, %v1494_v47 }
  0xd0   :  { %v1707_v13 = vmul.f32 %v1636_v44, %v4323_v62  ;;  %v1868_v59 = vrot.slane %v1790_v41, %v4129_v10  ;;  %v1804_v18 = vrot.slane %v1782_v24, %v4123_v7  ;;  %v1812_v26 = vcombine.high %v1790_v41, %v1790_v41 }
  0xd1   :  { %v1708_v22 = vmul.f32 %v1636_v44, %v4342_v45  ;;  %v1497_v21 = vadd.f32 %v1465_v9, %v1253_v28  ;;  %v4385_v29 = vrot.slane %v4365_v2, %v4123_v7  ;;  %v1767_v11 = vcombine.high %v4358_v17, %v4358_v17 }
  0xd2   :  { %v1739_v15 = vadd.f32 %v1707_v13, %v1495_v58  ;;  %v1945_v46 = vmul.f32 %v1868_v59, %v4358_v17  ;;  %v1946_v47 = vmul.f32 %v1868_v59, %v4377_v31  ;;  %v1872_v3 = vrot.slane %v1804_v18, %v4129_v10 }
  0xd3   :  { %6715 = vst [vmem:[#allocation37_spill] sm:$0xff] %v4385_v29  ;;  %v1876_v50 = vrot.slane %v1812_v26, %v4129_v10  ;;  %v4393_v42 = vpop.trf.xlu0  ;;  %v1814_v61 = vcombine.high %v1804_v18, %v1804_v18  ;;  %v1740_v58 = vadd.f32 %v1708_v22, %v1496_v43  ;;  %v4397_v28 = vrot.slane %v4385_v29, %v4129_v10 }
  0xd4   :  { %6716 = vst [vmem:[#allocation38_spill] sm:$0xff] %v4393_v42  ;;  %v4400_v44 = vrot.slane %v1767_v11, %v4123_v7  ;;  %v1977_v41 = vadd.f32 %v1945_v46, %v1733_v27  ;;  %v2018_v24 = vrot.slane %v4393_v42, %v4123_v7  ;;  %v1978_v59 = vadd.f32 %v1946_v47, %v1734_v35 }
  0xd5   :  { %v1947_v9 = vmul.f32 %v1872_v3, %v4358_v17  ;;  %v1948_v26 = vmul.f32 %v1872_v3, %v4377_v31  ;;  %v1949_v13 = vmul.f32 %v1876_v50, %v4358_v17  ;;  %v1950_v43 = vmul.f32 %v1876_v50, %v4377_v31 }
  0xd6   :  { %6717 = vst [vmem:[#allocation39_spill] sm:$0xff] %v4400_v44  ;;  %v1880_v18 = vrot.slane %v1814_v61, %v4129_v10  ;;  %v2034_v22 = vrot.slane %v2018_v24, %v4123_v7  ;;  %v2026_v11 = vcombine.high %v2018_v24, %v2018_v24  ;;  %v1709_v27 = vmul.f32 %v4397_v28, %v4323_v62 }
  0xd7   :  { %v1979_v29 = vadd.f32 %v1947_v9, %v1735_v57  ;;  %v4412_v46 = vpop.trf.xlu0  ;;  %v1980_v35 = vadd.f32 %v1948_v26, %v1736_v16  ;;  %v1981_v47 = vadd.f32 %v1949_v13, %v1737_v32  ;;  %v1982_v8 = vadd.f32 %v1950_v43, %v1738_v60 }
  0xd8   :  { %6718 = vst [vmem:[#allocation40_spill] sm:$0xff] %v4412_v46  ;;  %v1951_v3 = vmul.f32 %v1880_v18, %v4358_v17  ;;  %v2112_v63 = vrot.slane %v2034_v22, %v4129_v10  ;;  %v2048_v50 = vrot.slane %v2026_v11, %v4123_v7  ;;  %v2056_v25 = vcombine.high %v2034_v22, %v2034_v22 }
  0xd9   :  { %v1952_v61 = vmul.f32 %v1880_v18, %v4377_v31  ;;  %v1741_v57 = vadd.f32 %v1709_v27, %v1497_v21  ;;  %v4420_v24 = vrot.slane %v4400_v44, %v4123_v7  ;;  %v2011_v16 = vcombine.high %v4393_v42, %v4393_v42 }
  0xda   :  { %v1983_v52 = vadd.f32 %v1951_v3, %v1739_v15  ;;  %v2189_v60 = vmul.f32 %v2112_v63, %v4393_v42  ;;  %v2190_v32 = vmul.f32 %v2112_v63, %v4412_v46  ;;  %v2116_v9 = vrot.slane %v2048_v50, %v4129_v10 }
  0xdb   :  { %6719 = vst [vmem:[#allocation41_spill] sm:$0xff] %v4420_v24  ;;  %v2120_v26 = vrot.slane %v2056_v25, %v4129_v10  ;;  %v4428_v13 = vpop.trf.xlu0  ;;  %v2058_v43 = vcombine.high %v2048_v50, %v2048_v50  ;;  %v1984_v15 = vadd.f32 %v1952_v61, %v1740_v58  ;;  %v4432_v21 = vrot.slane %v4420_v24, %v4129_v10 }
  0xdc   :  { %6720 = vst [vmem:[#allocation42_spill] sm:$0xff] %v4428_v13  ;;  %v4435_v18 = vrot.slane %v2011_v16, %v4123_v7  ;;  %v2221_v22 = vadd.f32 %v2189_v60, %v1977_v41  ;;  %v2262_v11 = vrot.slane %v4428_v13, %v4123_v7  ;;  %v2222_v63 = vadd.f32 %v2190_v32, %v1978_v59 }
  0xdd   :  { %v2191_v27 = vmul.f32 %v2116_v9, %v4393_v42  ;;  %v2192_v25 = vmul.f32 %v2116_v9, %v4412_v46  ;;  %v2193_v3 = vmul.f32 %v2120_v26, %v4393_v42  ;;  %v2194_v58 = vmul.f32 %v2120_v26, %v4412_v46 }
  0xde   :  { %6721 = vst [vmem:[#allocation43_spill] sm:$0xff] %v4435_v18  ;;  %v2124_v50 = vrot.slane %v2058_v43, %v4129_v10  ;;  %v2278_v61 = vrot.slane %v2262_v11, %v4123_v7  ;;  %v2270_v16 = vcombine.high %v2262_v11, %v2262_v11  ;;  %v1953_v41 = vmul.f32 %v4432_v21, %v4358_v17 }
  0xdf   :  { %v2223_v24 = vadd.f32 %v2191_v27, %v1979_v29  ;;  %v4447_v60 = vpop.trf.xlu0  ;;  %v2224_v59 = vadd.f32 %v2192_v25, %v1980_v35  ;;  %v2225_v32 = vadd.f32 %v2193_v3, %v1981_v47  ;;  %v2226_v53 = vadd.f32 %v2194_v58, %v1982_v8 }
  0xe0   :  { %6722 = vst [vmem:[#allocation44_spill] sm:$0xff] %v4447_v60  ;;  %v2195_v9 = vmul.f32 %v2124_v50, %v4393_v42  ;;  %v2356_v48 = vrot.slane %v2278_v61, %v4129_v10  ;;  %v2292_v26 = vrot.slane %v2270_v16, %v4123_v7  ;;  %v2300_v19 = vcombine.high %v2278_v61, %v2278_v61 }
  0xe1   :  { %v2196_v43 = vmul.f32 %v2124_v50, %v4412_v46  ;;  %v1985_v29 = vadd.f32 %v1953_v41, %v1741_v57  ;;  %v4455_v11 = vrot.slane %v4435_v18, %v4123_v7  ;;  %v2255_v35 = vcombine.high %v4428_v13, %v4428_v13 }
  0xe2   :  { %v2227_v51 = vadd.f32 %v2195_v9, %v1983_v52  ;;  %v2433_v8 = vmul.f32 %v2356_v48, %v4428_v13  ;;  %v2434_v47 = vmul.f32 %v2356_v48, %v4447_v60  ;;  %v2360_v27 = vrot.slane %v2292_v26, %v4129_v10 }
  0xe3   :  { %6723 = vst [vmem:[#allocation45_spill] sm:$0xff] %v4455_v11  ;;  %v2364_v25 = vrot.slane %v2300_v19, %v4129_v10  ;;  %v4463_v3 = vpop.trf.xlu0  ;;  %v2302_v58 = vcombine.high %v2292_v26, %v2292_v26  ;;  %v2228_v52 = vadd.f32 %v2196_v43, %v1984_v15  ;;  %v4467_v57 = vrot.slane %v4455_v11, %v4129_v10 }
  0xe4   :  { %6724 = vst [vmem:[#allocation46_spill] sm:$0xff] %v4463_v3  ;;  %v4470_v50 = vrot.slane %v2255_v35, %v4123_v7  ;;  %v2465_v61 = vadd.f32 %v2433_v8, %v2221_v22  ;;  %v2506_v16 = vrot.slane %v4463_v3, %v4123_v7  ;;  %v2466_v48 = vadd.f32 %v2434_v47, %v2222_v63 }
  0xe5   :  { %v2435_v41 = vmul.f32 %v2360_v27, %v4428_v13  ;;  %v2436_v19 = vmul.f32 %v2360_v27, %v4447_v60  ;;  %v2437_v9 = vmul.f32 %v2364_v25, %v4428_v13  ;;  %v2438_v15 = vmul.f32 %v2364_v25, %v4447_v60 }
  0xe6   :  { %6725 = vst [vmem:[#allocation47_spill] sm:$0xff] %v4470_v50  ;;  %v2368_v26 = vrot.slane %v2302_v58, %v4129_v10  ;;  %v2522_v43 = vrot.slane %v2506_v16, %v4123_v7  ;;  %v2514_v35 = vcombine.high %v2506_v16, %v2506_v16  ;;  %v2197_v22 = vmul.f32 %v4467_v57, %v4393_v42 }
  0xe7   :  { %v2467_v11 = vadd.f32 %v2435_v41, %v2223_v24  ;;  %v4482_v8 = vpop.trf.xlu0  ;;  %v2468_v63 = vadd.f32 %v2436_v19, %v2224_v59  ;;  %v2469_v47 = vadd.f32 %v2437_v9, %v2225_v32  ;;  %v2470_v12 = vadd.f32 %v2438_v15, %v2226_v53 }
  0xe8   :  { %v2439_v27 = vmul.f32 %v2368_v26, %v4428_v13  ;;  %v2600_v39 = vrot.slane %v2522_v43, %v4129_v10  ;;  %v2536_v25 = vrot.slane %v2514_v35, %v4123_v7  ;;  %v2544_v17 = vcombine.high %v2522_v43, %v2522_v43 }
  0xe9   :  { %v2440_v58 = vmul.f32 %v2368_v26, %v4447_v60  ;;  %v2229_v24 = vadd.f32 %v2197_v22, %v1985_v29  ;;  %v4490_v16 = vrot.slane %v4470_v50, %v4123_v7  ;;  %v2499_v59 = vcombine.high %v4463_v3, %v4463_v3 }
  0xea   :  { %v2471_v62 = vadd.f32 %v2439_v27, %v2227_v51  ;;  %v2677_v53 = vmul.f32 %v2600_v39, %v4463_v3  ;;  %v2678_v32 = vmul.f32 %v2600_v39, %v4482_v8  ;;  %v2604_v41 = vrot.slane %v2536_v25, %v4129_v10 }
  0xeb   :  { %6726 = vst [vmem:[#allocation48_spill] sm:$0xff] %v4490_v16  ;;  %v2608_v19 = vrot.slane %v2544_v17, %v4129_v10  ;;  %v4498_v9 = vpop.trf.xlu0  ;;  %v2546_v15 = vcombine.high %v2536_v25, %v2536_v25  ;;  %v2472_v51 = vadd.f32 %v2440_v58, %v2228_v52  ;;  %v4502_v29 = vrot.slane %v4490_v16, %v4129_v10 }
  0xec   :  { %6727 = vst [vmem:[#allocation49_spill] sm:$0xff] %v4498_v9  ;;  %v4505_v26 = vrot.slane %v2499_v59, %v4123_v7  ;;  %v2709_v43 = vadd.f32 %v2677_v53, %v2465_v61  ;;  %v2750_v35 = vrot.slane %v4498_v9, %v4123_v7  ;;  %v2710_v39 = vadd.f32 %v2678_v32, %v2466_v48 }
  0xed   :  { %v2679_v22 = vmul.f32 %v2604_v41, %v4463_v3  ;;  %v2680_v17 = vmul.f32 %v2604_v41, %v4482_v8  ;;  %v2681_v27 = vmul.f32 %v2608_v19, %v4463_v3  ;;  %v2682_v52 = vmul.f32 %v2608_v19, %v4482_v8 }
  0xee   :  { %6728 = vst [vmem:[#allocation50_spill] sm:$0xff] %v4505_v26  ;;  %v2612_v25 = vrot.slane %v2546_v15, %v4129_v10  ;;  %v2766_v58 = vrot.slane %v2750_v35, %v4123_v7  ;;  %v2758_v59 = vcombine.high %v2750_v35, %v2750_v35  ;;  %v2441_v61 = vmul.f32 %v4502_v29, %v4428_v13 }
  0xef   :  { %v2711_v16 = vadd.f32 %v2679_v22, %v2467_v11  ;;  %v4517_v53 = vpop.trf.xlu0  ;;  %v2712_v48 = vadd.f32 %v2680_v17, %v2468_v63  ;;  %v2713_v32 = vadd.f32 %v2681_v27, %v2469_v47  ;;  %v2714_v42 = vadd.f32 %v2682_v52, %v2470_v12 }
  0xf0   :  { %v2683_v41 = vmul.f32 %v2612_v25, %v4463_v3  ;;  %v2844_v50 = vrot.slane %v2766_v58, %v4129_v10  ;;  %v2780_v19 = vrot.slane %v2758_v59, %v4123_v7  ;;  %v2788_v0 = vcombine.high %v2766_v58, %v2766_v58 }
  0xf1   :  { %v2684_v15 = vmul.f32 %v2612_v25, %v4482_v8  ;;  %v2473_v11 = vadd.f32 %v2441_v61, %v2229_v24  ;;  %v4525_v35 = vrot.slane %v4505_v26, %v4123_v7  ;;  %v2743_v63 = vcombine.high %v4498_v9, %v4498_v9 }
  0xf2   :  { %v2715_v14 = vadd.f32 %v2683_v41, %v2471_v62  ;;  %v2921_v12 = vmul.f32 %v2844_v50, %v4498_v9  ;;  %v2922_v47 = vmul.f32 %v2844_v50, %v4517_v53  ;;  %v2848_v22 = vrot.slane %v2780_v19, %v4129_v10 }
  0xf3   :  { %6729 = vst [vmem:[#allocation51_spill] sm:$0xff] %v4525_v35  ;;  %v2852_v17 = vrot.slane %v2788_v0, %v4129_v10  ;;  %v4533_v27 = vpop.trf.xlu0  ;;  %v2790_v52 = vcombine.high %v2780_v19, %v2780_v19  ;;  %v2716_v62 = vadd.f32 %v2684_v15, %v2472_v51  ;;  %v4537_v24 = vrot.slane %v4525_v35, %v4129_v10 }
  0xf4   :  { %6730 = vst [vmem:[#allocation52_spill] sm:$0xff] %v4533_v27  ;;  %v4540_v25 = vrot.slane %v2743_v63, %v4123_v7  ;;  %v2953_v58 = vadd.f32 %v2921_v12, %v2709_v43  ;;  %v2994_v59 = vrot.slane %v4533_v27, %v4123_v7  ;;  %v2954_v50 = vadd.f32 %v2922_v47, %v2710_v39 }
  0xf5   :  { %v2923_v61 = vmul.f32 %v2848_v22, %v4498_v9  ;;  %v2924_v0 = vmul.f32 %v2848_v22, %v4517_v53  ;;  %v2925_v41 = vmul.f32 %v2852_v17, %v4498_v9  ;;  %v2926_v51 = vmul.f32 %v2852_v17, %v4517_v53 }
  0xf6   :  { %6731 = vst [vmem:[#allocation53_spill] sm:$0xff] %v4540_v25  ;;  %v2856_v19 = vrot.slane %v2790_v52, %v4129_v10  ;;  %v3010_v15 = vrot.slane %v2994_v59, %v4123_v7  ;;  %v3002_v63 = vcombine.high %v2994_v59, %v2994_v59  ;;  %v2685_v43 = vmul.f32 %v4537_v24, %v4463_v3 }
  0xf7   :  { %v2955_v35 = vadd.f32 %v2923_v61, %v2711_v16  ;;  %v4552_v12 = vpop.trf.xlu0  ;;  %v2956_v39 = vadd.f32 %v2924_v0, %v2712_v48  ;;  %v2957_v47 = vadd.f32 %v2925_v41, %v2713_v32  ;;  %v2958_v13 = vadd.f32 %v2926_v51, %v2714_v42 }
  0xf8   :  { %v2927_v22 = vmul.f32 %v2856_v19, %v4498_v9  ;;  %v3088_v26 = vrot.slane %v3010_v15, %v4129_v10  ;;  %v3024_v17 = vrot.slane %v3002_v63, %v4123_v7  ;;  %v3032_v33 = vcombine.high %v3010_v15, %v3010_v15 }
  0xf9   :  { %v2928_v52 = vmul.f32 %v2856_v19, %v4517_v53  ;;  %v2717_v16 = vadd.f32 %v2685_v43, %v2473_v11  ;;  %v4560_v59 = vrot.slane %v4540_v25, %v4123_v7  ;;  %v2987_v48 = vcombine.high %v4533_v27, %v4533_v27 }
  0xfa   :  { %v2959_v56 = vadd.f32 %v2927_v22, %v2715_v14  ;;  %v3165_v42 = vmul.f32 %v3088_v26, %v4533_v27  ;;  %v3166_v32 = vmul.f32 %v3088_v26, %v4552_v12  ;;  %v3092_v61 = vrot.slane %v3024_v17, %v4129_v10 }
  0xfb   :  { %6732 = vst [vmem:[#allocation54_spill] sm:$0xff] %v4560_v59  ;;  %v3096_v0 = vrot.slane %v3032_v33, %v4129_v10  ;;  %v4568_v41 = vpop.trf.xlu0  ;;  %v3034_v51 = vcombine.high %v3024_v17, %v3024_v17  ;;  %v2960_v14 = vadd.f32 %v2928_v52, %v2716_v62  ;;  %v4572_v11 = vrot.slane %v4560_v59, %v4129_v10 }
  0xfc   :  { %6733 = vst [vmem:[#allocation55_spill] sm:$0xff] %v4568_v41  ;;  %v4575_v19 = vrot.slane %v2987_v48, %v4123_v7  ;;  %v3197_v15 = vadd.f32 %v3165_v42, %v2953_v58  ;;  %v3238_v63 = vrot.slane %v4568_v41, %v4123_v7  ;;  %v3198_v26 = vadd.f32 %v3166_v32, %v2954_v50 }
  0xfd   :  { %v3167_v43 = vmul.f32 %v3092_v61, %v4533_v27  ;;  %v3168_v33 = vmul.f32 %v3092_v61, %v4552_v12  ;;  %v3169_v22 = vmul.f32 %v3096_v0, %v4533_v27  ;;  %v3170_v62 = vmul.f32 %v3096_v0, %v4552_v12 }
  0xfe   :  { %6734 = vst [vmem:[#allocation56_spill] sm:$0xff] %v4575_v19  ;;  %v3100_v17 = vrot.slane %v3034_v51, %v4129_v10  ;;  %v3254_v52 = vrot.slane %v3238_v63, %v4123_v7  ;;  %v3246_v48 = vcombine.high %v3238_v63, %v3238_v63  ;;  %v2929_v58 = vmul.f32 %v4572_v11, %v4498_v9 }
  0xff   :  { %v3199_v59 = vadd.f32 %v3167_v43, %v2955_v35  ;;  %v4587_v42 = vpop.trf.xlu0  ;;  %v3200_v50 = vadd.f32 %v3168_v33, %v2956_v39  ;;  %v3201_v32 = vadd.f32 %v3169_v22, %v2957_v47  ;;  %v3202_v3 = vadd.f32 %v3170_v62, %v2958_v13 }
 0x100   :  { %v3171_v61 = vmul.f32 %v3100_v17, %v4533_v27  ;;  %v3332_v25 = vrot.slane %v3254_v52, %v4129_v10  ;;  %v3268_v0 = vrot.slane %v3246_v48, %v4123_v7  ;;  %v3276_v18 = vcombine.high %v3254_v52, %v3254_v52 }
 0x101   :  { %v3172_v51 = vmul.f32 %v3100_v17, %v4552_v12  ;;  %v2961_v35 = vadd.f32 %v2929_v58, %v2717_v16  ;;  %v4595_v63 = vrot.slane %v4575_v19, %v4123_v7  ;;  %v3231_v39 = vcombine.high %v4568_v41, %v4568_v41 }
 0x102   :  { %v3203_v44 = vadd.f32 %v3171_v61, %v2959_v56  ;;  %v3409_v13 = vmul.f32 %v3332_v25, %v4568_v41  ;;  %v3410_v47 = vmul.f32 %v3332_v25, %v4587_v42  ;;  %v3336_v43 = vrot.slane %v3268_v0, %v4129_v10 }
 0x103   :  { %6735 = vst [vmem:[#allocation57_spill] sm:$0xff] %v4595_v63  ;;  %v3340_v33 = vrot.slane %v3276_v18, %v4129_v10  ;;  %v4603_v22 = vpop.trf.xlu0  ;;  %v3278_v62 = vcombine.high %v3268_v0, %v3268_v0  ;;  %v3204_v56 = vadd.f32 %v3172_v51, %v2960_v14  ;;  %v4607_v16 = vrot.slane %v4595_v63, %v4129_v10 }
 0x104   :  { %6736 = vst [vmem:[#allocation58_spill] sm:$0xff] %v4603_v22  ;;  %v4610_v17 = vrot.slane %v3231_v39, %v4123_v7  ;;  %v3441_v52 = vadd.f32 %v3409_v13, %v3197_v15  ;;  %v3482_v48 = vrot.slane %v4603_v22, %v4123_v7  ;;  %v3442_v25 = vadd.f32 %v3410_v47, %v3198_v26 }
 0x105   :  { %v3411_v58 = vmul.f32 %v3336_v43, %v4568_v41  ;;  %v3412_v18 = vmul.f32 %v3336_v43, %v4587_v42  ;;  %v3413_v61 = vmul.f32 %v3340_v33, %v4568_v41  ;;  %v3414_v14 = vmul.f32 %v3340_v33, %v4587_v42 }
 0x106   :  { %6737 = vst [vmem:[#allocation59_spill] sm:$0xff] %v4610_v17  ;;  %v3344_v0 = vrot.slane %v3278_v62, %v4129_v10  ;;  %v3498_v51 = vrot.slane %v3482_v48, %v4123_v7  ;;  %v3490_v39 = vcombine.high %v3482_v48, %v3482_v48  ;;  %v3173_v15 = vmul.f32 %v4607_v16, %v4533_v27 }
 0x107   :  { %v3443_v63 = vadd.f32 %v3411_v58, %v3199_v59  ;;  %v4622_v13 = vpop.trf.xlu0  ;;  %v3444_v26 = vadd.f32 %v3412_v18, %v3200_v50  ;;  %v3445_v47 = vadd.f32 %v3413_v61, %v3201_v32  ;;  %v3446_v9 = vadd.f32 %v3414_v14, %v3202_v3 }
 0x108   :  { %v3415_v43 = vmul.f32 %v3344_v0, %v4568_v41  ;;  %v3576_v19 = vrot.slane %v3498_v51, %v4129_v10  ;;  %v3512_v33 = vrot.slane %v3490_v39, %v4123_v7  ;;  %v3520_v49 = vcombine.high %v3498_v51, %v3498_v51 }
 0x109   :  { %v3416_v62 = vmul.f32 %v3344_v0, %v4587_v42  ;;  %v3205_v59 = vadd.f32 %v3173_v15, %v2961_v35  ;;  %v4630_v48 = vrot.slane %v4610_v17, %v4123_v7  ;;  %v3475_v50 = vcombine.high %v4603_v22, %v4603_v22 }
 0x10a   :  { %v3447_v2 = vadd.f32 %v3415_v43, %v3203_v44  ;;  %v3653_v3 = vmul.f32 %v3576_v19, %v4603_v22  ;;  %v3654_v32 = vmul.f32 %v3576_v19, %v4622_v13  ;;  %v3580_v58 = vrot.slane %v3512_v33, %v4129_v10 }
 0x10b   :  { %6738 = vst [vmem:[#allocation60_spill] sm:$0xff] %v4630_v48  ;;  %v3584_v18 = vrot.slane %v3520_v49, %v4129_v10  ;;  %v4638_v61 = vpop.trf.xlu0  ;;  %v3522_v14 = vcombine.high %v3512_v33, %v3512_v33  ;;  %v3448_v44 = vadd.f32 %v3416_v62, %v3204_v56  ;;  %v4642_v35 = vrot.slane %v4630_v48, %v4129_v10 }
 0x10c   :  { %6739 = vst [vmem:[#allocation61_spill] sm:$0xff] %v4638_v61  ;;  %v4645_v0 = vrot.slane %v3475_v50, %v4123_v7  ;;  %v3685_v51 = vadd.f32 %v3653_v3, %v3441_v52  ;;  %v3726_v39 = vrot.slane %v4638_v61, %v4123_v7  ;;  %v3686_v19 = vadd.f32 %v3654_v32, %v3442_v25 }
 0x10d   :  { %v3655_v15 = vmul.f32 %v3580_v58, %v4603_v22  ;;  %v3656_v49 = vmul.f32 %v3580_v58, %v4622_v13  ;;  %v3657_v43 = vmul.f32 %v3584_v18, %v4603_v22  ;;  %v3658_v56 = vmul.f32 %v3584_v18, %v4622_v13 }
 0x10e   :  { %v3588_v33 = vrot.slane %v3522_v14, %v4129_v10  ;;  %v3742_v62 = vrot.slane %v3726_v39, %v4123_v7  ;;  %v3734_v50 = vcombine.high %v3726_v39, %v3726_v39  ;;  %v3417_v52 = vmul.f32 %v4642_v35, %v4568_v41 }
 0x10f   :  { %v3687_v48 = vadd.f32 %v3655_v15, %v3443_v63  ;;  %v3688_v3 = vadd.f32 %v3656_v49, %v3444_v26  ;;  %v3689_v27 = vadd.f32 %v3657_v43, %v3445_v47  ;;  %v3690_v25 = vadd.f32 %v3658_v56, %v3446_v9  ;;  %v4661_v14 = vpop.trf.xlu0 }
 0x110   :  { %v3659_v32 = vmul.f32 %v3588_v33, %v4603_v22  ;;  %v3820_v58 = vrot.slane %v3742_v62, %v4129_v10  ;;  %v3756_v17 = vrot.slane %v3734_v50, %v4123_v7  ;;  %v3764_v1 = vcombine.high %v3742_v62, %v3742_v62  ;;  %6740 = vst [vmem:[#allocation62_spill] sm:$0xff] %v4661_v14 }
 0x111   :  { %v3660_v18 = vmul.f32 %v3588_v33, %v4622_v13  ;;  %v3449_v63 = vadd.f32 %v3417_v52, %v3205_v59  ;;  %v4665_v39 = vrot.slane %v4645_v0, %v4123_v7  ;;  %v3719_v9 = vcombine.high %v4638_v61, %v4638_v61 }
 0x112   :  { %v3691_v6 = vadd.f32 %v3659_v32, %v3447_v2  ;;  %v3897_v26 = vmul.f32 %v3820_v58, %v4638_v61  ;;  %v3898_v47 = vmul.f32 %v3820_v58, %v4661_v14  ;;  %v3824_v15 = vrot.slane %v3756_v17, %v4129_v10 }
 0x113   :  { %6741 = vst [vmem:[#allocation63_spill] sm:$0xff] %v4665_v39  ;;  %v3828_v49 = vrot.slane %v3764_v1, %v4129_v10  ;;  %v3766_v43 = vcombine.high %v3756_v17, %v3756_v17  ;;  %v3692_v56 = vadd.f32 %v3660_v18, %v3448_v44  ;;  %v3592_v2 = vrot.slane %v4665_v39, %v4129_v10 }
 0x114   :  { %v4676_v59 = vrot.slane %v3719_v9, %v4123_v7  ;;  %v3929_v33 = vadd.f32 %v3897_v26, %v3685_v51  ;;  %v3930_v62 = vadd.f32 %v3898_v47, %v3686_v19  ;;  %v3899_v50 = vmul.f32 %v3824_v15, %v4638_v61 }
 0x115   :  { %v3900_v52 = vmul.f32 %v3824_v15, %v4661_v14  ;;  %v3901_v32 = vmul.f32 %v3828_v49, %v4638_v61  ;;  %v3902_v58 = vmul.f32 %v3828_v49, %v4661_v14  ;;  %v3832_v1 = vrot.slane %v3766_v43, %v4129_v10 }
 0x116   :  { %v3661_v17 = vmul.f32 %v3592_v2, %v4603_v22  ;;  %3961 = vxpose.xlu1.b32.start [1/16] (narrow) %v3929_v33, 8  ;;  %v3931_v44 = vadd.f32 %v3899_v50, %v3687_v48  ;;  %v4686_v9 = vrot.slane %v4676_v59, %v4123_v7  ;;  %v766_v51 = vadd.f32 %v4282_v55, %v4223_v37 }
 0x117   :  { %v3932_v18 = vadd.f32 %v3900_v52, %v3688_v3  ;;  %v4690_v19 = vadd.f32 %v3901_v32, %v3689_v27  ;;  %v4692_v26 = vadd.f32 %v3902_v58, %v3690_v25  ;;  %v3903_v47 = vmul.f32 %v3832_v1, %v4638_v61  ;;  %v6743_v32 = vld [vmem:[#allocation28_spill] sm:$0xff] }
 0x118   :  { %6742 = vst [vmem:[#allocation64_spill] sm:$0xff] %v4686_v9  ;;  %v3904_v15 = vmul.f32 %v3832_v1, %v4661_v14  ;;  %v3693_v49 = vadd.f32 %v3661_v17, %v3449_v63  ;;  %v3836_v48 = vrot.slane %v4686_v9, %v4129_v10  ;;  %v978_v3 = vmul.f32 %v4292_v4, %v4237_v54  ;;  %v6744_v58 = vld [vmem:[#allocation32_spill] sm:$0xff] }
 0x119   :  { %v1222_v43 = vmul.f32 %v4327_v40, %v4269_v38  ;;  %v4702_v33 = vadd.f32 %v3903_v47, %v3691_v6  ;;  %v1466_v55 = vmul.f32 %v4362_v34, %v4307_v30  ;;  %v1710_v27 = vmul.f32 %v4397_v28, %v4342_v45  ;;  %v6745_v1 = vld [vmem:[#allocation36_spill] sm:$0xff] }
 0x11a   :  { %v4704_v37 = vadd.f32 %v3904_v15, %v3692_v56  ;;  %3962 = vxpose.xlu1.b32.cont [2/16] (narrow) %v3930_v62, 8  ;;  %v3905_v25 = vmul.f32 %v3836_v48, %v4638_v61  ;;  %v1010_v63 = vadd.f32 %v978_v3, %v766_v51  ;;  %v1954_v4 = vmul.f32 %v4432_v21, %v4377_v31  ;;  %v6746_v51 = vld [vmem:[#allocation16_spill] sm:$0xff] }
 0x11b   :  { %v2198_v40 = vmul.f32 %v4467_v57, %v4412_v46  ;;  %v2442_v6 = vmul.f32 %v4502_v29, %v4447_v60  ;;  %v2686_v56 = vmul.f32 %v4537_v24, %v4482_v8  ;;  %v2930_v34 = vmul.f32 %v4572_v11, %v4517_v53 }
 0x11c   :  { %v4723_v28 = vmul.f32 %v4607_v16, %v4552_v12  ;;  %v4725_v62 = vadd.f32 %v3905_v25, %v3693_v49  ;;  %v1254_v50 = vadd.f32 %v1222_v43, %v1010_v63  ;;  %v4729_v21 = vmul.f32 %v4642_v35, %v4587_v42 }
 0x11d   :  { %v4732_v57 = vmul.f32 %v3592_v2, %v4622_v13  ;;  %v4735_v29 = vmul.f32 %v3836_v48, %v4661_v14  ;;  %v491_v24 = vmul.f32 %v4249_v5, %v4144_v23  ;;  %v563_v11 = vcombine.high %v4221_v36, %v4221_v36 }
 0x11e   :  { %v807_v16 = vcombine.high %v4259_v20, %v4259_v20  ;;  %3963 = vxpose.xlu1.b32.cont [3/16] (narrow) %v3931_v44, 8  ;;  %v1498_v52 = vadd.f32 %v1466_v55, %v1254_v50  ;;  %v1051_v35 = vcombine.high %v6743_v32, %v6743_v32  ;;  %v1295_v2 = vcombine.high %v6744_v58, %v6744_v58  ;;  %v6749_v20 = vld [vmem:[#allocation39_spill] sm:$0xff]  ;;  %v6755_v32 = vld [vmem:[#allocation18_spill] sm:$0xff]  ;;  %v6756_v58 = vld [vmem:[#allocation21_spill] sm:$0xff] }
 0x11f   :  { %v1539_v17 = vcombine.high %v6745_v1, %v6745_v1  ;;  %v523_v47 = vadd.f32 %v491_v24, %v6746_v51  ;;  %v4751_v15 = vrot.slane %v563_v11, %v4123_v7  ;;  %v1783_v44 = vcombine.high %v6749_v20, %v6749_v20  ;;  %v6754_v50 = vld [vmem:[#allocation43_spill] sm:$0xff] }
 0x120   :  { %v4754_v36 = vrot.slane %v807_v16, %v4123_v7  ;;  %v1742_v49 = vadd.f32 %v1710_v27, %v1498_v52  ;;  %v4759_v48 = vrot.slane %v1051_v35, %v4123_v7  ;;  %v4762_v3 = vrot.slane %v1295_v2, %v4123_v7  ;;  %v6759_v20 = vld [vmem:[#allocation27_spill] sm:$0xff] }
 0x121   :  { %6747 = vst [vmem:[#allocation28_spill] sm:$0xff] %v4751_v15  ;;  %v4765_v43 = vrot.slane %v1539_v17, %v4123_v7  ;;  %v668_v55 = vrot.slane %v4751_v15, %v4129_v10  ;;  %v4772_v63 = vrot.slane %v1783_v44, %v4123_v7  ;;  %v2027_v27 = vcombine.high %v6754_v50, %v6754_v50  ;;  %v6762_v15 = vld [vmem:[#allocation47_spill] sm:$0xff] }
 0x122   :  { %6748 = vst [vmem:[#allocation32_spill] sm:$0xff] %v4754_v36  ;;  %6750 = vst [vmem:[#allocation36_spill] sm:$0xff] %v4759_v48  ;;  %v912_v25 = vrot.slane %v4754_v36, %v4129_v10  ;;  %3964 = vxpose.xlu1.b32.cont [4/16] (narrow) %v3932_v18, 8  ;;  %v1986_v24 = vadd.f32 %v1954_v4, %v1742_v49  ;;  %v1156_v11 = vrot.slane %v4759_v48, %v4129_v10  ;;  %v6758_v4 = vld [vmem:[#allocation24_spill] sm:$0xff]  ;;  %v6760_v49 = vld [vmem:[#allocation31_spill] sm:$0xff] }
 0x123   :  { %6751 = vst [vmem:[#allocation16_spill] sm:$0xff] %v4762_v3  ;;  %6752 = vst [vmem:[#allocation39_spill] sm:$0xff] %v4765_v43  ;;  %v1400_v16 = vrot.slane %v4762_v3, %v4129_v10  ;;  %v1644_v52 = vrot.slane %v4765_v43, %v4129_v10  ;;  %v735_v35 = vmul.f32 %v668_v55, %v6755_v32  ;;  %v6761_v48 = vld [vmem:[#allocation35_spill] sm:$0xff] }
 0x124   :  { %6753 = vst [vmem:[#allocation65_spill] sm:$0xff] %v4772_v63  ;;  %v979_v2 = vmul.f32 %v912_v25, %v6756_v58  ;;  %v1888_v1 = vrot.slane %v4772_v63, %v4129_v10  ;;  %v4787_v17 = vrot.slane %v2027_v27, %v4123_v7  ;;  %v2230_v18 = vadd.f32 %v2198_v40, %v1986_v24  ;;  %v6763_v63 = vld [vmem:[#allocation50_spill] sm:$0xff]  ;;  %v6764_v24 = vld [vmem:[#allocation53_spill] sm:$0xff] }
 0x125   :  { %v1223_v51 = vmul.f32 %v1156_v11, %v6758_v4  ;;  %v1467_v44 = vmul.f32 %v1400_v16, %v6759_v20  ;;  %v1711_v50 = vmul.f32 %v1644_v52, %v6760_v49  ;;  %v767_v3 = vadd.f32 %v735_v35, %v523_v47  ;;  %v6765_v20 = vld [vmem:[#allocation56_spill] sm:$0xff]  ;;  %v6768_v4 = vld [vmem:[#allocation59_spill] sm:$0xff] }
 0x126   :  { %6757 = vst [vmem:[#allocation43_spill] sm:$0xff] %v4787_v17  ;;  %v1955_v43 = vmul.f32 %v1888_v1, %v6761_v48  ;;  %v2132_v36 = vrot.slane %v4787_v17, %v4129_v10  ;;  %v2271_v9 = vcombine.high %v6762_v15, %v6762_v15  ;;  %3965 = vxpose.xlu1.b32.cont [5/16] (narrow) %v4690_v19, 8  ;;  %v6766_v48 = vld [vmem:[#allocation38_spill] sm:$0xff] }
 0x127   :  { %v2474_v27 = vadd.f32 %v2442_v6, %v2230_v18  ;;  %v2515_v40 = vcombine.high %v6763_v63, %v6763_v63  ;;  %v2759_v39 = vcombine.high %v6764_v24, %v6764_v24  ;;  %v3003_v47 = vcombine.high %v6765_v20, %v6765_v20 }
 0x128   :  { %v1011_v35 = vadd.f32 %v979_v2, %v767_v3  ;;  %v2199_v49 = vmul.f32 %v2132_v36, %v6766_v48  ;;  %v4806_v17 = vrot.slane %v2271_v9, %v4123_v7  ;;  %v3247_v15 = vcombine.high %v6768_v4, %v6768_v4 }
 0x129   :  { %v2718_v19 = vadd.f32 %v2686_v56, %v2474_v27  ;;  %v4811_v6 = vrot.slane %v2515_v40, %v4123_v7  ;;  %v4814_v63 = vrot.slane %v2759_v39, %v4123_v7  ;;  %v4817_v18 = vrot.slane %v3003_v47, %v4123_v7  ;;  %v6773_v40 = vld [vmem:[#allocation42_spill] sm:$0xff] }
 0x12a   :  { %6767 = vst [vmem:[#allocation47_spill] sm:$0xff] %v4806_v17  ;;  %v1255_v20 = vadd.f32 %v1223_v51, %v1011_v35  ;;  %v2376_v3 = vrot.slane %v4806_v17, %v4129_v10  ;;  %v4822_v9 = vrot.slane %v3247_v15, %v4123_v7  ;;  %v3491_v2 = vcombine.high %v4645_v0, %v4645_v0  ;;  %v6776_v15 = vld [vmem:[#allocation49_spill] sm:$0xff] }
 0x12b   :  { %6769 = vst [vmem:[#allocation50_spill] sm:$0xff] %v4811_v6  ;;  %6770 = vst [vmem:[#allocation53_spill] sm:$0xff] %v4814_v63  ;;  %3966 = vxpose.xlu1.b32.cont [6/16] (narrow) %v4692_v26, 8  ;;  %v2962_v56 = vadd.f32 %v2930_v34, %v2718_v19  ;;  %v2620_v39 = vrot.slane %v4811_v6, %v4129_v10  ;;  %v2864_v4 = vrot.slane %v4814_v63, %v4129_v10  ;;  %v6775_v34 = vld [vmem:[#allocation46_spill] sm:$0xff]  ;;  %v6777_v6 = vld [vmem:[#allocation52_spill] sm:$0xff] }
 0x12c   :  { %6771 = vst [vmem:[#allocation56_spill] sm:$0xff] %v4817_v18  ;;  %6772 = vst [vmem:[#allocation59_spill] sm:$0xff] %v4822_v9  ;;  %v3108_v51 = vrot.slane %v4817_v18, %v4129_v10  ;;  %v1499_v27 = vadd.f32 %v1467_v44, %v1255_v20  ;;  %v2443_v24 = vmul.f32 %v2376_v3, %v6773_v40 }
 0x12d   :  { %v3352_v47 = vrot.slane %v4822_v9, %v4129_v10  ;;  %v4837_v0 = vrot.slane %v3491_v2, %v4123_v7  ;;  %v3206_v26 = vadd.f32 %v4723_v28, %v2962_v56  ;;  %v2687_v35 = vmul.f32 %v2620_v39, %v6775_v34  ;;  %v6778_v28 = vld [vmem:[#allocation14_spill] sm:$0xff]  ;;  %v6779_v9 = vld [vmem:[#allocation20_spill] sm:$0xff] }
 0x12e   :  { %v2931_v19 = vmul.f32 %v2864_v4, %v6776_v15  ;;  %v3175_v63 = vmul.f32 %v3108_v51, %v6777_v6  ;;  %v1743_v17 = vadd.f32 %v1711_v50, %v1499_v27  ;;  %v3735_v20 = vcombine.high %v4676_v59, %v4676_v59 }
 0x12f   :  { %6774 = vst [vmem:[#allocation66_spill] sm:$0xff] %v4837_v0  ;;  %v3419_v18 = vmul.f32 %v3352_v47, %v4568_v41  ;;  %v3596_v44 = vrot.slane %v4837_v0, %v4129_v10  ;;  %3967 = vxpose.xlu1.b32.cont [7/16] (narrow) %v4702_v33, 8  ;;  %v3450_v2 = vadd.f32 %v4729_v21, %v3206_v26  ;;  %v6781_v33 = vld [vmem:[#allocation17_spill] sm:$0xff] }
 0x130   :  { %v492_v56 = vmul.f32 %v4249_v5, %v6778_v28  ;;  %v736_v15 = vmul.f32 %v668_v55, %v6779_v9  ;;  %v980_v6 = vmul.f32 %v912_v25, %v4237_v54  ;;  %v1987_v50 = vadd.f32 %v1955_v43, %v1743_v17 }
 0x131   :  { %v3663_v27 = vmul.f32 %v3596_v44, %v4603_v22  ;;  %v4856_v41 = vrot.slane %v3735_v20, %v4123_v7  ;;  %v1224_v0 = vmul.f32 %v1156_v11, %v4269_v38  ;;  %v3694_v59 = vadd.f32 %v4732_v57, %v3450_v2  ;;  %v6785_v2 = vld [vmem:[#allocation22_spill] sm:$0xff] }
 0x132   :  { %v524_v34 = vadd.f32 %v492_v56, %v6781_v33  ;;  %v1468_v21 = vmul.f32 %v1400_v16, %v4307_v30  ;;  %v1712_v5 = vmul.f32 %v1644_v52, %v4342_v45  ;;  %v2231_v26 = vadd.f32 %v2199_v49, %v1987_v50  ;;  %v6787_v50 = vld [vmem:[#allocation30_spill] sm:$0xff] }
 0x133   :  { %6780 = vst [vmem:[#allocation67_spill] sm:$0xff] %v4856_v41  ;;  %v3840_v55 = vrot.slane %v4856_v41, %v4129_v10  ;;  %v1956_v43 = vmul.f32 %v1888_v1, %v4377_v31  ;;  %v2200_v25 = vmul.f32 %v2132_v36, %v4412_v46  ;;  %3968 = vxpose.xlu1.b32.cont [8/16] (narrow) %v4704_v37, 8  ;;  %v6794_v41 = vld [vmem:[#allocation45_spill] sm:$0xff] }
 0x134   :  { %v3938_v11 = vadd.f32 %v4735_v29, %v3694_v59  ;;  %v768_v17 = vadd.f32 %v736_v15, %v524_v34  ;;  %v2444_v57 = vmul.f32 %v2376_v3, %v4447_v60  ;;  %v4871_v20 = vmul.f32 %v2620_v39, %v4482_v8  ;;  %v6784_v15 = vld [vmem:[#allocation15_spill] sm:$0xff]  ;;  %v6788_v59 = vld [vmem:[#allocation34_spill] sm:$0xff] }
 0x135   :  { %v2475_v16 = vadd.f32 %v2443_v24, %v2231_v26  ;;  %v3907_v52 = vmul.f32 %v3840_v55, %v4638_v61  ;;  %v4875_v49 = vmul.f32 %v2864_v4, %v4517_v53  ;;  %v4878_v1 = vmul.f32 %v3108_v51, %v4552_v12  ;;  %v6782_v24 = vld [vmem:[#allocation11_spill] sm:$0xff] }
 0x136   :  { %v1012_v36 = vadd.f32 %v980_v6, %v768_v17  ;;  %v4881_v37 = vmul.f32 %v3352_v47, %v4587_v42  ;;  %v4884_v29 = vmul.f32 %v3596_v44, %v4622_v13  ;;  %v4887_v3 = vmul.f32 %v3840_v55, %v4661_v14  ;;  %v6786_v44 = vld [vmem:[#allocation26_spill] sm:$0xff]  ;;  %v6789_v55 = vld [vmem:[#allocation9_spill] sm:$0xff] }
 0x137   :  { %v2719_v39 = vadd.f32 %v2687_v35, %v2475_v16  ;;  %v6783_v34 = vcombine.high %v6782_v24, %v6782_v24  ;;  %v349_v51 = vcombine.high %v6784_v15, %v6784_v15  ;;  %v593_v6 = vcombine.high %v6785_v2, %v6785_v2  ;;  %3969 = vxpose.xlu1.b32.cont [9/16] (narrow) %v4725_v62, 8 }
 0x138   :  { %v1256_v47 = vadd.f32 %v1224_v0, %v1012_v36  ;;  %v837_v56 = vcombine.high %v6786_v44, %v6786_v44  ;;  %v1081_v35 = vcombine.high %v6787_v50, %v6787_v50  ;;  %v1325_v33 = vcombine.high %v6788_v59, %v6788_v59  ;;  %v6790_v50 = vld [vmem:[#allocation37_spill] sm:$0xff] }
 0x139   :  { %v216_v4 = vrot.slane %v6783_v34, %v4129_v10  ;;  %v2963_v26 = vadd.f32 %v2931_v19, %v2719_v39  ;;  %v428_v16 = vrot.slane %v349_v51, %v4129_v10  ;;  %v672_v24 = vrot.slane %v593_v6, %v4129_v10  ;;  %v6791_v6 = vld [vmem:[#allocation24_spill] sm:$0xff] }
 0x13a   :  { %v1500_v34 = vadd.f32 %v1468_v21, %v1256_v47  ;;  %v916_v62 = vrot.slane %v837_v56, %v4129_v10  ;;  %v1160_v0 = vrot.slane %v1081_v35, %v4129_v10  ;;  %v1404_v36 = vrot.slane %v1325_v33, %v4129_v10  ;;  %v6792_v47 = vld [vmem:[#allocation27_spill] sm:$0xff] }
 0x13b   :  { %v281_v17 = vmul.f32 %v216_v4, %v6789_v55  ;;  %v3207_v15 = vadd.f32 %v3175_v63, %v2963_v26  ;;  %v493_v2 = vmul.f32 %v428_v16, %v4144_v23  ;;  %v737_v44 = vmul.f32 %v672_v24, %v6755_v32  ;;  %3970 = vxpose.xlu1.b32.cont [10/16] (narrow) %v3938_v11, 8  ;;  %v6793_v63 = vld [vmem:[#allocation41_spill] sm:$0xff]  ;;  %v6796_v11 = vld [vmem:[#allocation51_spill] sm:$0xff]  ;;  %v6799_v23 = vld [vmem:[#allocation54_spill] sm:$0xff] }
 0x13c   :  { %v1569_v19 = vcombine.high %v6790_v50, %v6790_v50  ;;  %v1744_v39 = vadd.f32 %v1712_v5, %v1500_v34  ;;  %v981_v51 = vmul.f32 %v916_v62, %v6756_v58  ;;  %v1225_v21 = vmul.f32 %v1160_v0, %v6791_v6  ;;  %v6795_v50 = vld [vmem:[#allocation48_spill] sm:$0xff] }
 0x13d   :  { %v1469_v56 = vmul.f32 %v1404_v36, %v6792_v47  ;;  %v3451_v59 = vadd.f32 %v3419_v18, %v3207_v15  ;;  %v525_v35 = vadd.f32 %v493_v2, %v281_v17  ;;  %v1813_v26 = vcombine.high %v6793_v63, %v6793_v63  ;;  %v6797_v47 = vld [vmem:[#allocation31_spill] sm:$0xff] }
 0x13e   :  { %v1648_v33 = vrot.slane %v1569_v19, %v4129_v10  ;;  %v1988_v7 = vadd.f32 %v1956_v43, %v1744_v39  ;;  %v2057_v32 = vcombine.high %v6794_v41, %v6794_v41  ;;  %v2301_v5 = vcombine.high %v6795_v50, %v6795_v50  ;;  %v6798_v63 = vld [vmem:[#allocation35_spill] sm:$0xff] }
 0x13f   :  { %v2545_v34 = vcombine.high %v6796_v11, %v6796_v11  ;;  %v3695_v6 = vadd.f32 %v3663_v27, %v3451_v59  ;;  %v769_v58 = vadd.f32 %v737_v44, %v525_v35  ;;  %v1892_v17 = vrot.slane %v1813_v26, %v4129_v10  ;;  %v6800_v35 = vld [vmem:[#allocation46_spill] sm:$0xff]  ;;  %v6801_v26 = vld [vmem:[#allocation57_spill] sm:$0xff] }
 0x140   :  { %v1713_v18 = vmul.f32 %v1648_v33, %v6797_v47  ;;  %v2232_v15 = vadd.f32 %v2200_v25, %v1988_v7  ;;  %v2136_v2 = vrot.slane %v2057_v32, %v4129_v10  ;;  %v2380_v43 = vrot.slane %v2301_v5, %v4129_v10  ;;  %v6804_v5 = vld [vmem:[#allocation64_spill] sm:$0xff] }
 0x141   :  { %v2624_v19 = vrot.slane %v2545_v34, %v4129_v10  ;;  %v3939_v41 = vadd.f32 %v3907_v52, %v3695_v6  ;;  %v1013_v39 = vadd.f32 %v981_v51, %v769_v58  ;;  %v1957_v50 = vmul.f32 %v1892_v17, %v6798_v63  ;;  %v6802_v58 = vld [vmem:[#allocation60_spill] sm:$0xff]  ;;  %v6808_v63 = vld [vmem:[#allocation55_spill] sm:$0xff] }
 0x142   :  { %v2789_v11 = vcombine.high %v6799_v23, %v6799_v23  ;;  %v2476_v27 = vadd.f32 %v2444_v57, %v2232_v15  ;;  %v2201_v44 = vmul.f32 %v2136_v2, %v6766_v48  ;;  %v2445_v59 = vmul.f32 %v2380_v43, %v6773_v40  ;;  %v6803_v23 = vld [vmem:[#allocation63_spill] sm:$0xff]  ;;  %v6805_v15 = vld [vmem:[#allocation10_spill] sm:$0xff]  ;;  %v6807_v48 = vld [vmem:[#allocation52_spill] sm:$0xff] }
 0x143   :  { %v2689_v7 = vmul.f32 %v2624_v19, %v6800_v35  ;;  %3971 = vxpose.xlu1.b32.cont [11/16] (narrow) %v3939_v41, 8  ;;  %v1257_v32 = vadd.f32 %v1225_v21, %v1013_v39  ;;  %v3033_v52 = vcombine.high %v6801_v26, %v6801_v26  ;;  %v3277_v51 = vcombine.high %v6802_v58, %v6802_v58  ;;  %v6806_v21 = vld [vmem:[#allocation49_spill] sm:$0xff] }
 0x144   :  { %v2868_v25 = vrot.slane %v2789_v11, %v4129_v10  ;;  %v2720_v6 = vadd.f32 %v4871_v20, %v2476_v27  ;;  %v3521_v57 = vcombine.high %v6803_v23, %v6803_v23  ;;  %v3765_v34 = vcombine.high %v6804_v5, %v6804_v5 }
 0x145   :  { %v282_v35 = vmul.f32 %v216_v4, %v6805_v15  ;;  %v1501_v41 = vadd.f32 %v1469_v56, %v1257_v32  ;;  %v3112_v11 = vrot.slane %v3033_v52, %v4129_v10  ;;  %v3356_v26 = vrot.slane %v3277_v51, %v4129_v10 }
 0x146   :  { %v2933_v39 = vmul.f32 %v2868_v25, %v6806_v21  ;;  %v2964_v40 = vadd.f32 %v4875_v49, %v2720_v6  ;;  %v3600_v58 = vrot.slane %v3521_v57, %v4129_v10  ;;  %v3844_v20 = vrot.slane %v3765_v34, %v4129_v10 }
 0x147   :  { %v494_v27 = vmul.f32 %v428_v16, %v6778_v28  ;;  %v1745_v23 = vadd.f32 %v1713_v18, %v1501_v41  ;;  %v3177_v5 = vmul.f32 %v3112_v11, %v6807_v48  ;;  %v3421_v4 = vmul.f32 %v3356_v26, %v6808_v63 }
 0x148   :  { %v738_v56 = vmul.f32 %v672_v24, %v6779_v9  ;;  %v3208_v32 = vadd.f32 %v4878_v1, %v2964_v40  ;;  %v3665_v52 = vmul.f32 %v3600_v58, %v4603_v22  ;;  %v4961_v51 = vmul.f32 %v3844_v20, %v4638_v61 }
 0x149   :  { %v526_v49 = vadd.f32 %v494_v27, %v282_v35  ;;  %v1989_v6 = vadd.f32 %v1957_v50, %v1745_v23  ;;  %v982_v57 = vmul.f32 %v916_v62, %v4237_v54  ;;  %v1226_v16 = vmul.f32 %v1160_v0, %v4269_v38  ;;  %v6812_v23 = vld [vmem:[#allocation32_spill] sm:$0xff] }
 0x14a   :  { %v1470_v18 = vmul.f32 %v1404_v36, %v4307_v30  ;;  %v3452_v34 = vadd.f32 %v4881_v37, %v3208_v32  ;;  %v1714_v24 = vmul.f32 %v1648_v33, %v4342_v45  ;;  %v1958_v40 = vmul.f32 %v1892_v17, %v4377_v31 }
 0x14b   :  { %v770_v41 = vadd.f32 %v738_v56, %v526_v49  ;;  %v2233_v1 = vadd.f32 %v2201_v44, %v1989_v6  ;;  %v2202_v9 = vmul.f32 %v2136_v2, %v4412_v46  ;;  %v2446_v61 = vmul.f32 %v2380_v43, %v4447_v60  ;;  %v6813_v56 = vld [vmem:[#allocation36_spill] sm:$0xff] }
 0x14c   :  { %v2690_v50 = vmul.f32 %v2624_v19, %v4482_v8  ;;  %v3696_v62 = vadd.f32 %v4884_v29, %v3452_v34  ;;  %v4974_v0 = vmul.f32 %v2868_v25, %v4517_v53  ;;  %v4977_v37 = vmul.f32 %v3112_v11, %v4552_v12  ;;  %v6809_v19 = vld [vmem:[#allocation13_spill] sm:$0xff]  ;;  %v6810_v25 = vld [vmem:[#allocation19_spill] sm:$0xff]  ;;  %v6814_v6 = vld [vmem:[#allocation16_spill] sm:$0xff] }
 0x14d   :  { %v1014_v35 = vadd.f32 %v982_v57, %v770_v41  ;;  %v2477_v36 = vadd.f32 %v2445_v59, %v2233_v1  ;;  %v4980_v33 = vmul.f32 %v3356_v26, %v4587_v42  ;;  %v4983_v17 = vmul.f32 %v3600_v58, %v4622_v13  ;;  %v6811_v59 = vld [vmem:[#allocation28_spill] sm:$0xff] }
 0x14e   :  { %v4986_v2 = vmul.f32 %v3844_v20, %v4661_v14  ;;  %v3940_v43 = vadd.f32 %v4887_v3, %v3696_v62  ;;  %v139_v44 = vcombine.high %v6809_v19, %v6809_v19  ;;  %v351_v11 = vcombine.high %v6810_v25, %v6810_v25  ;;  %v6815_v62 = vld [vmem:[#allocation12_spill] sm:$0xff]  ;;  %v6817_v19 = vld [vmem:[#allocation21_spill] sm:$0xff] }
 0x14f   :  { %v1258_v29 = vadd.f32 %v1226_v16, %v1014_v35  ;;  %v2721_v27 = vadd.f32 %v2689_v7, %v2477_v36  ;;  %v595_v26 = vcombine.high %v6811_v59, %v6811_v59  ;;  %v839_v58 = vcombine.high %v6812_v23, %v6812_v23  ;;  %v6818_v25 = vld [vmem:[#allocation24_spill] sm:$0xff]  ;;  %v6820_v23 = vld [vmem:[#allocation39_spill] sm:$0xff] }
 0x150   :  { %v1083_v20 = vcombine.high %v6813_v56, %v6813_v56  ;;  %3972 = vxpose.xlu1.b32.cont [12/16] (narrow) %v3940_v43, 8  ;;  %v220_v3 = vrot.slane %v139_v44, %v4129_v10  ;;  %v432_v49 = vrot.slane %v351_v11, %v4129_v10  ;;  %v1327_v57 = vcombine.high %v6814_v6, %v6814_v6 }
 0x151   :  { %v1502_v32 = vadd.f32 %v1470_v18, %v1258_v29  ;;  %v2965_v16 = vadd.f32 %v2933_v39, %v2721_v27  ;;  %v5004_v7 = vrot.slane %v595_v26, %v4129_v10  ;;  %v5007_v34 = vrot.slane %v839_v58, %v4129_v10  ;;  %v6816_v29 = vld [vmem:[#allocation18_spill] sm:$0xff]  ;;  %v6819_v26 = vld [vmem:[#allocation27_spill] sm:$0xff] }
 0x152   :  { %v5010_v41 = vrot.slane %v1083_v20, %v4129_v10  ;;  %v283_v18 = vmul.f32 %v220_v3, %v6789_v55  ;;  %v495_v35 = vmul.f32 %v432_v49, %v6815_v62  ;;  %v1408_v36 = vrot.slane %v1327_v57, %v4129_v10  ;;  %v6821_v20 = vld [vmem:[#allocation65_spill] sm:$0xff]  ;;  %v6823_v57 = vld [vmem:[#allocation47_spill] sm:$0xff] }
 0x153   :  { %v1746_v1 = vadd.f32 %v1714_v24, %v1502_v32  ;;  %v3209_v43 = vadd.f32 %v3177_v5, %v2965_v16  ;;  %v739_v39 = vmul.f32 %v5004_v7, %v6816_v29  ;;  %v983_v44 = vmul.f32 %v5007_v34, %v6817_v19  ;;  %v6822_v32 = vld [vmem:[#allocation43_spill] sm:$0xff]  ;;  %v6829_v62 = vld [vmem:[#allocation53_spill] sm:$0xff] }
 0x154   :  { %v1227_v11 = vmul.f32 %v5010_v41, %v6818_v25  ;;  %v527_v59 = vadd.f32 %v495_v35, %v283_v18  ;;  %v1471_v24 = vmul.f32 %v1408_v36, %v6819_v26  ;;  %v1571_v58 = vcombine.high %v6820_v23, %v6820_v23  ;;  %v6828_v25 = vld [vmem:[#allocation46_spill] sm:$0xff] }
 0x155   :  { %v1990_v27 = vadd.f32 %v1958_v40, %v1746_v1  ;;  %v3453_v56 = vadd.f32 %v3421_v4, %v3209_v43  ;;  %v1815_v5 = vcombine.high %v6821_v20, %v6821_v20  ;;  %v2059_v6 = vcombine.high %v6822_v32, %v6822_v32  ;;  %v6824_v1 = vld [vmem:[#allocation50_spill] sm:$0xff] }
 0x156   :  { %v2303_v16 = vcombine.high %v6823_v57, %v6823_v57  ;;  %v771_v29 = vadd.f32 %v739_v39, %v527_v59  ;;  %v1652_v40 = vrot.slane %v1571_v58, %v4129_v10  ;;  %v2547_v18 = vcombine.high %v6824_v1, %v6824_v1  ;;  %v6825_v39 = vld [vmem:[#allocation35_spill] sm:$0xff]  ;;  %v6826_v59 = vld [vmem:[#allocation38_spill] sm:$0xff] }
 0x157   :  { %v2234_v19 = vadd.f32 %v2202_v9, %v1990_v27  ;;  %v3697_v35 = vadd.f32 %v3665_v52, %v3453_v56  ;;  %v1896_v23 = vrot.slane %v1815_v5, %v4129_v10  ;;  %v2140_v4 = vrot.slane %v2059_v6, %v4129_v10  ;;  %v6827_v1 = vld [vmem:[#allocation42_spill] sm:$0xff] }
 0x158   :  { %v2384_v43 = vrot.slane %v2303_v16, %v4129_v10  ;;  %v1015_v26 = vadd.f32 %v983_v44, %v771_v29  ;;  %v1715_v32 = vmul.f32 %v1652_v40, %v6797_v47  ;;  %v2628_v57 = vrot.slane %v2547_v18, %v4129_v10  ;;  %v6830_v29 = vld [vmem:[#allocation56_spill] sm:$0xff]  ;;  %v6831_v44 = vld [vmem:[#allocation59_spill] sm:$0xff]  ;;  %v6832_v16 = vld [vmem:[#allocation66_spill] sm:$0xff] }
 0x159   :  { %v2478_v20 = vadd.f32 %v2446_v61, %v2234_v19  ;;  %v3941_v9 = vadd.f32 %v4961_v51, %v3697_v35  ;;  %v1959_v27 = vmul.f32 %v1896_v23, %v6825_v39  ;;  %v2203_v58 = vmul.f32 %v2140_v4, %v6826_v59  ;;  %v6833_v35 = vld [vmem:[#allocation67_spill] sm:$0xff] }
 0x15a   :  { %v2447_v52 = vmul.f32 %v2384_v43, %v6827_v1  ;;  %v1259_v5 = vadd.f32 %v1227_v11, %v1015_v26  ;;  %v2691_v6 = vmul.f32 %v2628_v57, %v6828_v25  ;;  %v2791_v61 = vcombine.high %v6829_v62, %v6829_v62 }
 0x15b   :  { %v2722_v56 = vadd.f32 %v2690_v50, %v2478_v20  ;;  %3973 = vxpose.xlu1.b32.cont [13/16] (narrow) %v3941_v9, 8  ;;  %v3035_v19 = vcombine.high %v6830_v29, %v6830_v29  ;;  %v3279_v51 = vcombine.high %v6831_v44, %v6831_v44  ;;  %v3523_v18 = vcombine.high %v6832_v16, %v6832_v16 }
 0x15c   :  { %v3767_v1 = vcombine.high %v6833_v35, %v6833_v35  ;;  %v1503_v11 = vadd.f32 %v1471_v24, %v1259_v5  ;;  %v2872_v26 = vrot.slane %v2791_v61, %v4129_v10  ;;  %v284_v62 = vmul.f32 %v220_v3, %v6805_v15  ;;  %v6834_v5 = vld [vmem:[#allocation61_spill] sm:$0xff] }
 0x15d   :  { %v2966_v50 = vadd.f32 %v4974_v0, %v2722_v56  ;;  %v3116_v20 = vrot.slane %v3035_v19, %v4129_v10  ;;  %v3360_v9 = vrot.slane %v3279_v51, %v4129_v10  ;;  %v3604_v29 = vrot.slane %v3523_v18, %v4129_v10  ;;  %v6835_v18 = vld [vmem:[#allocation20_spill] sm:$0xff] }
 0x15e   :  { %v3848_v44 = vrot.slane %v3767_v1, %v4129_v10  ;;  %v1747_v25 = vadd.f32 %v1715_v32, %v1503_v11  ;;  %v2935_v35 = vmul.f32 %v2872_v26, %v6806_v21  ;;  %v496_v0 = vmul.f32 %v432_v49, %v6778_v28 }
 0x15f   :  { %v3210_v16 = vadd.f32 %v4977_v37, %v2966_v50  ;;  %v3179_v24 = vmul.f32 %v3116_v20, %v6807_v48  ;;  %v3423_v56 = vmul.f32 %v3360_v9, %v6808_v63  ;;  %v3667_v3 = vmul.f32 %v3604_v29, %v4603_v22 }
 0x160   :  { %v5067_v61 = vmul.f32 %v3848_v44, %v6834_v5  ;;  %v1991_v51 = vadd.f32 %v1959_v27, %v1747_v25  ;;  %v528_v1 = vadd.f32 %v496_v0, %v284_v62  ;;  %v740_v37 = vmul.f32 %v5004_v7, %v6835_v18  ;;  %v6846_v0 = vld [vmem:[#allocation24_spill] sm:$0xff] }
 0x161   :  { %v3454_v19 = vadd.f32 %v4980_v33, %v3210_v16  ;;  %v984_v32 = vmul.f32 %v5007_v34, %v4237_v54  ;;  %v1228_v49 = vmul.f32 %v5010_v41, %v4269_v38  ;;  %v1472_v50 = vmul.f32 %v1408_v36, %v4307_v30 }
 0x162   :  { %v1716_v11 = vmul.f32 %v1652_v40, %v4342_v45  ;;  %v2235_v22 = vadd.f32 %v2203_v58, %v1991_v51  ;;  %v772_v63 = vadd.f32 %v740_v37, %v528_v1  ;;  %v1960_v33 = vmul.f32 %v1896_v23, %v4377_v31 }
 0x163   :  { %v3698_v5 = vadd.f32 %v4983_v17, %v3454_v19  ;;  %v2204_v25 = vmul.f32 %v2140_v4, %v4412_v46  ;;  %v2448_v7 = vmul.f32 %v2384_v43, %v4447_v60  ;;  %v2692_v27 = vmul.f32 %v2628_v57, %v4482_v8  ;;  %v6836_v43 = vld [vmem:[#allocation8_spill] sm:$0xff] }
 0x164   :  { %v5084_v34 = vmul.f32 %v2872_v26, %v4517_v53  ;;  %v2479_v36 = vadd.f32 %v2447_v52, %v2235_v22  ;;  %v1016_v62 = vadd.f32 %v984_v32, %v772_v63  ;;  %v5088_v40 = vmul.f32 %v3116_v20, %v4552_v12 }
 0x165   :  { %v3942_v41 = vadd.f32 %v4986_v2, %v3698_v5  ;;  %v5091_v17 = vmul.f32 %v3360_v9, %v4587_v42  ;;  %v5094_v23 = vmul.f32 %v3604_v29, %v4622_v13  ;;  %v5097_v4 = vmul.f32 %v3848_v44, %v4661_v14 }
 0x166   :  { %v5101_v57 = vrot.slane %v6805_v15, %v6836_v43  ;;  %v2723_v2 = vadd.f32 %v2691_v6, %v2479_v36  ;;  %v1260_v22 = vadd.f32 %v1228_v49, %v1016_v62  ;;  %v5105_v63 = vrot.slane %v6778_v28, %v6836_v43  ;;  %v6840_v62 = vld [vmem:[#allocation12_spill] sm:$0xff] }
 0x167   :  { %3974 = vxpose.xlu1.b32.cont [14/16] (narrow) %v3942_v41, 8  ;;  %v5109_v58 = vrot.slane %v6835_v18, %v6836_v43  ;;  %v5119_v20 = vrot.slane %v4237_v54, %v6836_v43  ;;  %v5123_v6 = vrot.slane %v4269_v38, %v6836_v43  ;;  %v5202_v52 = vrot.slane %v4342_v45, %v6836_v43 }
 0x168   :  { %v5115_v26 = vrot.slane %v5101_v57, %v6836_v43  ;;  %v2967_v9 = vadd.f32 %v2935_v35, %v2723_v2  ;;  %v1504_v29 = vadd.f32 %v1472_v50, %v1260_v22  ;;  %v5129_v16 = vrot.slane %v5105_v63, %v6836_v43 }
 0x169   :  { %v5141_v35 = vrot.slane %v5109_v58, %v6836_v43  ;;  %v5163_v22 = vrot.slane %v5119_v20, %v6836_v43  ;;  %v5171_v37 = vrot.slane %v5123_v6, %v6836_v43  ;;  %v5206_v44 = vrot.slane %v4377_v31, %v6836_v43 }
 0x16a   :  { %6837 = vst [vmem:[#allocation17_spill] sm:$0xff] %v5115_v26  ;;  %6838 = vst [vmem:[#allocation11_spill] sm:$0xff] %v5129_v16  ;;  %v5135_v5 = vrot.slane %v5115_v26, %v4129_v10  ;;  %v3211_v51 = vadd.f32 %v3179_v24, %v2967_v9  ;;  %v1748_v1 = vadd.f32 %v1716_v11, %v1504_v29  ;;  %v6842_v9 = vld [vmem:[#allocation18_spill] sm:$0xff] }
 0x16b   :  { %6839 = vst [vmem:[#allocation15_spill] sm:$0xff] %v5141_v35  ;;  %v5147_v32 = vrot.slane %v5129_v16, %v4129_v10  ;;  %v5155_v41 = vrot.slane %v5141_v35, %v4129_v10  ;;  %6841 = vst [vmem:[#allocation22_spill] sm:$0xff] %v5163_v22  ;;  %v5181_v24 = vrot.slane %v5163_v22, %v4129_v10 }
 0x16c   :  { %v285_v49 = vmul.f32 %v5135_v5, %v6789_v55  ;;  %v3455_v11 = vadd.f32 %v3423_v56, %v3211_v51  ;;  %v1992_v36 = vadd.f32 %v1960_v33, %v1748_v1  ;;  %6843 = vst [vmem:[#allocation26_spill] sm:$0xff] %v5171_v37  ;;  %v5175_v56 = vrot.slane %v4307_v30, %v6836_v43 }
 0x16d   :  { %v497_v2 = vmul.f32 %v5147_v32, %v6840_v62  ;;  %v741_v29 = vmul.f32 %v5155_v41, %v6842_v9  ;;  %v5187_v19 = vrot.slane %v5171_v37, %v4129_v10  ;;  %v5222_v37 = vrot.slane %v5202_v52, %v6836_v43 }
 0x16e   :  { %v3699_v33 = vadd.f32 %v3667_v3, %v3455_v11  ;;  %v2236_v51 = vadd.f32 %v2204_v25, %v1992_v36  ;;  %v5194_v11 = vrot.slane %v5175_v56, %v6836_v43  ;;  %v6845_v36 = vld [vmem:[#allocation21_spill] sm:$0xff] }
 0x16f   :  { %v529_v1 = vadd.f32 %v497_v2, %v285_v49  ;;  %v985_v2 = vmul.f32 %v5181_v24, %v6845_v36  ;;  %v1229_v50 = vmul.f32 %v5187_v19, %v6846_v0  ;;  %6847 = vst [vmem:[#allocation34_spill] sm:$0xff] %v5222_v37  ;;  %v5239_v22 = vrot.slane %v5222_v37, %v4129_v10 }
 0x170   :  { %v3943_v3 = vadd.f32 %v5067_v61, %v3699_v33  ;;  %v2480_v25 = vadd.f32 %v2448_v7, %v2236_v51  ;;  %6844 = vst [vmem:[#allocation30_spill] sm:$0xff] %v5194_v11  ;;  %v5216_v33 = vrot.slane %v4412_v46, %v6836_v43 }
 0x171   :  { %v773_v49 = vadd.f32 %v741_v29, %v529_v1  ;;  %v5212_v29 = vrot.slane %v5194_v11, %v4129_v10  ;;  %v5231_v11 = vrot.slane %v5206_v44, %v6836_v43  ;;  %v1717_v1 = vmul.f32 %v5239_v22, %v6797_v47 }
 0x172   :  { %3975 = vxpose.xlu1.b32.cont [15/16] (narrow) %v3943_v3, 8  ;;  %v2724_v61 = vadd.f32 %v2692_v27, %v2480_v25  ;;  %v6848_v25 = vld [vmem:[#allocation27_spill] sm:$0xff] }
 0x173   :  { %v1017_v51 = vadd.f32 %v985_v2, %v773_v49  ;;  %v1473_v7 = vmul.f32 %v5212_v29, %v6848_v25  ;;  %6849 = vst [vmem:[#allocation37_spill] sm:$0xff] %v5231_v11  ;;  %v5250_v49 = vrot.slane %v5231_v11, %v4129_v10  ;;  %v6855_v11 = vld [vmem:[#allocation42_spill] sm:$0xff] }
 0x174   :  { %v2968_v3 = vadd.f32 %v5084_v34, %v2724_v61  ;;  %v5243_v34 = vrot.slane %v5216_v33, %v6836_v43 }
 0x175   :  { %v1261_v2 = vadd.f32 %v1229_v50, %v1017_v51  ;;  %v5254_v50 = vrot.slane %v4447_v60, %v6836_v43  ;;  %v1961_v27 = vmul.f32 %v5250_v49, %v6825_v39 }
 0x176   :  { %6850 = vst [vmem:[#allocation41_spill] sm:$0xff] %v5243_v34  ;;  %v3212_v61 = vadd.f32 %v5088_v40, %v2968_v3  ;;  %v5262_v40 = vrot.slane %v5243_v34, %v4129_v10  ;;  %v5277_v34 = vrot.slane %v4482_v8, %v6836_v43 }
 0x177   :  { %v1505_v51 = vadd.f32 %v1473_v7, %v1261_v2  ;;  %v5271_v7 = vrot.slane %v5254_v50, %v6836_v43 }
 0x178   :  { %v3456_v3 = vadd.f32 %v5091_v17, %v3212_v61  ;;  %v2205_v37 = vmul.f32 %v5262_v40, %v6826_v59  ;;  %v5281_v17 = vrot.slane %v4517_v53, %v6836_v43  ;;  %v5296_v26 = vrot.slane %v5277_v34, %v6836_v43 }
 0x179   :  { %6851 = vst [vmem:[#allocation45_spill] sm:$0xff] %v5271_v7  ;;  %v1749_v2 = vadd.f32 %v1717_v1, %v1505_v51  ;;  %v2388_v35 = vrot.slane %v5271_v7, %v4129_v10  ;;  %v5290_v1 = vrot.slane %v4552_v12, %v6836_v43 }
 0x17a   :  { %6852 = vst [vmem:[#allocation48_spill] sm:$0xff] %v5281_v17  ;;  %v3700_v61 = vadd.f32 %v5094_v23, %v3456_v3  ;;  %6854 = vst [vmem:[#allocation54_spill] sm:$0xff] %v5296_v26  ;;  %v5304_v7 = vrot.slane %v5281_v17, %v6836_v43  ;;  %v2632_v39 = vrot.slane %v5296_v26, %v4129_v10 }
 0x17b   :  { %6853 = vst [vmem:[#allocation51_spill] sm:$0xff] %v5290_v1  ;;  %v1993_v51 = vadd.f32 %v1961_v27, %v1749_v2  ;;  %v2449_v59 = vmul.f32 %v2388_v35, %v6855_v11  ;;  %v5314_v23 = vrot.slane %v5290_v1, %v6836_v43  ;;  %v6860_v27 = vld [vmem:[#allocation46_spill] sm:$0xff] }
 0x17c   :  { %v3944_v3 = vadd.f32 %v5097_v4, %v3700_v61  ;;  %6856 = vst [vmem:[#allocation57_spill] sm:$0xff] %v5304_v7  ;;  %v2876_v61 = vrot.slane %v5304_v7, %v4129_v10  ;;  %v2693_v26 = vmul.f32 %v2632_v39, %v6860_v27  ;;  %v6863_v7 = vld [vmem:[#allocation55_spill] sm:$0xff] }
 0x17d   :  { %v2237_v2 = vadd.f32 %v2205_v37, %v1993_v51  ;;  %6857 = vst [vmem:[#allocation60_spill] sm:$0xff] %v5314_v23  ;;  %v5322_v37 = vrot.slane %v4587_v42, %v6836_v43  ;;  %v5326_v51 = vrot.slane %v4622_v13, %v6836_v43  ;;  %v3120_v4 = vrot.slane %v5314_v23, %v4129_v10 }
 0x17e   :  { %3976 = vxpose.xlu1.b32.end [16/16] (narrow) %v3944_v3, 8  ;;  %v2937_v11 = vmul.f32 %v2876_v61, %v6806_v21  ;;  %v5349_v23 = vrot.slane %v4661_v14, %v6836_v43 }
 0x17f   :  { %6858 = vst [vmem:[#allocation63_spill] sm:$0xff] %v5322_v37  ;;  %6859 = vst [vmem:[#allocation64_spill] sm:$0xff] %v5326_v51  ;;  %v2481_v16 = vadd.f32 %v2449_v59, %v2237_v2  ;;  %v5338_v1 = vrot.slane %v5322_v37, %v6836_v43  ;;  %v3181_v27 = vmul.f32 %v3120_v4, %v6807_v48 }
 0x180   :  { %v5345_v3 = vrot.slane %v5326_v51, %v6836_v43  ;;  %v286_v59 = vmul.f32 %v5135_v5, %v6805_v15  ;;  %v986_v51 = vmul.f32 %v5181_v24, %v4237_v54  ;;  %v1962_v24 = vmul.f32 %v5250_v49, %v4377_v31 }
 0x181   :  { %6861 = vst [vmem:[#allocation13_spill] sm:$0xff] %v5338_v1  ;;  %v2725_v2 = vadd.f32 %v2693_v26, %v2481_v16  ;;  %v3364_v37 = vrot.slane %v5338_v1, %v4129_v10  ;;  %v498_v26 = vmul.f32 %v5147_v32, %v6778_v28  ;;  %v5368_v1 = vrot.slane %v5349_v23, %v6836_v43 }
 0x182   :  { %6862 = vst [vmem:[#allocation19_spill] sm:$0xff] %v5345_v3  ;;  %v3608_v48 = vrot.slane %v5345_v3, %v4129_v10  ;;  %v742_v32 = vmul.f32 %v5155_v41, %v6835_v18  ;;  %v1230_v3 = vmul.f32 %v5187_v19, %v4269_v38  ;;  %v2206_v19 = vmul.f32 %v5262_v40, %v4412_v46 }
 0x183   :  { %v2969_v16 = vadd.f32 %v2937_v11, %v2725_v2  ;;  %v3425_v17 = vmul.f32 %v3364_v37, %v6863_v7  ;;  %6864 = vst [vmem:[#allocation28_spill] sm:$0xff] %v5368_v1  ;;  %v530_v5 = vadd.f32 %v498_v26, %v286_v59  ;;  %v6865_v2 = vld [vmem:[#allocation58_spill] sm:$0xff]  ;;  %v3852_v7 = vrot.slane %v5368_v1, %v4129_v10  ;;  %v6866_v26 = vld [vmem:[#allocation61_spill] sm:$0xff] }
 0x184   :  { %v3669_v28 = vmul.f32 %v3608_v48, %v6865_v2  ;;  %v1474_v59 = vmul.f32 %v5212_v29, %v4307_v30  ;;  %v2450_v38 = vmul.f32 %v2388_v35, %v4447_v60  ;;  %v2938_v29 = vmul.f32 %v2876_v61, %v4517_v53 }
 0x185   :  { %v3213_v11 = vadd.f32 %v3181_v27, %v2969_v16  ;;  %v774_v15 = vadd.f32 %v742_v32, %v530_v5  ;;  %v1718_v27 = vmul.f32 %v5239_v22, %v4342_v45  ;;  %v3913_v16 = vmul.f32 %v3852_v7, %v6866_v26 }
 0x186   :  { %v2694_v5 = vmul.f32 %v2632_v39, %v4482_v8  ;;  %v5397_v22 = vmul.f32 %v3364_v37, %v4587_v42  ;;  %v5403_v40 = vmul.f32 %v3852_v7, %v4661_v14  ;;  %v6869_v35 = vcombine.high %v5105_v63, %v5105_v63 }
 0x187   :  { %v3457_v41 = vadd.f32 %v3425_v17, %v3213_v11  ;;  %v1018_v21 = vadd.f32 %v986_v51, %v774_v15  ;;  %v5394_v17 = vmul.f32 %v3120_v4, %v4552_v12  ;;  %v5400_v11 = vmul.f32 %v3608_v48, %v4622_v13 }
 0x188   :  { %v6867_v15 = vcombine.high %v5101_v57, %v5101_v57  ;;  %v5415_v4 = vrot.slane %v6869_v35, %v6836_v43  ;;  %v6871_v48 = vcombine.high %v5109_v58, %v5109_v58  ;;  %v6873_v7 = vcombine.high %v5119_v20, %v5119_v20 }
 0x189   :  { %v3701_v32 = vadd.f32 %v3669_v28, %v3457_v41  ;;  %v1262_v49 = vadd.f32 %v1230_v3, %v1018_v21  ;;  %v6875_v63 = vcombine.high %v5123_v6, %v5123_v6  ;;  %v6877_v58 = vcombine.high %v5175_v56, %v5175_v56 }
 0x18a   :  { %v5409_v28 = vrot.slane %v6867_v15, %v6836_v43  ;;  %6870 = vst [vmem:[#allocation36_spill] sm:$0xff] %v5415_v4  ;;  %v5421_v21 = vrot.slane %v6871_v48, %v6836_v43  ;;  %v5427_v57 = vrot.slane %v6873_v7, %v6836_v43  ;;  %v440_v20 = vrot.slane %v5415_v4, %v4129_v10 }
 0x18b   :  { %v3945_v39 = vadd.f32 %v3913_v16, %v3701_v32  ;;  %v1506_v61 = vadd.f32 %v1474_v59, %v1262_v49  ;;  %v5435_v51 = vrot.slane %v6875_v63, %v6836_v43  ;;  %v5441_v3 = vrot.slane %v6877_v58, %v6836_v43 }
 0x18c   :  { %6868 = vst [vmem:[#allocation32_spill] sm:$0xff] %v5409_v28  ;;  %6872 = vst [vmem:[#allocation16_spill] sm:$0xff] %v5421_v21  ;;  %v228_v37 = vrot.slane %v5409_v28, %v4129_v10  ;;  %v684_v59 = vrot.slane %v5421_v21, %v4129_v10  ;;  %v928_v41 = vrot.slane %v5427_v57, %v4129_v10  ;;  %v6897_v28 = vld [vmem:[#allocation42_spill] sm:$0xff] }
 0x18d   :  { %6874 = vst [vmem:[#allocation39_spill] sm:$0xff] %v5427_v57  ;;  %6876 = vst [vmem:[#allocation65_spill] sm:$0xff] %v5435_v51  ;;  %3993 = vxpose.xlu1.b32.start [1/16] (narrow) %v3945_v39, 8  ;;  %v6879_v6 = vcombine.high %v5202_v52, %v5202_v52  ;;  %v1750_v32 = vadd.f32 %v1718_v27, %v1506_v61  ;;  %v1172_v49 = vrot.slane %v5435_v51, %v4129_v10 }
 0x18e   :  { %6878 = vst [vmem:[#allocation43_spill] sm:$0xff] %v5441_v3  ;;  %v287_v56 = vmul.f32 %v228_v37, %v6789_v55  ;;  %v1416_v15 = vrot.slane %v5441_v3, %v4129_v10  ;;  %v499_v39 = vmul.f32 %v440_v20, %v6840_v62  ;;  %v743_v35 = vmul.f32 %v684_v59, %v6842_v9 }
 0x18f   :  { %v5453_v16 = vrot.slane %v6879_v6, %v6836_v43  ;;  %v987_v48 = vmul.f32 %v928_v41, %v6845_v36  ;;  %v1994_v7 = vadd.f32 %v1962_v24, %v1750_v32  ;;  %v1231_v27 = vmul.f32 %v1172_v49, %v6846_v0 }
 0x190   :  { %v1475_v61 = vmul.f32 %v1416_v15, %v6848_v25  ;;  %v6881_v63 = vcombine.high %v5206_v44, %v5206_v44  ;;  %v531_v6 = vadd.f32 %v499_v39, %v287_v56  ;;  %v6883_v51 = vcombine.high %v5216_v33, %v5216_v33  ;;  %v6889_v33 = vld [vmem:[#allocation48_spill] sm:$0xff] }
 0x191   :  { %6880 = vst [vmem:[#allocation47_spill] sm:$0xff] %v5453_v16  ;;  %v1660_v52 = vrot.slane %v5453_v16, %v4129_v10  ;;  %v6885_v24 = vcombine.high %v5254_v50, %v5254_v50  ;;  %v2238_v16 = vadd.f32 %v2206_v19, %v1994_v7  ;;  %v6887_v56 = vcombine.high %v5277_v34, %v5277_v34  ;;  %v6892_v7 = vld [vmem:[#allocation51_spill] sm:$0xff] }
 0x192   :  { %v5471_v58 = vrot.slane %v6881_v63, %v6836_v43  ;;  %v5478_v57 = vrot.slane %v6883_v51, %v6836_v43  ;;  %v6890_v51 = vcombine.high %v6889_v33, %v6889_v33  ;;  %v775_v21 = vadd.f32 %v743_v35, %v531_v6 }
 0x193   :  { %v1719_v3 = vmul.f32 %v1660_v52, %v6797_v47  ;;  %v5484_v32 = vrot.slane %v6885_v24, %v6836_v43  ;;  %v5492_v39 = vrot.slane %v6887_v56, %v6836_v43  ;;  %v6893_v24 = vcombine.high %v6892_v7, %v6892_v7 }
 0x194   :  { %6882 = vst [vmem:[#allocation50_spill] sm:$0xff] %v5471_v58  ;;  %6884 = vst [vmem:[#allocation53_spill] sm:$0xff] %v5478_v57  ;;  %v1904_v44 = vrot.slane %v5471_v58, %v4129_v10  ;;  %v5498_v63 = vrot.slane %v6890_v51, %v6836_v43  ;;  %v2148_v50 = vrot.slane %v5478_v57, %v4129_v10  ;;  %v6895_v58 = vld [vmem:[#allocation35_spill] sm:$0xff]  ;;  %v6896_v51 = vld [vmem:[#allocation38_spill] sm:$0xff] }
 0x195   :  { %6886 = vst [vmem:[#allocation56_spill] sm:$0xff] %v5484_v32  ;;  %6888 = vst [vmem:[#allocation59_spill] sm:$0xff] %v5492_v39  ;;  %v2392_v19 = vrot.slane %v5484_v32, %v4129_v10  ;;  %v5508_v34 = vrot.slane %v6893_v24, %v6836_v43  ;;  %v2482_v56 = vadd.f32 %v2450_v38, %v2238_v16  ;;  %v6898_v24 = vld [vmem:[#allocation46_spill] sm:$0xff]  ;;  %v6899_v38 = vld [vmem:[#allocation49_spill] sm:$0xff] }
 0x196   :  { %6891 = vst [vmem:[#allocation66_spill] sm:$0xff] %v5498_v63  ;;  %v1963_v4 = vmul.f32 %v1904_v44, %v6895_v58  ;;  %v2636_v33 = vrot.slane %v5492_v39, %v4129_v10  ;;  %v2880_v35 = vrot.slane %v5498_v63, %v4129_v10  ;;  %v1019_v6 = vadd.f32 %v987_v48, %v775_v21  ;;  %v6900_v58 = vld [vmem:[#allocation63_spill] sm:$0xff]  ;;  %v6903_v21 = vld [vmem:[#allocation52_spill] sm:$0xff] }
 0x197   :  { %6894 = vst [vmem:[#allocation67_spill] sm:$0xff] %v5508_v34  ;;  %v2207_v57 = vmul.f32 %v2148_v50, %v6896_v51  ;;  %v2451_v32 = vmul.f32 %v2392_v19, %v6897_v28  ;;  %v3124_v1 = vrot.slane %v5508_v34, %v4129_v10  ;;  %v2726_v7 = vadd.f32 %v2694_v5, %v2482_v56  ;;  %v6905_v28 = vld [vmem:[#allocation64_spill] sm:$0xff] }
 0x198   :  { %v2695_v47 = vmul.f32 %v2636_v33, %v6898_v24  ;;  %v2939_v16 = vmul.f32 %v2880_v35, %v6899_v38  ;;  %v6901_v39 = vcombine.high %v6900_v58, %v6900_v58  ;;  %v1263_v63 = vadd.f32 %v1231_v27, %v1019_v6  ;;  %v6910_v27 = vld [vmem:[#allocation10_spill] sm:$0xff] }
 0x199   :  { %v5528_v48 = vmul.f32 %v3124_v1, %v6903_v21  ;;  %v6906_v51 = vcombine.high %v6905_v28, %v6905_v28  ;;  %v6908_v5 = vcombine.high %v5349_v23, %v5349_v23  ;;  %v2970_v38 = vadd.f32 %v2938_v29, %v2726_v7  ;;  %v6911_v6 = vld [vmem:[#allocation14_spill] sm:$0xff] }
 0x19a   :  { %v5525_v25 = vrot.slane %v6901_v39, %v6836_v43  ;;  %v288_v39 = vmul.f32 %v228_v37, %v6910_v27  ;;  %v500_v21 = vmul.f32 %v440_v20, %v6911_v6  ;;  %v1507_v24 = vadd.f32 %v1475_v61, %v1263_v63  ;;  %v6913_v61 = vld [vmem:[#allocation25_spill] sm:$0xff] }
 0x19b   :  { %6904 = vst [vmem:[#allocation48_spill] sm:$0xff] %v5528_v48  ;;  %v5534_v34 = vrot.slane %v6906_v51, %v6836_v43  ;;  %v5540_v56 = vrot.slane %v6908_v5, %v6836_v43  ;;  %v744_v48 = vmul.f32 %v684_v59, %v6835_v18  ;;  %v3214_v23 = vadd.f32 %v5394_v17, %v2970_v38  ;;  %v6912_v5 = vld [vmem:[#allocation55_spill] sm:$0xff] }
 0x19c   :  { %6902 = vst [vmem:[#allocation20_spill] sm:$0xff] %v5525_v25  ;;  %v3368_v58 = vrot.slane %v5525_v25, %v4129_v10  ;;  %v532_v7 = vadd.f32 %v500_v21, %v288_v39  ;;  %v988_v43 = vmul.f32 %v928_v41, %v4237_v54  ;;  %v1751_v25 = vadd.f32 %v1719_v3, %v1507_v24 }
 0x19d   :  { %6907 = vst [vmem:[#allocation51_spill] sm:$0xff] %v5534_v34  ;;  %6909 = vst [vmem:[#allocation63_spill] sm:$0xff] %v5540_v56  ;;  %v3612_v28 = vrot.slane %v5534_v34, %v4129_v10  ;;  %v3856_v51 = vrot.slane %v5540_v56, %v4129_v10  ;;  %v1232_v63 = vmul.f32 %v1172_v49, %v6913_v61 }
 0x19e   :  { %v3427_v29 = vmul.f32 %v3368_v58, %v6912_v5  ;;  %v3458_v56 = vadd.f32 %v5397_v22, %v3214_v23  ;;  %v776_v34 = vadd.f32 %v744_v48, %v532_v7  ;;  %v1476_v59 = vmul.f32 %v1416_v15, %v4307_v30 }
 0x19f   :  { %v5555_v37 = vmul.f32 %v3612_v28, %v6865_v2  ;;  %v5558_v20 = vmul.f32 %v3856_v51, %v6866_v26  ;;  %v1720_v17 = vmul.f32 %v1660_v52, %v4342_v45  ;;  %v1995_v38 = vadd.f32 %v1963_v4, %v1751_v25 }
 0x1a0   :  { %v1964_v21 = vmul.f32 %v1904_v44, %v4377_v31  ;;  %v2208_v3 = vmul.f32 %v2148_v50, %v4412_v46  ;;  %v2452_v41 = vmul.f32 %v2392_v19, %v4447_v60  ;;  %v3702_v24 = vadd.f32 %v5400_v11, %v3458_v56  ;;  %v6922_v56 = vld [vmem:[#allocation22_spill] sm:$0xff] }
 0x1a1   :  { %v1020_v39 = vadd.f32 %v988_v43, %v776_v34  ;;  %v2696_v54 = vmul.f32 %v2636_v33, %v4482_v8  ;;  %v2940_v49 = vmul.f32 %v2880_v35, %v4517_v53  ;;  %v2239_v22 = vadd.f32 %v2207_v57, %v1995_v38  ;;  %v6916_v43 = vld [vmem:[#allocation17_spill] sm:$0xff]  ;;  %v6920_v33 = vld [vmem:[#allocation15_spill] sm:$0xff]  ;;  %v6926_v38 = vld [vmem:[#allocation30_spill] sm:$0xff] }
 0x1a2   :  { %v5571_v48 = vmul.f32 %v3124_v1, %v4552_v12  ;;  %v5574_v15 = vmul.f32 %v3368_v58, %v4587_v42  ;;  %v5577_v25 = vmul.f32 %v3612_v28, %v4622_v13  ;;  %v3946_v4 = vadd.f32 %v5403_v40, %v3702_v24  ;;  %v6918_v1 = vld [vmem:[#allocation11_spill] sm:$0xff] }
 0x1a3   :  { %v1264_v52 = vadd.f32 %v1232_v63, %v1020_v39  ;;  %v5581_v11 = vmul.f32 %v3856_v51, %v4661_v14  ;;  %v6917_v44 = vcombine.high %v6916_v43, %v6916_v43  ;;  %v2483_v50 = vadd.f32 %v2451_v32, %v2239_v22  ;;  %v6924_v32 = vld [vmem:[#allocation26_spill] sm:$0xff] }
 0x1a4   :  { %6914 = vst [vmem:[#allocation64_spill] sm:$0xff] %v5577_v25  ;;  %v6919_v19 = vcombine.high %v6918_v1, %v6918_v1  ;;  %v6921_v35 = vcombine.high %v6920_v33, %v6920_v33  ;;  %v6923_v58 = vcombine.high %v6922_v56, %v6922_v56  ;;  %3994 = vxpose.xlu1.b32.cont [2/16] (narrow) %v3946_v4, 8  ;;  %v6928_v1 = vld [vmem:[#allocation27_spill] sm:$0xff]  ;;  %v6929_v33 = vld [vmem:[#allocation34_spill] sm:$0xff] }
 0x1a5   :  { %6915 = vst [vmem:[#allocation10_spill] sm:$0xff] %v5581_v11  ;;  %v232_v57 = vrot.slane %v6917_v44, %v4129_v10  ;;  %v1508_v51 = vadd.f32 %v1476_v59, %v1264_v52  ;;  %v6925_v7 = vcombine.high %v6924_v32, %v6924_v32  ;;  %v6927_v24 = vcombine.high %v6926_v38, %v6926_v38  ;;  %v6933_v38 = vld [vmem:[#allocation41_spill] sm:$0xff] }
 0x1a6   :  { %v444_v34 = vrot.slane %v6919_v19, %v4129_v10  ;;  %v688_v40 = vrot.slane %v6921_v35, %v4129_v10  ;;  %v932_v28 = vrot.slane %v6923_v58, %v4129_v10  ;;  %v2727_v22 = vadd.f32 %v2695_v47, %v2483_v50  ;;  %v6931_v47 = vld [vmem:[#allocation37_spill] sm:$0xff] }
 0x1a7   :  { %v289_v23 = vmul.f32 %v232_v57, %v6789_v55  ;;  %v1176_v63 = vrot.slane %v6925_v7, %v4129_v10  ;;  %v1420_v39 = vrot.slane %v6927_v24, %v4129_v10  ;;  %v1752_v59 = vadd.f32 %v1720_v17, %v1508_v51  ;;  %v6944_v55 = vld [vmem:[#allocation46_spill] sm:$0xff] }
 0x1a8   :  { %v501_v43 = vmul.f32 %v444_v34, %v6840_v62  ;;  %v745_v44 = vmul.f32 %v688_v40, %v6842_v9  ;;  %v989_v4 = vmul.f32 %v932_v28, %v6845_v36  ;;  %v6930_v35 = vcombine.high %v6929_v33, %v6929_v33  ;;  %v6936_v36 = vld [vmem:[#allocation45_spill] sm:$0xff]  ;;  %v6941_v9 = vld [vmem:[#allocation35_spill] sm:$0xff] }
 0x1a9   :  { %v1233_v52 = vmul.f32 %v1176_v63, %v6846_v0  ;;  %v1477_v19 = vmul.f32 %v1420_v39, %v6928_v1  ;;  %v2971_v58 = vadd.f32 %v2939_v16, %v2727_v22  ;;  %v6932_v50 = vcombine.high %v6931_v47, %v6931_v47  ;;  %v6935_v0 = vld [vmem:[#allocation31_spill] sm:$0xff]  ;;  %v6938_v16 = vld [vmem:[#allocation54_spill] sm:$0xff] }
 0x1aa   :  { %v1664_v56 = vrot.slane %v6930_v35, %v4129_v10  ;;  %v533_v32 = vadd.f32 %v501_v43, %v289_v23  ;;  %v6934_v17 = vcombine.high %v6933_v38, %v6933_v38  ;;  %v1996_v24 = vadd.f32 %v1964_v21, %v1752_v59  ;;  %v6940_v43 = vld [vmem:[#allocation48_spill] sm:$0xff]  ;;  %v6942_v38 = vld [vmem:[#allocation38_spill] sm:$0xff] }
 0x1ab   :  { %v1908_v7 = vrot.slane %v6932_v50, %v4129_v10  ;;  %v6937_v33 = vcombine.high %v6936_v36, %v6936_v36  ;;  %v6939_v23 = vcombine.high %v6938_v16, %v6938_v16  ;;  %v3215_v47 = vadd.f32 %v6940_v43, %v2971_v58  ;;  %v6943_v59 = vld [vmem:[#allocation42_spill] sm:$0xff]  ;;  %v6945_v36 = vld [vmem:[#allocation57_spill] sm:$0xff] }
 0x1ac   :  { %v2152_v51 = vrot.slane %v6934_v17, %v4129_v10  ;;  %v1721_v1 = vmul.f32 %v1664_v56, %v6935_v0  ;;  %v777_v50 = vadd.f32 %v745_v44, %v533_v32  ;;  %v2240_v21 = vadd.f32 %v2208_v3, %v1996_v24  ;;  %v6949_v32 = vld [vmem:[#allocation13_spill] sm:$0xff] }
 0x1ad   :  { %v2396_v35 = vrot.slane %v6937_v33, %v4129_v10  ;;  %v2640_v22 = vrot.slane %v6939_v23, %v4129_v10  ;;  %v1965_v62 = vmul.f32 %v1908_v7, %v6941_v9  ;;  %v6946_v33 = vcombine.high %v6945_v36, %v6945_v36  ;;  %v6947_v23 = vld [vmem:[#allocation60_spill] sm:$0xff] }
 0x1ae   :  { %v2209_v17 = vmul.f32 %v2152_v51, %v6942_v38  ;;  %v3459_v14 = vadd.f32 %v3427_v29, %v3215_v47  ;;  %v1021_v16 = vadd.f32 %v989_v4, %v777_v50  ;;  %v6948_v44 = vcombine.high %v6947_v23, %v6947_v23  ;;  %v6952_v38 = vld [vmem:[#allocation19_spill] sm:$0xff]  ;;  %v6954_v29 = vld [vmem:[#allocation28_spill] sm:$0xff] }
 0x1af   :  { %v2453_v0 = vmul.f32 %v2396_v35, %v6943_v59  ;;  %v2697_v11 = vmul.f32 %v2640_v22, %v6944_v55  ;;  %v2884_v25 = vrot.slane %v6946_v33, %v4129_v10  ;;  %v6950_v3 = vcombine.high %v6949_v32, %v6949_v32  ;;  %v6951_v59 = vld [vmem:[#allocation49_spill] sm:$0xff] }
 0x1b0   :  { %v3128_v58 = vrot.slane %v6948_v44, %v4129_v10  ;;  %v2484_v43 = vadd.f32 %v2452_v41, %v2240_v21  ;;  %v6953_v36 = vcombine.high %v6952_v38, %v6952_v38  ;;  %v6955_v4 = vcombine.high %v6954_v29, %v6954_v29  ;;  %v6956_v44 = vld [vmem:[#allocation52_spill] sm:$0xff] }
 0x1b1   :  { %v3372_v24 = vrot.slane %v6950_v3, %v4129_v10  ;;  %v2941_v55 = vmul.f32 %v2884_v25, %v6951_v59  ;;  %v3703_v50 = vadd.f32 %v5555_v37, %v3459_v14  ;;  %v1265_v23 = vadd.f32 %v1233_v52, %v1021_v16  ;;  %v6957_v16 = vld [vmem:[#allocation23_spill] sm:$0xff] }
 0x1b2   :  { %v3616_v33 = vrot.slane %v6953_v36, %v4129_v10  ;;  %v3860_v47 = vrot.slane %v6955_v4, %v4129_v10  ;;  %v5662_v9 = vmul.f32 %v3128_v58, %v6956_v44  ;;  %v2728_v21 = vadd.f32 %v2696_v54, %v2484_v43 }
 0x1b3   :  { %v5665_v41 = vmul.f32 %v3372_v24, %v6912_v5  ;;  %v290_v3 = vmul.f32 %v232_v57, %v6910_v27  ;;  %v3947_v36 = vadd.f32 %v5558_v20, %v3703_v50  ;;  %v1509_v29 = vadd.f32 %v1477_v19, %v1265_v23  ;;  %v6963_v23 = vld [vmem:[#allocation39_spill] sm:$0xff] }
 0x1b4   :  { %v5668_v32 = vmul.f32 %v3616_v33, %v6865_v2  ;;  %v5671_v38 = vmul.f32 %v3860_v47, %v6866_v26  ;;  %v502_v14 = vmul.f32 %v444_v34, %v6911_v6  ;;  %v746_v37 = vmul.f32 %v688_v40, %v6835_v18 }
 0x1b5   :  { %v2972_v52 = vadd.f32 %v2940_v49, %v2728_v21  ;;  %v990_v4 = vmul.f32 %v932_v28, %v6957_v16  ;;  %v1234_v54 = vmul.f32 %v1176_v63, %v6913_v61  ;;  %v1478_v43 = vmul.f32 %v1420_v39, %v4307_v30  ;;  %3995 = vxpose.xlu1.b32.cont [3/16] (narrow) %v3947_v36, 8  ;;  %v6964_v21 = vld [vmem:[#allocation65_spill] sm:$0xff] }
 0x1b6   :  { %v1753_v2 = vadd.f32 %v1721_v1, %v1509_v29  ;;  %v534_v26 = vadd.f32 %v502_v14, %v290_v3  ;;  %v1722_v5 = vmul.f32 %v1664_v56, %v4342_v45  ;;  %v1966_v57 = vmul.f32 %v1908_v7, %v4377_v31  ;;  %v6958_v7 = vld [vmem:[#allocation62_spill] sm:$0xff] }
 0x1b7   :  { %v3216_v20 = vadd.f32 %v5571_v48, %v2972_v52  ;;  %v2210_v34 = vmul.f32 %v2152_v51, %v4412_v46  ;;  %v2454_v40 = vmul.f32 %v2396_v35, %v4447_v60  ;;  %v5686_v49 = vmul.f32 %v2640_v22, %v4482_v8  ;;  %v6965_v14 = vld [vmem:[#allocation10_spill] sm:$0xff] }
 0x1b8   :  { %v1997_v28 = vadd.f32 %v1965_v62, %v1753_v2  ;;  %v778_v63 = vadd.f32 %v746_v37, %v534_v26  ;;  %v5689_v39 = vmul.f32 %v2884_v25, %v4517_v53  ;;  %v5692_v1 = vmul.f32 %v3128_v58, %v4552_v12  ;;  %v6959_v2 = vld [vmem:[#allocation32_spill] sm:$0xff] }
 0x1b9   :  { %v3460_v19 = vadd.f32 %v5574_v15, %v3216_v20  ;;  %v5696_v56 = vmul.f32 %v3372_v24, %v4587_v42  ;;  %v5699_v48 = vmul.f32 %v3616_v33, %v4622_v13  ;;  %v5702_v51 = vmul.f32 %v3860_v47, %v6958_v7  ;;  %v6960_v25 = vld [vmem:[#allocation36_spill] sm:$0xff] }
 0x1ba   :  { %v2241_v35 = vadd.f32 %v2209_v17, %v1997_v28  ;;  %v1022_v62 = vadd.f32 %v990_v4, %v778_v63  ;;  %v187_v26 = vcombine.high %v6959_v2, %v6959_v2  ;;  %v399_v22 = vcombine.high %v6960_v25, %v6960_v25  ;;  %v6961_v58 = vld [vmem:[#allocation64_spill] sm:$0xff] }
 0x1bb   :  { %v3704_v50 = vadd.f32 %v6961_v58, %v3460_v19  ;;  %v6962_v15 = vld [vmem:[#allocation16_spill] sm:$0xff]  ;;  %v887_v33 = vcombine.high %v6963_v23, %v6963_v23  ;;  %v1131_v47 = vcombine.high %v6964_v21, %v6964_v21  ;;  %v6972_v23 = vld [vmem:[#allocation47_spill] sm:$0xff] }
 0x1bc   :  { %v643_v24 = vcombine.high %v6962_v15, %v6962_v15  ;;  %v2485_v3 = vadd.f32 %v2453_v0, %v2241_v35  ;;  %v1266_v17 = vadd.f32 %v1234_v54, %v1022_v62  ;;  %v5716_v36 = vrot.slane %v187_v26, %v4129_v10  ;;  %v6966_v54 = vld [vmem:[#allocation9_spill] sm:$0xff]  ;;  %v6967_v19 = vld [vmem:[#allocation12_spill] sm:$0xff]  ;;  %v6968_v62 = vld [vmem:[#allocation18_spill] sm:$0xff] }
 0x1bd   :  { %v5719_v29 = vrot.slane %v399_v22, %v4129_v10  ;;  %v3948_v37 = vadd.f32 %v6965_v14, %v3704_v50  ;;  %v5726_v4 = vrot.slane %v887_v33, %v4129_v10  ;;  %v5729_v20 = vrot.slane %v1131_v47, %v4129_v10  ;;  %v6969_v26 = vld [vmem:[#allocation21_spill] sm:$0xff]  ;;  %v6970_v22 = vld [vmem:[#allocation24_spill] sm:$0xff]  ;;  %v6971_v50 = vld [vmem:[#allocation43_spill] sm:$0xff] }
 0x1be   :  { %v5723_v52 = vrot.slane %v643_v24, %v4129_v10  ;;  %v2729_v28 = vadd.f32 %v2697_v11, %v2485_v3  ;;  %v1510_v0 = vadd.f32 %v1478_v43, %v1266_v17  ;;  %v291_v63 = vmul.f32 %v5716_v36, %v6966_v54  ;;  %v6973_v47 = vld [vmem:[#allocation50_spill] sm:$0xff]  ;;  %v6974_v17 = vld [vmem:[#allocation53_spill] sm:$0xff] }
 0x1bf   :  { %v503_v35 = vmul.f32 %v5719_v29, %v6967_v19  ;;  %3996 = vxpose.xlu1.b32.cont [4/16] (narrow) %v3948_v37, 8  ;;  %v991_v25 = vmul.f32 %v5726_v4, %v6969_v26  ;;  %v1235_v58 = vmul.f32 %v5729_v20, %v6970_v22  ;;  %v1375_v11 = vcombine.high %v6971_v50, %v6971_v50  ;;  %v6975_v37 = vld [vmem:[#allocation56_spill] sm:$0xff]  ;;  %v6978_v19 = vld [vmem:[#allocation35_spill] sm:$0xff] }
 0x1c0   :  { %v747_v2 = vmul.f32 %v5723_v52, %v6968_v62  ;;  %v2973_v43 = vadd.f32 %v2941_v55, %v2729_v28  ;;  %v1754_v15 = vadd.f32 %v1722_v5, %v1510_v0  ;;  %v1619_v33 = vcombine.high %v6972_v23, %v6972_v23  ;;  %v6976_v28 = vld [vmem:[#allocation27_spill] sm:$0xff] }
 0x1c1   :  { %v535_v24 = vadd.f32 %v503_v35, %v291_v63  ;;  %v1424_v21 = vrot.slane %v1375_v11, %v4129_v10  ;;  %v1863_v3 = vcombine.high %v6973_v47, %v6973_v47  ;;  %v2107_v14 = vcombine.high %v6974_v17, %v6974_v17  ;;  %v6977_v62 = vld [vmem:[#allocation31_spill] sm:$0xff] }
 0x1c2   :  { %v2351_v22 = vcombine.high %v6975_v37, %v6975_v37  ;;  %v3217_v26 = vadd.f32 %v5662_v9, %v2973_v43  ;;  %v1998_v50 = vadd.f32 %v1966_v57, %v1754_v15  ;;  %v1668_v5 = vrot.slane %v1619_v33, %v4129_v10  ;;  %v6979_v57 = vld [vmem:[#allocation38_spill] sm:$0xff] }
 0x1c3   :  { %v779_v55 = vadd.f32 %v747_v2, %v535_v24  ;;  %v1479_v0 = vmul.f32 %v1424_v21, %v6976_v28  ;;  %v1912_v63 = vrot.slane %v1863_v3, %v4129_v10  ;;  %v2156_v35 = vrot.slane %v2107_v14, %v4129_v10  ;;  %v6980_v43 = vld [vmem:[#allocation42_spill] sm:$0xff]  ;;  %v6981_v24 = vld [vmem:[#allocation59_spill] sm:$0xff] }
 0x1c4   :  { %v2400_v11 = vrot.slane %v2351_v22, %v4129_v10  ;;  %v3461_v23 = vadd.f32 %v5665_v41, %v3217_v26  ;;  %v2242_v47 = vadd.f32 %v2210_v34, %v1998_v50  ;;  %v1723_v37 = vmul.f32 %v1668_v5, %v6977_v62  ;;  %v6982_v22 = vld [vmem:[#allocation66_spill] sm:$0xff]  ;;  %v6983_v26 = vld [vmem:[#allocation67_spill] sm:$0xff]  ;;  %v6984_v50 = vld [vmem:[#allocation20_spill] sm:$0xff] }
 0x1c5   :  { %v1023_v17 = vadd.f32 %v991_v25, %v779_v55  ;;  %v1967_v9 = vmul.f32 %v1912_v63, %v6978_v19  ;;  %v2211_v2 = vmul.f32 %v2156_v35, %v6979_v57  ;;  %v2595_v33 = vcombine.high %v6981_v24, %v6981_v24  ;;  %v6985_v57 = vld [vmem:[#allocation51_spill] sm:$0xff] }
 0x1c6   :  { %v2455_v15 = vmul.f32 %v2400_v11, %v6980_v43  ;;  %v3705_v3 = vadd.f32 %v5668_v32, %v3461_v23  ;;  %v2486_v14 = vadd.f32 %v2454_v40, %v2242_v47  ;;  %v2839_v41 = vcombine.high %v6982_v22, %v6982_v22  ;;  %v6986_v23 = vld [vmem:[#allocation46_spill] sm:$0xff] }
 0x1c7   :  { %v1267_v28 = vadd.f32 %v1235_v58, %v1023_v17  ;;  %v2644_v34 = vrot.slane %v2595_v33, %v4129_v10  ;;  %v3083_v25 = vcombine.high %v6983_v26, %v6983_v26  ;;  %v3327_v55 = vcombine.high %v6984_v50, %v6984_v50 }
 0x1c8   :  { %v3571_v43 = vcombine.high %v6985_v57, %v6985_v57  ;;  %v3949_v24 = vadd.f32 %v5671_v38, %v3705_v3  ;;  %v2730_v32 = vadd.f32 %v5686_v49, %v2486_v14  ;;  %v2888_v58 = vrot.slane %v2839_v41, %v4129_v10  ;;  %v6987_v38 = vld [vmem:[#allocation63_spill] sm:$0xff]  ;;  %v6989_v14 = vld [vmem:[#allocation58_spill] sm:$0xff] }
 0x1c9   :  { %v1511_v40 = vadd.f32 %v1479_v0, %v1267_v28  ;;  %v2699_v47 = vmul.f32 %v2644_v34, %v6986_v23  ;;  %v3132_v17 = vrot.slane %v3083_v25, %v4129_v10  ;;  %v3376_v33 = vrot.slane %v3327_v55, %v4129_v10  ;;  %v6988_v0 = vld [vmem:[#allocation55_spill] sm:$0xff] }
 0x1ca   :  { %v3620_v22 = vrot.slane %v3571_v43, %v4129_v10  ;;  %3997 = vxpose.xlu1.b32.cont [5/16] (narrow) %v3949_v24, 8  ;;  %v2974_v26 = vadd.f32 %v5689_v39, %v2730_v32  ;;  %v2943_v57 = vmul.f32 %v2888_v58, %v6951_v59  ;;  %v3815_v49 = vcombine.high %v6987_v38, %v6987_v38 }
 0x1cb   :  { %v1755_v50 = vadd.f32 %v1723_v37, %v1511_v40  ;;  %v3187_v28 = vmul.f32 %v3132_v17, %v6956_v44  ;;  %v3431_v3 = vmul.f32 %v3376_v33, %v6988_v0  ;;  %v292_v25 = vmul.f32 %v5716_v36, %v6910_v27 }
 0x1cc   :  { %v3675_v41 = vmul.f32 %v3620_v22, %v6989_v14  ;;  %v3218_v43 = vadd.f32 %v5692_v1, %v2974_v26  ;;  %v3864_v39 = vrot.slane %v3815_v49, %v4129_v10  ;;  %v504_v37 = vmul.f32 %v5719_v29, %v6911_v6 }
 0x1cd   :  { %v1999_v55 = vadd.f32 %v1967_v9, %v1755_v50  ;;  %v748_v24 = vmul.f32 %v5723_v52, %v6835_v18  ;;  %v992_v32 = vmul.f32 %v5726_v4, %v6957_v16  ;;  %v1236_v40 = vmul.f32 %v5729_v20, %v6913_v61  ;;  %v6990_v9 = vld [vmem:[#allocation61_spill] sm:$0xff] }
 0x1ce   :  { %v1480_v38 = vmul.f32 %v1424_v21, %v4307_v30  ;;  %v3462_v36 = vadd.f32 %v5696_v56, %v3218_v43  ;;  %v3919_v26 = vmul.f32 %v3864_v39, %v6990_v9  ;;  %v536_v50 = vadd.f32 %v504_v37, %v292_v25  ;;  %v6991_v25 = vld [vmem:[#allocation8_spill] sm:$0xff] }
 0x1cf   :  { %v2243_v1 = vadd.f32 %v2211_v2, %v1999_v55  ;;  %v1724_v49 = vmul.f32 %v1668_v5, %v4342_v45  ;;  %v1968_v29 = vmul.f32 %v1912_v63, %v4377_v31  ;;  %v2212_v52 = vmul.f32 %v2156_v35, %v4412_v46 }
 0x1d0   :  { %v2456_v14 = vmul.f32 %v2400_v11, %v4447_v60  ;;  %v3706_v4 = vadd.f32 %v5699_v48, %v3462_v36  ;;  %v780_v20 = vadd.f32 %v748_v24, %v536_v50  ;;  %v5810_v21 = vmul.f32 %v2644_v34, %v4482_v8 }
 0x1d1   :  { %v2487_v0 = vadd.f32 %v2455_v15, %v2243_v1  ;;  %v5813_v56 = vmul.f32 %v2888_v58, %v4517_v53  ;;  %v5816_v2 = vmul.f32 %v3132_v17, %v4552_v12  ;;  %v5819_v5 = vmul.f32 %v3376_v33, %v4587_v42 }
 0x1d2   :  { %v5822_v63 = vmul.f32 %v3620_v22, %v4622_v13  ;;  %v3950_v35 = vadd.f32 %v5702_v51, %v3706_v4  ;;  %v1024_v11 = vadd.f32 %v992_v32, %v780_v20  ;;  %v5826_v15 = vmul.f32 %v3864_v39, %v6958_v7 }
 0x1d3   :  { %v2731_v48 = vadd.f32 %v2699_v47, %v2487_v0  ;;  %v140_v34 = vcombine.high %v6910_v27, %v6910_v27  ;;  %v352_v58 = vcombine.high %v6911_v6, %v6911_v6  ;;  %v596_v17 = vcombine.high %v6835_v18, %v6835_v18 }
 0x1d4   :  { %v840_v33 = vcombine.high %v6957_v16, %v6957_v16  ;;  %3998 = vxpose.xlu1.b32.cont [6/16] (narrow) %v3950_v35, 8  ;;  %v1268_v51 = vadd.f32 %v1236_v40, %v1024_v11  ;;  %v1084_v47 = vcombine.high %v6913_v61, %v6913_v61  ;;  %v1328_v0 = vcombine.high %v4307_v30, %v4307_v30 }
 0x1d5   :  { %v2975_v22 = vadd.f32 %v2943_v57, %v2731_v48  ;;  %v5841_v43 = vrot.slane %v140_v34, %v6991_v25  ;;  %v5844_v55 = vrot.slane %v352_v58, %v6991_v25  ;;  %v5847_v39 = vrot.slane %v596_v17, %v6991_v25 }
 0x1d6   :  { %v5850_v37 = vrot.slane %v840_v33, %v6991_v25  ;;  %v1512_v24 = vadd.f32 %v1480_v38, %v1268_v51  ;;  %v5853_v32 = vrot.slane %v1084_v47, %v6991_v25  ;;  %v5856_v40 = vrot.slane %v1328_v0, %v6991_v25  ;;  %v6998_v51 = vld [vmem:[#allocation12_spill] sm:$0xff]  ;;  %v6999_v0 = vld [vmem:[#allocation18_spill] sm:$0xff] }
 0x1d7   :  { %v3219_v57 = vadd.f32 %v3187_v28, %v2975_v22  ;;  %v5860_v36 = vrot.slane %v5841_v43, %v6991_v25  ;;  %v5864_v1 = vrot.slane %v5844_v55, %v6991_v25  ;;  %v5868_v50 = vrot.slane %v5847_v39, %v6991_v25 }
 0x1d8   :  { %v5872_v28 = vrot.slane %v5850_v37, %v6991_v25  ;;  %v1756_v4 = vadd.f32 %v1724_v49, %v1512_v24  ;;  %v5876_v20 = vrot.slane %v5853_v32, %v6991_v25  ;;  %v5880_v35 = vrot.slane %v5856_v40, %v6991_v25  ;;  %v7000_v24 = vld [vmem:[#allocation21_spill] sm:$0xff] }
 0x1d9   :  { %6992 = vst [vmem:[#allocation14_spill] sm:$0xff] %v5860_v36  ;;  %6993 = vst [vmem:[#allocation25_spill] sm:$0xff] %v5864_v1  ;;  %v3463_v38 = vadd.f32 %v3431_v3, %v3219_v57  ;;  %v5884_v48 = vrot.slane %v5860_v36, %v4129_v10  ;;  %v5888_v11 = vrot.slane %v5864_v1, %v4129_v10 }
 0x1da   :  { %6994 = vst [vmem:[#allocation17_spill] sm:$0xff] %v5868_v50  ;;  %6995 = vst [vmem:[#allocation11_spill] sm:$0xff] %v5872_v28  ;;  %v5892_v3 = vrot.slane %v5868_v50, %v4129_v10  ;;  %v5896_v49 = vrot.slane %v5872_v28, %v4129_v10  ;;  %v2000_v58 = vadd.f32 %v1968_v29, %v1756_v4  ;;  %v7001_v4 = vld [vmem:[#allocation24_spill] sm:$0xff]  ;;  %v7002_v28 = vld [vmem:[#allocation27_spill] sm:$0xff] }
 0x1db   :  { %6996 = vst [vmem:[#allocation15_spill] sm:$0xff] %v5876_v20  ;;  %6997 = vst [vmem:[#allocation22_spill] sm:$0xff] %v5880_v35  ;;  %v3707_v34 = vadd.f32 %v3675_v41, %v3463_v38  ;;  %v5900_v17 = vrot.slane %v5876_v20, %v4129_v10  ;;  %v5904_v33 = vrot.slane %v5880_v35, %v4129_v10 }
 0x1dc   :  { %v293_v22 = vmul.f32 %v5884_v48, %v6966_v54  ;;  %v505_v47 = vmul.f32 %v5888_v11, %v6998_v51  ;;  %v749_v57 = vmul.f32 %v5892_v3, %v6999_v0  ;;  %v993_v41 = vmul.f32 %v5896_v49, %v7000_v24 }
 0x1dd   :  { %v3951_v29 = vadd.f32 %v3919_v26, %v3707_v34  ;;  %v2244_v38 = vadd.f32 %v2212_v52, %v2000_v58  ;;  %v1237_v20 = vmul.f32 %v5900_v17, %v7001_v4  ;;  %v1481_v35 = vmul.f32 %v5904_v33, %v7002_v28 }
 0x1de   :  { %v537_v50 = vadd.f32 %v505_v47, %v293_v22  ;;  %v1572_v1 = vcombine.high %v4342_v45, %v4342_v45  ;;  %v1816_v36 = vcombine.high %v4377_v31, %v4377_v31  ;;  %v2060_v0 = vcombine.high %v4412_v46, %v4412_v46 }
 0x1df   :  { %3999 = vxpose.xlu1.b32.cont [7/16] (narrow) %v3951_v29, 8  ;;  %v2488_v24 = vadd.f32 %v2456_v14, %v2244_v38  ;;  %v2304_v26 = vcombine.high %v4447_v60, %v4447_v60  ;;  %v2548_v52 = vcombine.high %v4482_v8, %v4482_v8  ;;  %v2792_v34 = vcombine.high %v4517_v53, %v4517_v53 }
 0x1e0   :  { %v781_v58 = vadd.f32 %v749_v57, %v537_v50  ;;  %v5931_v22 = vrot.slane %v1572_v1, %v6991_v25  ;;  %v5934_v47 = vrot.slane %v1816_v36, %v6991_v25  ;;  %v5937_v28 = vrot.slane %v2060_v0, %v6991_v25 }
 0x1e1   :  { %v2732_v14 = vadd.f32 %v5810_v21, %v2488_v24  ;;  %v5941_v29 = vrot.slane %v2304_v26, %v6991_v25  ;;  %v5944_v38 = vrot.slane %v2548_v52, %v6991_v25  ;;  %v5947_v4 = vrot.slane %v2792_v34, %v6991_v25 }
 0x1e2   :  { %7003 = vst [vmem:[#allocation26_spill] sm:$0xff] %v5934_v47  ;;  %7004 = vst [vmem:[#allocation30_spill] sm:$0xff] %v5937_v28  ;;  %v1025_v50 = vadd.f32 %v993_v41, %v781_v58  ;;  %v5951_v1 = vrot.slane %v5931_v22, %v6991_v25  ;;  %v5955_v36 = vrot.slane %v5934_v47, %v6991_v25 }
 0x1e3   :  { %7005 = vst [vmem:[#allocation34_spill] sm:$0xff] %v5941_v29  ;;  %7006 = vst [vmem:[#allocation37_spill] sm:$0xff] %v5944_v38  ;;  %v5959_v21 = vrot.slane %v5937_v28, %v6991_v25  ;;  %v2976_v0 = vadd.f32 %v5813_v56, %v2732_v14  ;;  %v5964_v57 = vrot.slane %v5941_v29, %v6991_v25  ;;  %v7015_v28 = vld [vmem:[#allocation42_spill] sm:$0xff] }
 0x1e4   :  { %7007 = vst [vmem:[#allocation41_spill] sm:$0xff] %v5947_v4  ;;  %7008 = vst [vmem:[#allocation45_spill] sm:$0xff] %v5951_v1  ;;  %v5968_v24 = vrot.slane %v5944_v38, %v6991_v25  ;;  %v5972_v41 = vrot.slane %v5947_v4, %v6991_v25  ;;  %v1269_v26 = vadd.f32 %v1237_v20, %v1025_v50 }
 0x1e5   :  { %7009 = vst [vmem:[#allocation54_spill] sm:$0xff] %v5955_v36  ;;  %7010 = vst [vmem:[#allocation48_spill] sm:$0xff] %v5959_v21  ;;  %v1672_v52 = vrot.slane %v5951_v1, %v4129_v10  ;;  %v1916_v34 = vrot.slane %v5955_v36, %v4129_v10  ;;  %v2160_v56 = vrot.slane %v5959_v21, %v4129_v10  ;;  %v7014_v36 = vld [vmem:[#allocation38_spill] sm:$0xff] }
 0x1e6   :  { %7011 = vst [vmem:[#allocation57_spill] sm:$0xff] %v5964_v57  ;;  %7012 = vst [vmem:[#allocation60_spill] sm:$0xff] %v5968_v24  ;;  %v3220_v58 = vadd.f32 %v5816_v2, %v2976_v0  ;;  %v2404_v14 = vrot.slane %v5964_v57, %v4129_v10  ;;  %v2648_v38 = vrot.slane %v5968_v24, %v4129_v10 }
 0x1e7   :  { %7013 = vst [vmem:[#allocation13_spill] sm:$0xff] %v5972_v41  ;;  %v2892_v20 = vrot.slane %v5972_v41, %v4129_v10  ;;  %v1513_v50 = vadd.f32 %v1481_v35, %v1269_v26  ;;  %v1725_v1 = vmul.f32 %v1672_v52, %v6977_v62  ;;  %v1969_v4 = vmul.f32 %v1916_v34, %v6978_v19 }
 0x1e8   :  { %v2213_v29 = vmul.f32 %v2160_v56, %v7014_v36  ;;  %v3464_v21 = vadd.f32 %v5819_v5, %v3220_v58  ;;  %v2457_v2 = vmul.f32 %v2404_v14, %v7015_v28  ;;  %v2701_v0 = vmul.f32 %v2648_v38, %v6986_v23 }
 0x1e9   :  { %v2945_v57 = vmul.f32 %v2892_v20, %v6951_v59  ;;  %v1757_v47 = vadd.f32 %v1725_v1, %v1513_v50  ;;  %v3036_v24 = vcombine.high %v4552_v12, %v4552_v12  ;;  %v3280_v35 = vcombine.high %v4587_v42, %v4587_v42 }
 0x1ea   :  { %v3524_v26 = vcombine.high %v4622_v13, %v4622_v13  ;;  %v3708_v41 = vadd.f32 %v5822_v63, %v3464_v21  ;;  %v3768_v5 = vcombine.high %v6958_v7, %v6958_v7  ;;  %v294_v58 = vmul.f32 %v5884_v48, %v6910_v27 }
 0x1eb   :  { %v506_v1 = vmul.f32 %v5888_v11, %v6911_v6  ;;  %v2001_v50 = vadd.f32 %v1969_v4, %v1757_v47  ;;  %v6008_v59 = vrot.slane %v3036_v24, %v6991_v25  ;;  %v6011_v23 = vrot.slane %v3280_v35, %v6991_v25 }
 0x1ec   :  { %v6014_v28 = vrot.slane %v3524_v26, %v6991_v25  ;;  %v3952_v63 = vadd.f32 %v5826_v15, %v3708_v41  ;;  %v6018_v21 = vrot.slane %v3768_v5, %v6991_v25  ;;  %v750_v48 = vmul.f32 %v5892_v3, %v6835_v18 }
 0x1ed   :  { %v538_v36 = vadd.f32 %v506_v1, %v294_v58  ;;  %v2245_v11 = vadd.f32 %v2213_v29, %v2001_v50  ;;  %v6024_v4 = vrot.slane %v6008_v59, %v6991_v25  ;;  %v6028_v47 = vrot.slane %v6011_v23, %v6991_v25 }
 0x1ee   :  { %v6032_v24 = vrot.slane %v6014_v28, %v6991_v25  ;;  %4000 = vxpose.xlu1.b32.cont [8/16] (narrow) %v3952_v63, 8  ;;  %v6036_v15 = vrot.slane %v6018_v21, %v6991_v25  ;;  %v994_v3 = vmul.f32 %v5896_v49, %v6957_v16  ;;  %v1238_v29 = vmul.f32 %v5900_v17, %v6913_v61  ;;  %v7020_v63 = vld [vmem:[#allocation55_spill] sm:$0xff] }
 0x1ef   :  { %7016 = vst [vmem:[#allocation19_spill] sm:$0xff] %v6024_v4  ;;  %7017 = vst [vmem:[#allocation28_spill] sm:$0xff] %v6028_v47  ;;  %v782_v41 = vadd.f32 %v750_v48, %v538_v36  ;;  %v2489_v35 = vadd.f32 %v2457_v2, %v2245_v11  ;;  %v3136_v26 = vrot.slane %v6024_v4, %v4129_v10  ;;  %v7021_v11 = vld [vmem:[#allocation58_spill] sm:$0xff] }
 0x1f0   :  { %7018 = vst [vmem:[#allocation52_spill] sm:$0xff] %v6032_v24  ;;  %7019 = vst [vmem:[#allocation23_spill] sm:$0xff] %v6036_v15  ;;  %v3380_v5 = vrot.slane %v6028_v47, %v4129_v10  ;;  %v6048_v58 = vrot.slane %v6032_v24, %v4129_v10  ;;  %v6052_v36 = vrot.slane %v6036_v15, %v4129_v10 }
 0x1f1   :  { %v1026_v1 = vadd.f32 %v994_v3, %v782_v41  ;;  %v1482_v49 = vmul.f32 %v5904_v33, %v4307_v30  ;;  %v2733_v17 = vadd.f32 %v2701_v0, %v2489_v35  ;;  %v3189_v2 = vmul.f32 %v3136_v26, %v6956_v44 }
 0x1f2   :  { %v1726_v50 = vmul.f32 %v1672_v52, %v4342_v45  ;;  %v3433_v48 = vmul.f32 %v3380_v5, %v7020_v63  ;;  %v3677_v47 = vmul.f32 %v6048_v58, %v7021_v11  ;;  %v3921_v24 = vmul.f32 %v6052_v36, %v6990_v9 }
 0x1f3   :  { %v1270_v4 = vadd.f32 %v1238_v29, %v1026_v1  ;;  %v2977_v15 = vadd.f32 %v2945_v57, %v2733_v17  ;;  %v1970_v41 = vmul.f32 %v1916_v34, %v4377_v31  ;;  %v2214_v3 = vmul.f32 %v2160_v56, %v4412_v46 }
 0x1f4   :  { %v2458_v33 = vmul.f32 %v2404_v14, %v4447_v60  ;;  %v2702_v35 = vmul.f32 %v2648_v38, %v4482_v8  ;;  %v2946_v52 = vmul.f32 %v2892_v20, %v4517_v53  ;;  %v3190_v45 = vmul.f32 %v3136_v26, %v4552_v12 }
 0x1f5   :  { %v1514_v0 = vadd.f32 %v1482_v49, %v1270_v4  ;;  %v3221_v63 = vadd.f32 %v3189_v2, %v2977_v15  ;;  %v3434_v11 = vmul.f32 %v3380_v5, %v4587_v42  ;;  %v156_v29 = vcombine.high %v5841_v43, %v5841_v43 }
 0x1f6   :  { %v368_v57 = vcombine.high %v5844_v55, %v5844_v55  ;;  %v612_v56 = vcombine.high %v5847_v39, %v5847_v39  ;;  %v856_v38 = vcombine.high %v5850_v37, %v5850_v37  ;;  %v1100_v14 = vcombine.high %v5853_v32, %v5853_v32 }
 0x1f7   :  { %v1758_v34 = vadd.f32 %v1726_v50, %v1514_v0  ;;  %v3465_v20 = vadd.f32 %v3433_v48, %v3221_v63  ;;  %v6081_v4 = vrot.slane %v156_v29, %v6991_v25  ;;  %v1344_v43 = vcombine.high %v5856_v40, %v5856_v40  ;;  %v7028_v0 = vld [vmem:[#allocation18_spill] sm:$0xff] }
 0x1f8   :  { %v6084_v15 = vrot.slane %v368_v57, %v6991_v25  ;;  %v6089_v26 = vrot.slane %v612_v56, %v6991_v25  ;;  %v6092_v39 = vrot.slane %v856_v38, %v6991_v25  ;;  %v6095_v37 = vrot.slane %v1100_v14, %v6991_v25  ;;  %v7029_v57 = vld [vmem:[#allocation21_spill] sm:$0xff]  ;;  %v7030_v56 = vld [vmem:[#allocation24_spill] sm:$0xff] }
 0x1f9   :  { %7022 = vst [vmem:[#allocation62_spill] sm:$0xff] %v6081_v4  ;;  %v2002_v55 = vadd.f32 %v1970_v41, %v1758_v34  ;;  %v3709_v32 = vadd.f32 %v3677_v47, %v3465_v20  ;;  %v244_v5 = vrot.slane %v6081_v4, %v4129_v10  ;;  %v6102_v49 = vrot.slane %v1344_v43, %v6991_v25 }
 0x1fa   :  { %7023 = vst [vmem:[#allocation32_spill] sm:$0xff] %v6084_v15  ;;  %7024 = vst [vmem:[#allocation36_spill] sm:$0xff] %v6089_v26  ;;  %v456_v1 = vrot.slane %v6084_v15, %v4129_v10  ;;  %v700_v17 = vrot.slane %v6089_v26, %v4129_v10  ;;  %v6108_v2 = vrot.slane %v6092_v39, %v4129_v10  ;;  %v7035_v26 = vld [vmem:[#allocation37_spill] sm:$0xff] }
 0x1fb   :  { %7025 = vst [vmem:[#allocation64_spill] sm:$0xff] %v6092_v39  ;;  %7026 = vst [vmem:[#allocation16_spill] sm:$0xff] %v6095_v37  ;;  %v2246_v40 = vadd.f32 %v2214_v3, %v2002_v55  ;;  %v6112_v47 = vrot.slane %v6095_v37, %v4129_v10  ;;  %v3953_v50 = vadd.f32 %v3921_v24, %v3709_v32  ;;  %v7031_v24 = vld [vmem:[#allocation27_spill] sm:$0xff]  ;;  %v7032_v55 = vld [vmem:[#allocation26_spill] sm:$0xff] }
 0x1fc   :  { %7027 = vst [vmem:[#allocation39_spill] sm:$0xff] %v6102_v49  ;;  %v295_v63 = vmul.f32 %v244_v5, %v6966_v54  ;;  %v507_v48 = vmul.f32 %v456_v1, %v6998_v51  ;;  %v6118_v41 = vrot.slane %v6102_v49, %v4129_v10  ;;  %v751_v29 = vmul.f32 %v700_v17, %v7028_v0  ;;  %v7034_v37 = vld [vmem:[#allocation34_spill] sm:$0xff] }
 0x1fd   :  { %v2490_v3 = vadd.f32 %v2458_v33, %v2246_v40  ;;  %v995_v34 = vmul.f32 %v6108_v2, %v7029_v57  ;;  %v1239_v38 = vmul.f32 %v6112_v47, %v7030_v56  ;;  %4001 = vxpose.xlu1.b32.cont [9/16] (narrow) %v3953_v50, 8  ;;  %v1588_v43 = vcombine.high %v5931_v22, %v5931_v22  ;;  %v7033_v40 = vld [vmem:[#allocation30_spill] sm:$0xff]  ;;  %v7038_v22 = vld [vmem:[#allocation41_spill] sm:$0xff] }
 0x1fe   :  { %v539_v14 = vadd.f32 %v507_v48, %v295_v63  ;;  %v1483_v20 = vmul.f32 %v6118_v41, %v7031_v24  ;;  %v1832_v32 = vcombine.high %v7032_v55, %v7032_v55  ;;  %v2076_v49 = vcombine.high %v7033_v40, %v7033_v40 }
 0x1ff   :  { %v2734_v33 = vadd.f32 %v2702_v35, %v2490_v3  ;;  %v2320_v39 = vcombine.high %v7034_v37, %v7034_v37  ;;  %v2564_v50 = vcombine.high %v7035_v26, %v7035_v26  ;;  %v6138_v48 = vrot.slane %v1588_v43, %v6991_v25 }
 0x200   :  { %v783_v63 = vadd.f32 %v751_v29, %v539_v14  ;;  %v6141_v15 = vrot.slane %v1832_v32, %v6991_v25  ;;  %v2808_v55 = vcombine.high %v7038_v22, %v7038_v22  ;;  %v6146_v3 = vrot.slane %v2076_v49, %v6991_v25 }
 0x201   :  { %7036 = vst [vmem:[#allocation65_spill] sm:$0xff] %v6138_v48  ;;  %v2978_v35 = vadd.f32 %v2946_v52, %v2734_v33  ;;  %v6149_v40 = vrot.slane %v2320_v39, %v6991_v25  ;;  %v6152_v37 = vrot.slane %v2564_v50, %v6991_v25  ;;  %v1676_v29 = vrot.slane %v6138_v48, %v4129_v10  ;;  %v7056_v48 = vld [vmem:[#allocation17_spill] sm:$0xff] }
 0x202   :  { %7037 = vst [vmem:[#allocation10_spill] sm:$0xff] %v6141_v15  ;;  %7039 = vst [vmem:[#allocation9_spill] sm:$0xff] %v6146_v3  ;;  %v1027_v26 = vadd.f32 %v995_v34, %v783_v63  ;;  %v1920_v14 = vrot.slane %v6141_v15, %v4129_v10  ;;  %v6159_v43 = vrot.slane %v2808_v55, %v6991_v25 }
 0x203   :  { %7040 = vst [vmem:[#allocation43_spill] sm:$0xff] %v6149_v40  ;;  %7041 = vst [vmem:[#allocation47_spill] sm:$0xff] %v6152_v37  ;;  %v3222_v52 = vadd.f32 %v3190_v45, %v2978_v35  ;;  %v3678_v49 = vmul.f32 %v6048_v58, %v4622_v13  ;;  %v2164_v39 = vrot.slane %v6146_v3, %v4129_v10  ;;  %v7043_v35 = vld [vmem:[#allocation38_spill] sm:$0xff] }
 0x204   :  { %7042 = vst [vmem:[#allocation50_spill] sm:$0xff] %v6159_v43  ;;  %v3922_v32 = vmul.f32 %v6052_v36, %v6958_v7  ;;  %v1271_v34 = vadd.f32 %v1239_v38, %v1027_v26  ;;  %v1727_v33 = vmul.f32 %v1676_v29, %v6977_v62  ;;  %v2408_v50 = vrot.slane %v6149_v40, %v4129_v10 }
 0x205   :  { %v3466_v63 = vadd.f32 %v3434_v11, %v3222_v52  ;;  %v1971_v22 = vmul.f32 %v1920_v14, %v6978_v19  ;;  %v6173_v45 = vrot.slane %v6152_v37, %v4129_v10  ;;  %v6177_v58 = vrot.slane %v6159_v43, %v4129_v10 }
 0x206   :  { %v1515_v55 = vadd.f32 %v1483_v20, %v1271_v34  ;;  %v2215_v36 = vmul.f32 %v2164_v39, %v7043_v35  ;;  %v3052_v38 = vcombine.high %v6008_v59, %v6008_v59  ;;  %v3296_v26 = vcombine.high %v6011_v23, %v6011_v23 }
 0x207   :  { %v3710_v11 = vadd.f32 %v3678_v49, %v3466_v63  ;;  %v3540_v52 = vcombine.high %v6014_v28, %v6014_v28  ;;  %v3784_v37 = vcombine.high %v6018_v21, %v6018_v21  ;;  %v296_v40 = vmul.f32 %v244_v5, %v6910_v27  ;;  %v7048_v5 = vld [vmem:[#allocation42_spill] sm:$0xff] }
 0x208   :  { %v1759_v43 = vadd.f32 %v1727_v33, %v1515_v55  ;;  %v6190_v20 = vrot.slane %v3052_v38, %v6991_v25  ;;  %v6193_v34 = vrot.slane %v3296_v26, %v6991_v25  ;;  %v508_v59 = vmul.f32 %v456_v1, %v6911_v6  ;;  %v7050_v26 = vld [vmem:[#allocation49_spill] sm:$0xff] }
 0x209   :  { %v3954_v3 = vadd.f32 %v3922_v32, %v3710_v11  ;;  %v6197_v23 = vrot.slane %v3540_v52, %v6991_v25  ;;  %v6200_v28 = vrot.slane %v3784_v37, %v6991_v25  ;;  %v752_v21 = vmul.f32 %v700_v17, %v6835_v18 }
 0x20a   :  { %7044 = vst [vmem:[#allocation53_spill] sm:$0xff] %v6190_v20  ;;  %7045 = vst [vmem:[#allocation56_spill] sm:$0xff] %v6193_v34  ;;  %v2003_v49 = vadd.f32 %v1971_v22, %v1759_v43  ;;  %v2459_v33 = vmul.f32 %v2408_v50, %v7048_v5  ;;  %v3140_v63 = vrot.slane %v6190_v20, %v4129_v10  ;;  %v7049_v43 = vld [vmem:[#allocation46_spill] sm:$0xff]  ;;  %v7055_v20 = vld [vmem:[#allocation25_spill] sm:$0xff] }
 0x20b   :  { %7046 = vst [vmem:[#allocation31_spill] sm:$0xff] %v6197_v23  ;;  %7047 = vst [vmem:[#allocation35_spill] sm:$0xff] %v6200_v28  ;;  %v540_v55 = vadd.f32 %v508_v59, %v296_v40  ;;  %4002 = vxpose.xlu1.b32.cont [10/16] (narrow) %v3954_v3, 8  ;;  %v3384_v1 = vrot.slane %v6193_v34, %v4129_v10  ;;  %v6210_v32 = vrot.slane %v6197_v23, %v4129_v10  ;;  %v7051_v23 = vld [vmem:[#allocation55_spill] sm:$0xff] }
 0x20c   :  { %v6214_v25 = vrot.slane %v6200_v28, %v4129_v10  ;;  %v996_v17 = vmul.f32 %v6108_v2, %v6957_v16  ;;  %v2247_v37 = vadd.f32 %v2215_v36, %v2003_v49  ;;  %v2703_v22 = vmul.f32 %v6173_v45, %v7049_v43  ;;  %v7052_v36 = vld [vmem:[#allocation58_spill] sm:$0xff] }
 0x20d   :  { %v784_v40 = vadd.f32 %v752_v21, %v540_v55  ;;  %v1240_v3 = vmul.f32 %v6112_v47, %v6913_v61  ;;  %v2947_v11 = vmul.f32 %v6177_v58, %v7050_v26  ;;  %v1484_v59 = vmul.f32 %v6118_v41, %v4307_v30 }
 0x20e   :  { %v2491_v38 = vadd.f32 %v2459_v33, %v2247_v37  ;;  %v3191_v28 = vmul.f32 %v3140_v63, %v6956_v44  ;;  %v3435_v2 = vmul.f32 %v3384_v1, %v7051_v23  ;;  %v3679_v49 = vmul.f32 %v6210_v32, %v7052_v36  ;;  %v7053_v33 = vld [vmem:[#allocation33_spill] sm:$0xff] }
 0x20f   :  { %v1028_v52 = vadd.f32 %v996_v17, %v784_v40  ;;  %v3923_v21 = vmul.f32 %v6214_v25, %v6990_v9  ;;  %v1728_v37 = vmul.f32 %v1676_v29, %v7053_v33  ;;  %v1972_v34 = vmul.f32 %v1920_v14, %v4377_v31  ;;  %v7054_v40 = vld [vmem:[#allocation14_spill] sm:$0xff]  ;;  %v7057_v9 = vld [vmem:[#allocation11_spill] sm:$0xff] }
 0x210   :  { %v2735_v55 = vadd.f32 %v2703_v22, %v2491_v38  ;;  %v2216_v17 = vmul.f32 %v2164_v39, %v4412_v46  ;;  %v186_v41 = vcombine.high %v7054_v40, %v7054_v40  ;;  %v398_v15 = vcombine.high %v7055_v20, %v7055_v20 }
 0x211   :  { %v1272_v47 = vadd.f32 %v1240_v3, %v1028_v52  ;;  %v642_v4 = vcombine.high %v7056_v48, %v7056_v48  ;;  %v886_v22 = vcombine.high %v7057_v9, %v7057_v9  ;;  %v7058_v3 = vld [vmem:[#allocation15_spill] sm:$0xff]  ;;  %v7059_v52 = vld [vmem:[#allocation22_spill] sm:$0xff]  ;;  %v2460_v48 = vmul.f32 %v2408_v50, %v4447_v60  ;;  %v7062_v60 = vld [vmem:[#allocation48_spill] sm:$0xff] }
 0x212   :  { %v2979_v30 = vadd.f32 %v2947_v11, %v2735_v55  ;;  %v1130_v29 = vcombine.high %v7058_v3, %v7058_v3  ;;  %v248_v14 = vrot.slane %v186_v41, %v4129_v10  ;;  %v460_v39 = vrot.slane %v398_v15, %v4129_v10 }
 0x213   :  { %v1516_v36 = vadd.f32 %v1484_v59, %v1272_v47  ;;  %v704_v38 = vrot.slane %v642_v4, %v4129_v10  ;;  %v1374_v20 = vcombine.high %v7059_v52, %v7059_v52  ;;  %v948_v11 = vrot.slane %v886_v22, %v4129_v10  ;;  %v7061_v22 = vld [vmem:[#allocation54_spill] sm:$0xff] }
 0x214   :  { %v3223_v40 = vadd.f32 %v3191_v28, %v2979_v30  ;;  %v297_v9 = vmul.f32 %v248_v14, %v6966_v54  ;;  %v509_v59 = vmul.f32 %v460_v39, %v6998_v51  ;;  %v6256_v47 = vrot.slane %v1130_v29, %v4129_v10 }
 0x215   :  { %v1760_v46 = vadd.f32 %v1728_v37, %v1516_v36  ;;  %v753_v55 = vmul.f32 %v704_v38, %v7028_v0  ;;  %v2704_v41 = vmul.f32 %v6173_v45, %v4482_v8  ;;  %v6261_v30 = vrot.slane %v1374_v20, %v4129_v10  ;;  %v7060_v36 = vld [vmem:[#allocation45_spill] sm:$0xff] }
 0x216   :  { %v3467_v15 = vadd.f32 %v3435_v2, %v3223_v40  ;;  %v541_v50 = vadd.f32 %v509_v59, %v297_v9  ;;  %v997_v28 = vmul.f32 %v948_v11, %v7029_v57  ;;  %v1618_v37 = vcombine.high %v7060_v36, %v7060_v36 }
 0x217   :  { %v2004_v4 = vadd.f32 %v1972_v34, %v1760_v46  ;;  %v1862_v3 = vcombine.high %v7061_v22, %v7061_v22  ;;  %v2106_v46 = vcombine.high %v7062_v60, %v7062_v60  ;;  %v7063_v34 = vld [vmem:[#allocation57_spill] sm:$0xff]  ;;  %v2948_v2 = vmul.f32 %v6177_v58, %v4517_v53  ;;  %v7064_v58 = vld [vmem:[#allocation60_spill] sm:$0xff] }
 0x218   :  { %v3711_v52 = vadd.f32 %v3679_v49, %v3467_v15  ;;  %v2350_v45 = vcombine.high %v7063_v34, %v7063_v34  ;;  %v785_v20 = vadd.f32 %v753_v55, %v541_v50  ;;  %v1241_v40 = vmul.f32 %v6256_v47, %v7030_v56 }
 0x219   :  { %v2248_v29 = vadd.f32 %v2216_v17, %v2004_v4  ;;  %v1680_v9 = vrot.slane %v1618_v37, %v4129_v10  ;;  %v3192_v49 = vmul.f32 %v3140_v63, %v4552_v12  ;;  %v3436_v17 = vmul.f32 %v3384_v1, %v4587_v42  ;;  %v7065_v63 = vld [vmem:[#allocation13_spill] sm:$0xff] }
 0x21a   :  { %v3955_v59 = vadd.f32 %v3923_v21, %v3711_v52  ;;  %v1029_v15 = vadd.f32 %v997_v28, %v785_v20  ;;  %v1485_v60 = vmul.f32 %v6261_v30, %v7031_v24  ;;  %v6282_v4 = vrot.slane %v1862_v3, %v4129_v10  ;;  %v7066_v3 = vld [vmem:[#allocation19_spill] sm:$0xff] }
 0x21b   :  { %v2492_v36 = vadd.f32 %v2460_v48, %v2248_v29  ;;  %v2594_v55 = vcombine.high %v7064_v58, %v7064_v58  ;;  %v6287_v37 = vrot.slane %v2106_v46, %v4129_v10  ;;  %v6290_v21 = vrot.slane %v2350_v45, %v4129_v10  ;;  %v7067_v46 = vld [vmem:[#allocation28_spill] sm:$0xff] }
 0x21c   :  { %4003 = vxpose.xlu1.b32.cont [11/16] (narrow) %v3955_v59, 8  ;;  %v2838_v1 = vcombine.high %v7065_v63, %v7065_v63  ;;  %v3680_v48 = vmul.f32 %v6210_v32, %v4622_v13  ;;  %v1273_v28 = vadd.f32 %v1241_v40, %v1029_v15  ;;  %v1729_v22 = vmul.f32 %v1680_v9, %v6977_v62  ;;  %v7068_v45 = vld [vmem:[#allocation52_spill] sm:$0xff] }
 0x21d   :  { %v2736_v50 = vadd.f32 %v2704_v41, %v2492_v36  ;;  %v3082_v52 = vcombine.high %v7066_v3, %v7066_v3  ;;  %v3924_v41 = vmul.f32 %v6214_v25, %v6958_v7  ;;  %v3326_v34 = vcombine.high %v7067_v46, %v7067_v46  ;;  %v7069_v36 = vld [vmem:[#allocation23_spill] sm:$0xff] }
 0x21e   :  { %v3570_v20 = vcombine.high %v7068_v45, %v7068_v45  ;;  %v1517_v59 = vadd.f32 %v1485_v60, %v1273_v28  ;;  %v1973_v32 = vmul.f32 %v6282_v4, %v6978_v19  ;;  %v6308_v40 = vrot.slane %v2594_v55, %v4129_v10 }
 0x21f   :  { %v2980_v29 = vadd.f32 %v2948_v2, %v2736_v50  ;;  %v3814_v15 = vcombine.high %v7069_v36, %v7069_v36  ;;  %v2217_v25 = vmul.f32 %v6287_v37, %v7043_v35  ;;  %v2461_v58 = vmul.f32 %v6290_v21, %v7048_v5 }
 0x220   :  { %v6317_v50 = vrot.slane %v2838_v1, %v4129_v10  ;;  %v1761_v60 = vadd.f32 %v1729_v22, %v1517_v59  ;;  %v6320_v63 = vrot.slane %v3082_v52, %v4129_v10  ;;  %v298_v55 = vmul.f32 %v248_v14, %v6910_v27 }
 0x221   :  { %v3224_v2 = vadd.f32 %v3192_v49, %v2980_v29  ;;  %v510_v28 = vmul.f32 %v460_v39, %v6911_v6  ;;  %v6325_v49 = vrot.slane %v3326_v34, %v4129_v10  ;;  %v6328_v29 = vrot.slane %v3570_v20, %v4129_v10 }
 0x222   :  { %v754_v46 = vmul.f32 %v704_v38, %v6835_v18  ;;  %v2005_v45 = vadd.f32 %v1973_v32, %v1761_v60  ;;  %v6332_v1 = vrot.slane %v3814_v15, %v4129_v10  ;;  %v998_v52 = vmul.f32 %v948_v11, %v6957_v16  ;;  %v7070_v11 = vld [vmem:[#allocation58_spill] sm:$0xff] }
 0x223   :  { %v3468_v3 = vadd.f32 %v3436_v17, %v3224_v2  ;;  %v542_v22 = vadd.f32 %v510_v28, %v298_v55  ;;  %v2705_v14 = vmul.f32 %v6308_v40, %v7049_v43  ;;  %v2949_v17 = vmul.f32 %v6317_v50, %v7050_v26  ;;  %v7071_v2 = vld [vmem:[#allocation61_spill] sm:$0xff] }
 0x224   :  { %v2249_v39 = vadd.f32 %v2217_v25, %v2005_v45  ;;  %v1242_v20 = vmul.f32 %v6256_v47, %v6913_v61  ;;  %v3193_v32 = vmul.f32 %v6320_v63, %v6956_v44  ;;  %v3437_v36 = vmul.f32 %v6325_v49, %v7051_v23  ;;  %v7072_v55 = vld [vmem:[#allocation29_spill] sm:$0xff] }
 0x225   :  { %v3712_v59 = vadd.f32 %v3680_v48, %v3468_v3  ;;  %v786_v34 = vadd.f32 %v754_v46, %v542_v22  ;;  %v3681_v48 = vmul.f32 %v6328_v29, %v7070_v11  ;;  %v3925_v25 = vmul.f32 %v6332_v1, %v7071_v2  ;;  %v7074_v46 = vld [vmem:[#allocation32_spill] sm:$0xff]  ;;  %v7078_v2 = vld [vmem:[#allocation39_spill] sm:$0xff] }
 0x226   :  { %v2493_v15 = vadd.f32 %v2461_v58, %v2249_v39  ;;  %v1486_v28 = vmul.f32 %v6261_v30, %v7072_v55  ;;  %v1730_v47 = vmul.f32 %v1680_v9, %v7053_v33  ;;  %v400_v45 = vcombine.high %v7074_v46, %v7074_v46  ;;  %v7075_v22 = vld [vmem:[#allocation36_spill] sm:$0xff] }
 0x227   :  { %v3956_v38 = vadd.f32 %v3924_v41, %v3712_v59  ;;  %v1030_v60 = vadd.f32 %v998_v52, %v786_v34  ;;  %v7073_v41 = vld [vmem:[#allocation62_spill] sm:$0xff]  ;;  %v644_v59 = vcombine.high %v7075_v22, %v7075_v22  ;;  %v7076_v11 = vld [vmem:[#allocation64_spill] sm:$0xff]  ;;  %v1376_v46 = vcombine.high %v7078_v2, %v7078_v2 }
 0x228   :  { %v188_v3 = vcombine.high %v7073_v41, %v7073_v41  ;;  %v2737_v58 = vadd.f32 %v2705_v14, %v2493_v15  ;;  %v888_v52 = vcombine.high %v7076_v11, %v7076_v11  ;;  %v7077_v34 = vld [vmem:[#allocation16_spill] sm:$0xff]  ;;  %v464_v9 = vrot.slane %v400_v45, %v4129_v10 }
 0x229   :  { %4004 = vxpose.xlu1.b32.cont [12/16] (narrow) %v3956_v38, 8  ;;  %v1274_v39 = vadd.f32 %v1242_v20, %v1030_v60  ;;  %v1132_v30 = vcombine.high %v7077_v34, %v7077_v34  ;;  %v708_v41 = vrot.slane %v644_v59, %v4129_v10  ;;  %v1974_v14 = vmul.f32 %v6282_v4, %v4377_v31  ;;  %v7079_v59 = vld [vmem:[#allocation40_spill] sm:$0xff] }
 0x22a   :  { %v252_v38 = vrot.slane %v188_v3, %v4129_v10  ;;  %v2981_v23 = vadd.f32 %v2949_v17, %v2737_v58  ;;  %v952_v20 = vrot.slane %v888_v52, %v4129_v10  ;;  %v511_v15 = vmul.f32 %v464_v9, %v6998_v51  ;;  %v7080_v58 = vld [vmem:[#allocation65_spill] sm:$0xff]  ;;  %v7082_v34 = vld [vmem:[#allocation44_spill] sm:$0xff] }
 0x22b   :  { %v1518_v33 = vadd.f32 %v1486_v28, %v1274_v39  ;;  %v755_v60 = vmul.f32 %v708_v41, %v7028_v0  ;;  %v1196_v3 = vrot.slane %v1132_v30, %v4129_v10  ;;  %v2218_v2 = vmul.f32 %v6287_v37, %v7079_v59  ;;  %v7081_v39 = vld [vmem:[#allocation10_spill] sm:$0xff] }
 0x22c   :  { %v299_v11 = vmul.f32 %v252_v38, %v6966_v54  ;;  %v3225_v45 = vadd.f32 %v3193_v32, %v2981_v23  ;;  %v6377_v17 = vrot.slane %v1376_v46, %v4129_v10  ;;  %v999_v4 = vmul.f32 %v952_v20, %v7029_v57 }
 0x22d   :  { %v1762_v22 = vadd.f32 %v1730_v47, %v1518_v33  ;;  %v1620_v54 = vcombine.high %v7080_v58, %v7080_v58  ;;  %v1864_v51 = vcombine.high %v7081_v39, %v7081_v39  ;;  %v2462_v23 = vmul.f32 %v6290_v21, %v7082_v34  ;;  %v7083_v33 = vld [vmem:[#allocation9_spill] sm:$0xff] }
 0x22e   :  { %v543_v28 = vadd.f32 %v511_v15, %v299_v11  ;;  %v3469_v0 = vadd.f32 %v3437_v36, %v3225_v45  ;;  %v2108_v37 = vcombine.high %v7083_v33, %v7083_v33  ;;  %v1243_v47 = vmul.f32 %v1196_v3, %v7030_v56  ;;  %v7084_v15 = vld [vmem:[#allocation43_spill] sm:$0xff] }
 0x22f   :  { %v2006_v52 = vadd.f32 %v1974_v14, %v1762_v22  ;;  %v1684_v30 = vrot.slane %v1620_v54, %v4129_v10  ;;  %v2706_v11 = vmul.f32 %v6308_v40, %v4482_v8  ;;  %v2352_v36 = vcombine.high %v7084_v15, %v7084_v15 }
 0x230   :  { %v787_v32 = vadd.f32 %v755_v60, %v543_v28  ;;  %v3713_v57 = vadd.f32 %v3681_v48, %v3469_v0  ;;  %v2950_v14 = vmul.f32 %v6317_v50, %v4517_v53  ;;  %v1487_v45 = vmul.f32 %v6377_v17, %v7031_v24  ;;  %v7086_v24 = vld [vmem:[#allocation50_spill] sm:$0xff] }
 0x231   :  { %v2250_v46 = vadd.f32 %v2218_v2, %v2006_v52  ;;  %v1928_v60 = vrot.slane %v1864_v51, %v4129_v10  ;;  %v2172_v48 = vrot.slane %v2108_v37, %v4129_v10  ;;  %v7085_v2 = vld [vmem:[#allocation47_spill] sm:$0xff]  ;;  %v1731_v58 = vmul.f32 %v1684_v30, %v6977_v62  ;;  %v7087_v37 = vld [vmem:[#allocation53_spill] sm:$0xff] }
 0x232   :  { %v1031_v21 = vadd.f32 %v999_v4, %v787_v32  ;;  %v3957_v56 = vadd.f32 %v3925_v25, %v3713_v57  ;;  %v2596_v28 = vcombine.high %v7085_v2, %v7085_v2  ;;  %v3194_v50 = vmul.f32 %v6320_v63, %v4552_v12 }
 0x233   :  { %v2494_v22 = vadd.f32 %v2462_v23, %v2250_v46  ;;  %v2416_v4 = vrot.slane %v2352_v36, %v4129_v10  ;;  %v2840_v39 = vcombine.high %v7086_v24, %v7086_v24  ;;  %v3438_v25 = vmul.f32 %v6325_v49, %v4587_v42 }
 0x234   :  { %v1275_v40 = vadd.f32 %v1243_v47, %v1031_v21  ;;  %4005 = vxpose.xlu1.b32.cont [13/16] (narrow) %v3957_v56, 8  ;;  %v1975_v0 = vmul.f32 %v1928_v60, %v6978_v19  ;;  %v3682_v62 = vmul.f32 %v6328_v29, %v4622_v13  ;;  %v2219_v23 = vmul.f32 %v2172_v48, %v7043_v35 }
 0x235   :  { %v2738_v54 = vadd.f32 %v2706_v11, %v2494_v22  ;;  %v2660_v33 = vrot.slane %v2596_v28, %v4129_v10  ;;  %v3084_v32 = vcombine.high %v7087_v37, %v7087_v37  ;;  %v300_v47 = vmul.f32 %v252_v38, %v6910_v27  ;;  %v7088_v11 = vld [vmem:[#allocation56_spill] sm:$0xff]  ;;  %v7089_v38 = vld [vmem:[#allocation31_spill] sm:$0xff] }
 0x236   :  { %v1519_v51 = vadd.f32 %v1487_v45, %v1275_v40  ;;  %v512_v57 = vmul.f32 %v464_v9, %v6911_v6  ;;  %v2463_v46 = vmul.f32 %v2416_v4, %v7048_v5  ;;  %v2904_v19 = vrot.slane %v2840_v39, %v4129_v10 }
 0x237   :  { %v2982_v52 = vadd.f32 %v2950_v14, %v2738_v54  ;;  %v3328_v29 = vcombine.high %v7088_v11, %v7088_v11  ;;  %v756_v36 = vmul.f32 %v708_v41, %v6835_v18  ;;  %v1000_v14 = vmul.f32 %v952_v20, %v6957_v16  ;;  %v7090_v41 = vld [vmem:[#allocation35_spill] sm:$0xff] }
 0x238   :  { %v1763_v63 = vadd.f32 %v1731_v58, %v1519_v51  ;;  %v544_v35 = vadd.f32 %v512_v57, %v300_v47  ;;  %v3926_v27 = vmul.f32 %v6332_v1, %v6958_v7  ;;  %v2707_v6 = vmul.f32 %v2660_v33, %v7049_v43  ;;  %v7092_v51 = vld [vmem:[#allocation55_spill] sm:$0xff] }
 0x239   :  { %v3226_v49 = vadd.f32 %v3194_v50, %v2982_v52  ;;  %v3572_v5 = vcombine.high %v7089_v38, %v7089_v38  ;;  %v3148_v45 = vrot.slane %v3084_v32, %v4129_v10  ;;  %v1244_v22 = vmul.f32 %v1196_v3, %v6913_v61  ;;  %v7091_v3 = vld [vmem:[#allocation33_spill] sm:$0xff] }
 0x23a   :  { %v2007_v15 = vadd.f32 %v1975_v0, %v1763_v63  ;;  %v788_v56 = vadd.f32 %v756_v36, %v544_v35  ;;  %v3392_v18 = vrot.slane %v3328_v29, %v4129_v10  ;;  %v3816_v16 = vcombine.high %v7090_v41, %v7090_v41 }
 0x23b   :  { %v3470_v21 = vadd.f32 %v3438_v25, %v3226_v49  ;;  %v2951_v1 = vmul.f32 %v2904_v19, %v7050_v26  ;;  %v1488_v43 = vmul.f32 %v6377_v17, %v7072_v55  ;;  %v3636_v58 = vrot.slane %v3572_v5, %v4129_v10  ;;  %v7093_v55 = vld [vmem:[#allocation58_spill] sm:$0xff] }
 0x23c   :  { %v2251_v9 = vadd.f32 %v2219_v23, %v2007_v15  ;;  %v1032_v28 = vadd.f32 %v1000_v14, %v788_v56  ;;  %v3195_v50 = vmul.f32 %v3148_v45, %v6956_v44  ;;  %v1732_v24 = vmul.f32 %v1684_v30, %v7091_v3  ;;  %v7094_v44 = vld [vmem:[#allocation61_spill] sm:$0xff] }
 0x23d   :  { %v3714_v2 = vadd.f32 %v3682_v62, %v3470_v21  ;;  %v3880_v39 = vrot.slane %v3816_v16, %v4129_v10  ;;  %v3439_v0 = vmul.f32 %v3392_v18, %v7092_v51  ;;  %v1976_v52 = vmul.f32 %v1928_v60, %v4377_v31 }
 0x23e   :  { %v2495_v20 = vadd.f32 %v2463_v46, %v2251_v9  ;;  %v1276_v61 = vadd.f32 %v1244_v22, %v1032_v28  ;;  %v3683_v17 = vmul.f32 %v3636_v58, %v7093_v55  ;;  %v2220_v63 = vmul.f32 %v2172_v48, %v7079_v59 }
 0x23f   :  { %v3958_v40 = vadd.f32 %v3926_v27, %v3714_v2  ;;  %v3927_v32 = vmul.f32 %v3880_v39, %v7094_v44  ;;  %v2464_v30 = vmul.f32 %v2416_v4, %v7082_v34  ;;  %v2708_v49 = vmul.f32 %v2660_v33, %v4482_v8  ;;  %v3977_v8 = vpop.trf.xlu1 }
 0x240   :  { %v2739_v54 = vadd.f32 %v2707_v6, %v2495_v20  ;;  %v1520_v26 = vadd.f32 %v1488_v43, %v1276_v61  ;;  %v2952_v31 = vmul.f32 %v2904_v19, %v4517_v53  ;;  %v3196_v29 = vmul.f32 %v3148_v45, %v4552_v12 }
 0x241   :  { %4006 = vxpose.xlu1.b32.cont [14/16] (narrow) %v3958_v40, 8  ;;  %v3440_v59 = vmul.f32 %v3392_v18, %v4587_v42  ;;  %v3684_v35 = vmul.f32 %v3636_v58, %v4622_v13  ;;  %v3928_v34 = vmul.f32 %v3880_v39, %v6958_v7 }
 0x242   :  { %v2983_v25 = vadd.f32 %v2951_v1, %v2739_v54  ;;  %v1764_v23 = vadd.f32 %v1732_v24, %v1520_v26 }
 0x244   :  { %v3227_v62 = vadd.f32 %v3195_v50, %v2983_v25  ;;  %v2008_v47 = vadd.f32 %v1976_v52, %v1764_v23 }
 0x246   :  { %v3471_v37 = vadd.f32 %v3439_v0, %v3227_v62  ;;  %v2252_v10 = vadd.f32 %v2220_v63, %v2008_v47 }
 0x248   :  { %v3715_v57 = vadd.f32 %v3683_v17, %v3471_v37  ;;  %v2496_v11 = vadd.f32 %v2464_v30, %v2252_v10 }
 0x24a   :  { %v3959_v46 = vadd.f32 %v3927_v32, %v3715_v57  ;;  %v2740_v60 = vadd.f32 %v2708_v49, %v2496_v11 }
 0x24c   :  { %4007 = vxpose.xlu1.b32.cont [15/16] (narrow) %v3959_v46, 8  ;;  %v2984_v15 = vadd.f32 %v2952_v31, %v2740_v60 }
 0x24e   :  { %v3228_v48 = vadd.f32 %v3196_v29, %v2984_v15 }
 0x250   :  { %v3472_v36 = vadd.f32 %v3440_v59, %v3228_v48 }
 0x252   :  { %v3716_v4 = vadd.f32 %v3684_v35, %v3472_v36 }
 0x254   :  { %v3960_v14 = vadd.f32 %v3928_v34, %v3716_v4 }
 0x256   :  { %4008 = vxpose.xlu1.b32.end [16/16] (narrow) %v3960_v14, 8 }
 0x29a   :  { %v4009_v53 = vpop.trf.xlu1 }
 0x29b   :  { %v4027_v33 = vcombine.low %v3977_v8, %v4009_v53 }
 0x29d   :  { %4029 = vst [vmem:[#allocation5] sm:$0xff] %v4027_v33 }
 0x29e   :  { %4083 = shalt.err (!%p4080_p12)
}
 0x29f   :  { %s4084_s22 = scalar_lea.hbm %s6467_s1, 128 }
 0x2a0   :  { %p4085_p13 = scmp.ne.s32.totalorder %s6467_s1, %s4084_s22  ;;  %p4088_p0 = scmp.lt.u32.totalorder %s4084_s22, %s6467_s1 }
 0x2a2   :  { %p4090_p1 = pnand %p4088_p0, %p4085_p13 }
 0x2a4   :  { %4093 = shalt.err (!%p4090_p1)
}
 0x2a5   :  { %4039 = dma.vmem_to_hbm [thread:$0]  %s4037_s18, 128, %s6467_s1, [#allocation4]  }
 0x2a6   :  { %4096 = dma.done.wait [#allocation4], 128  }
 0x2a7   :  { %4097 = vsyncadd [#allocation4], 4294967168 }
 0x2a8   :  { %4043 = vsyncpa [#allocation3], 1 }
 0x2a9   :  { %4044 = vsyncpa [#allocation4], 1 }

</bundles_post_ra>
